<compile_context>
chip_gen: v7x
topology: tpu7x:2x2x1
jax: 0.10.0
libtpu: 0.0.40
codegen_flags: <defaults>
</compile_context>

<pallas_src>
import functools

import jax
import jax.numpy as jnp
from jax import lax
from jax.experimental import pallas as pl
from jax.experimental.pallas import tpu as pltpu

NEG_SLOPE = 0.01          # nn.LeakyReLU() default
BN_EPS = 1e-5             # nn.BatchNorm2d default
MATMUL_DTYPE = jnp.float32  # flip to jnp.bfloat16 on v6e/v7x for ~4x MXU throughput
VMEM_LIMIT = 32 * 1024 * 1024


def _lrelu(v):
    return jnp.where(v > 0, v, NEG_SLOPE * v)


# ----------------------------------------------------------------------------
# Pass 1: conv1x1 -> LReLU -> conv3x3 (SAME, im2col) -> LReLU -> conv1x1
#         -> +residual.  Emits pre-BN tensor y and per-tile BN partial sums.
# One grid step == one batch image (no cross-tile halo needed).
# ----------------------------------------------------------------------------
def _resblock_conv_kernel(x_ref, w1_ref, b1_ref, w2_ref, b2_ref, w3_ref,
                          b3_ref, y_ref, stats_ref, pad_ref):
    h, w, c = x_ref.shape
    c4 = w1_ref.shape[1]
    p = h * w

    x = x_ref[...].reshape(p, c)

    # --- conv1: 1x1, C -> C/4, single MXU matmul, + LeakyReLU ---------------
    h1 = jnp.dot(x.astype(MATMUL_DTYPE), w1_ref[...].astype(MATMUL_DTYPE),
                 preferred_element_type=jnp.float32) + b1_ref[...]
    h1 = _lrelu(h1)

    # --- conv2: 3x3 SAME as ONE im2col matmul (K = 9*C4) --------------------
    # Zero only the 1-pixel halo border of the padded scratch, then write the
    # interior once; build the (P, 9*C4) patch matrix in a single concat.
    zrow = jnp.zeros((1, w + 2, c4), jnp.float32)
    zcol = jnp.zeros((h + 2, 1, c4), jnp.float32)
    pad_ref[0:1] = zrow
    pad_ref[h + 1:h + 2] = zrow
    pad_ref[:, 0:1, :] = zcol
    pad_ref[:, w + 1:w + 2, :] = zcol
    pad_ref[1:h + 1, 1:w + 1, :] = h1.reshape(h, w, c4)

    taps = [pad_ref[dy:dy + h, dx:dx + w, :]
            for dy in range(3) for dx in range(3)]
    patches = jnp.concatenate(taps, axis=-1).reshape(p, 9 * c4)

    h2 = jnp.dot(patches.astype(MATMUL_DTYPE), w2_ref[...].astype(MATMUL_DTYPE),
                 preferred_element_type=jnp.float32) + b2_ref[...]
    h2 = _lrelu(h2)

    # --- conv3: 1x1, C/4 -> C, then residual add -----------------------------
    h3 = jnp.dot(h2.astype(MATMUL_DTYPE), w3_ref[...].astype(MATMUL_DTYPE),
                 preferred_element_type=jnp.float32) + b3_ref[...]
    y = h3 + x

    y_ref[...] = y.reshape(h, w, c)

    # --- BN partials: per-channel sum / sum-of-squares for this tile ---------
    s1 = jnp.sum(y, axis=0, keepdims=True)       # (1, C)
    s2 = jnp.sum(y * y, axis=0, keepdims=True)   # (1, C)
    stats_ref[...] = jnp.concatenate([s1, s2], axis=0)


# ----------------------------------------------------------------------------
# Pass 2: y -> gamma*(y-mean)*rsqrt(var+eps)+beta -> LeakyReLU
# scale/shift are precomputed per channel; output aliases the y buffer.
# ----------------------------------------------------------------------------
def _bn_act_kernel(y_ref, scale_ref, shift_ref, o_ref):
    h, w, c = y_ref.shape
    scale = scale_ref[...].reshape(1, 1, c)
    shift = shift_ref[...].reshape(1, 1, c)
    o_ref[...] = _lrelu(y_ref[...] * scale + shift)


def resblock_forward(x, params):
    """x: NHWC float32 (N, H, W, C). Returns NHWC float32."""
    w1, b1, w2, b2, w3, b3, gamma, beta = params
    n, h, w_, c = x.shape
    c4 = w1.shape[1]
    p_total = n * h * w_

    w2_mat = w2.reshape(9 * c4, c4)   # HWIO (3,3,C4,C4) -> (9*C4, C4), im2col order

    # --------------------------- pass 1 --------------------------------------
    flops1 = 2 * p_total * (c * c4 + 9 * c4 * c4 + c4 * c) + 10 * p_total * c
    bytes1 = 4 * (2 * p_total * c + n * 2 * c
                  + c * c4 + 9 * c4 * c4 + c4 * c + 2 * c4 + 2 * c)
    y, stats = pl.pallas_call(
        _resblock_conv_kernel,
        out_shape=(jax.ShapeDtypeStruct((n, h, w_, c), jnp.float32),
                   jax.ShapeDtypeStruct((n, 2, c), jnp.float32)),
        grid_spec=pltpu.PrefetchScalarGridSpec(
            num_scalar_prefetch=0,
            grid=(n,),
            in_specs=[
                pl.BlockSpec((None, h, w_, c), lambda i: (i, 0, 0, 0)),
                pl.BlockSpec((c, c4), lambda i: (0, 0)),
                pl.BlockSpec((1, c4), lambda i: (0, 0)),
                pl.BlockSpec((9 * c4, c4), lambda i: (0, 0)),
                pl.BlockSpec((1, c4), lambda i: (0, 0)),
                pl.BlockSpec((c4, c), lambda i: (0, 0)),
                pl.BlockSpec((1, c), lambda i: (0, 0)),
            ],
            out_specs=[
                pl.BlockSpec((None, h, w_, c), lambda i: (i, 0, 0, 0)),
                pl.BlockSpec((None, 2, c), lambda i: (i, 0, 0)),
            ],
            scratch_shapes=[pltpu.VMEM((h + 2, w_ + 2, c4), jnp.float32)],
        ),
        compiler_params=pltpu.CompilerParams(
            dimension_semantics=("parallel",),
            vmem_limit_bytes=VMEM_LIMIT),
        cost_estimate=pl.CostEstimate(flops=flops1, transcendentals=0,
                                      bytes_accessed=bytes1),
    )(x, w1, b1.reshape(1, c4), w2_mat, b2.reshape(1, c4),
      w3, b3.reshape(1, c))

    # --------- BN finalize: tiny per-channel reduction over the tiles --------
    # TODO(synk): running_mean/running_var momentum buffer updates (training
    # side effect, not part of the returned tensor) are not reproduced.
    cnt = float(p_total)
    total = jnp.sum(stats, axis=0)                       # (2, C)
    mean = total[0] / cnt
    var = jnp.maximum(total[1] / cnt - mean * mean, 0.0)
    scale = gamma * lax.rsqrt(var + BN_EPS)
    shift = beta - mean * scale

    # --------------------------- pass 2 --------------------------------------
    flops2 = 4 * p_total * c
    bytes2 = 4 * (2 * p_total * c + 2 * c)
    out = pl.pallas_call(
        _bn_act_kernel,
        out_shape=jax.ShapeDtypeStruct((n, h, w_, c), jnp.float32),
        grid_spec=pltpu.PrefetchScalarGridSpec(
            num_scalar_prefetch=0,
            grid=(n,),
            in_specs=[
                pl.BlockSpec((None, h, w_, c), lambda i: (i, 0, 0, 0)),
                pl.BlockSpec((1, c), lambda i: (0, 0)),
                pl.BlockSpec((1, c), lambda i: (0, 0)),
            ],
            out_specs=pl.BlockSpec((None, h, w_, c), lambda i: (i, 0, 0, 0)),
        ),
        compiler_params=pltpu.CompilerParams(
            dimension_semantics=("parallel",),
            vmem_limit_bytes=VMEM_LIMIT),
        cost_estimate=pl.CostEstimate(flops=flops2, transcendentals=0,
                                      bytes_accessed=bytes2),
        input_output_aliases={0: 0},   # normalize y in place
    )(y, scale.reshape(1, c), shift.reshape(1, c))

    return out


def resblock_reference(x, params):
    """Pure-JAX NHWC reference (no Pallas) for numerical verification."""
    w1, b1, w2, b2, w3, b3, gamma, beta = params
    h1 = _lrelu(jnp.einsum('nhwc,cd->nhwd', x, w1) + b1)
    h2 = lax.conv_general_dilated(
        h1, w2, window_strides=(1, 1), padding='SAME',
        dimension_numbers=('NHWC', 'HWIO', 'NHWC'))
    h2 = _lrelu(h2 + b2)
    h3 = jnp.einsum('nhwc,cd->nhwd', h2, w3) + b3
    y = h3 + x
    mean = jnp.mean(y, axis=(0, 1, 2))
    var = jnp.mean((y - mean) ** 2, axis=(0, 1, 2))
    yn = (y - mean) / jnp.sqrt(var + BN_EPS) * gamma + beta
    return _lrelu(yn)


if __name__ == "__main__":
    key = jax.random.PRNGKey(0)
    # TASHR ResBlock: channels = 4*cnum = 128 (lane-dense), small spatial/batch.
    N, H, W, C = 2, 16, 16, 128
    C4 = C // 4
    ks = jax.random.split(key, 9)

    x = jax.random.normal(ks[0], (N, H, W, C), jnp.float32)   # NHWC at the boundary

    # Synthetic parameters (Conv2d weights stored matmul-style / HWIO;
    # equivalent to the PyTorch NCHW-kernel layouts).
    w1 = jax.random.normal(ks[1], (C, C4), jnp.float32) * 0.1        # conv1: 1x1
    b1 = jax.random.normal(ks[2], (C4,), jnp.float32) * 0.1
    w2 = jax.random.normal(ks[3], (3, 3, C4, C4), jnp.float32) * 0.1  # conv2: 3x3
    b2 = jax.random.normal(ks[4], (C4,), jnp.float32) * 0.1
    w3 = jax.random.normal(ks[5], (C4, C), jnp.float32) * 0.1        # conv3: 1x1
    b3 = jax.random.normal(ks[6], (C,), jnp.float32) * 0.1
    gamma = 1.0 + jax.random.normal(ks[7], (C,), jnp.float32) * 0.1
    beta = jax.random.normal(ks[8], (C,), jnp.float32) * 0.1
    params = (w1, b1, w2, b2, w3, b3, gamma, beta)

    fwd = jax.jit(resblock_forward)
    out = jax.block_until_ready(fwd(x, params))

    ref = resblock_reference(x, params)
    max_err = float(jnp.max(jnp.abs(out - ref)))
    if out.shape != (N, H, W, C) or not (max_err < 2e-3):
        raise AssertionError(
            f"mismatch vs reference: max_err={max_err}, shape={out.shape}")

    print("KERNEL_OK")
</pallas_src>

<mosaic_0001>
module attributes {stable_mosaic.version = 11 : i64} {
  func.func @_resblock_conv_kernel(%arg0: i32, %arg1: memref<1x16x16x128xf32, #tpu.memory_space<vmem>>, %arg2: memref<128x32xf32, #tpu.memory_space<vmem>>, %arg3: memref<1x32xf32, #tpu.memory_space<vmem>>, %arg4: memref<288x32xf32, #tpu.memory_space<vmem>>, %arg5: memref<1x32xf32, #tpu.memory_space<vmem>>, %arg6: memref<32x128xf32, #tpu.memory_space<vmem>>, %arg7: memref<1x128xf32, #tpu.memory_space<vmem>>, %arg8: memref<1x16x16x128xf32, #tpu.memory_space<vmem>>, %arg9: memref<1x2x128xf32, #tpu.memory_space<vmem>>, %arg10: memref<18x18x32xf32, #tpu.memory_space<vmem>>) attributes {dimension_semantics = [#tpu.dimension_semantics<parallel>], iteration_bounds = array<i64: 2>, scalar_prefetch = 0 : i64, scratch_operands = 1 : i64, tpu.core_type = #tpu.core_type<tc>, window_params = [{transform_indices = @transform_0, window_bounds = array<i64: 1, 16, 16, 128>}, {pipeline_mode = #tpu.pipeline_mode<synchronous>, transform_indices = @transform_1, window_bounds = array<i64: 128, 32>}, {pipeline_mode = #tpu.pipeline_mode<synchronous>, transform_indices = @transform_2, window_bounds = array<i64: 1, 32>}, {pipeline_mode = #tpu.pipeline_mode<synchronous>, transform_indices = @transform_3, window_bounds = array<i64: 288, 32>}, {pipeline_mode = #tpu.pipeline_mode<synchronous>, transform_indices = @transform_4, window_bounds = array<i64: 1, 32>}, {pipeline_mode = #tpu.pipeline_mode<synchronous>, transform_indices = @transform_5, window_bounds = array<i64: 32, 128>}, {pipeline_mode = #tpu.pipeline_mode<synchronous>, transform_indices = @transform_6, window_bounds = array<i64: 1, 128>}, {transform_indices = @transform_7, window_bounds = array<i64: 1, 16, 16, 128>}, {transform_indices = @transform_8, window_bounds = array<i64: 1, 2, 128>}]} {
    %c0 = arith.constant 0 : index
    %c0_0 = arith.constant 0 : index
    %c0_1 = arith.constant 0 : index
    %c0_2 = arith.constant 0 : index
    %0 = vector.load %arg1[%c0, %c0_0, %c0_1, %c0_2] : memref<1x16x16x128xf32, #tpu.memory_space<vmem>>, vector<1x16x16x128xf32>
    %1 = vector.shape_cast %0 : vector<1x16x16x128xf32> to vector<16x16x128xf32>
    %2 = vector.shape_cast %1 : vector<16x16x128xf32> to vector<256x128xf32>
    %c0_3 = arith.constant 0 : index
    %c0_4 = arith.constant 0 : index
    %3 = vector.load %arg2[%c0_3, %c0_4] : memref<128x32xf32, #tpu.memory_space<vmem>>, vector<128x32xf32>
    %cst = arith.constant dense<0.000000e+00> : vector<256x32xf32>
    %4 = tpu.matmul %2, %3, %cst {dimension_numbers = #tpu.dot_dimension_numbers<[1], [0], [0], [1], [0, 0, 1, 1], [], []>} : vector<256x128xf32>, vector<128x32xf32>, vector<256x32xf32> -> vector<256x32xf32>
    %c0_5 = arith.constant 0 : index
    %c0_6 = arith.constant 0 : index
    %5 = vector.load %arg3[%c0_5, %c0_6] : memref<1x32xf32, #tpu.memory_space<vmem>>, vector<1x32xf32>
    %6 = vector.broadcast %5 : vector<1x32xf32> to vector<256x32xf32>
    %7 = arith.addf %4, %6 : vector<256x32xf32>
    %cst_7 = arith.constant 0.000000e+00 : f32
    %8 = vector.broadcast %cst_7 : f32 to vector<256x32xf32>
    %9 = arith.cmpf ogt, %7, %8 : vector<256x32xf32>
    %cst_8 = arith.constant 0.00999999977 : f32
    %10 = vector.broadcast %cst_8 : f32 to vector<256x32xf32>
    %11 = arith.mulf %10, %7 : vector<256x32xf32>
    %12 = arith.select %9, %7, %11 : vector<256x32xi1>, vector<256x32xf32>
    %cst_9 = arith.constant 0.000000e+00 : f32
    %13 = vector.broadcast %cst_9 : f32 to vector<1x18x32xf32>
    %cst_10 = arith.constant 0.000000e+00 : f32
    %14 = vector.broadcast %cst_10 : f32 to vector<18x1x32xf32>
    %c0_11 = arith.constant 0 : index
    %c0_12 = arith.constant 0 : index
    %c0_13 = arith.constant 0 : index
    %15 = vector.load %arg10[%c0_11, %c0_12, %c0_13] : memref<18x18x32xf32, #tpu.memory_space<vmem>>, vector<1x18x32xf32>
    tpu.vector_store %arg10[%c0_11, %c0_12, %c0_13], %13 {strides = array<i32>} : memref<18x18x32xf32, #tpu.memory_space<vmem>>, vector<1x18x32xf32>,
    %c17 = arith.constant 17 : index
    %c0_14 = arith.constant 0 : index
    %c0_15 = arith.constant 0 : index
    %16 = vector.load %arg10[%c17, %c0_14, %c0_15] : memref<18x18x32xf32, #tpu.memory_space<vmem>>, vector<1x18x32xf32>
    tpu.vector_store %arg10[%c17, %c0_14, %c0_15], %13 {strides = array<i32>} : memref<18x18x32xf32, #tpu.memory_space<vmem>>, vector<1x18x32xf32>,
    %c0_16 = arith.constant 0 : index
    %c0_17 = arith.constant 0 : index
    %c0_18 = arith.constant 0 : index
    %17 = vector.load %arg10[%c0_16, %c0_17, %c0_18] : memref<18x18x32xf32, #tpu.memory_space<vmem>>, vector<18x1x32xf32>
    tpu.vector_store %arg10[%c0_16, %c0_17, %c0_18], %14 {strides = array<i32>} : memref<18x18x32xf32, #tpu.memory_space<vmem>>, vector<18x1x32xf32>,
    %c0_19 = arith.constant 0 : index
    %c17_20 = arith.constant 17 : index
    %c0_21 = arith.constant 0 : index
    %18 = vector.load %arg10[%c0_19, %c17_20, %c0_21] : memref<18x18x32xf32, #tpu.memory_space<vmem>>, vector<18x1x32xf32>
    tpu.vector_store %arg10[%c0_19, %c17_20, %c0_21], %14 {strides = array<i32>} : memref<18x18x32xf32, #tpu.memory_space<vmem>>, vector<18x1x32xf32>,
    %19 = vector.shape_cast %12 : vector<256x32xf32> to vector<16x16x32xf32>
    %c1 = arith.constant 1 : index
    %c1_22 = arith.constant 1 : index
    %c0_23 = arith.constant 0 : index
    %20 = vector.load %arg10[%c1, %c1_22, %c0_23] : memref<18x18x32xf32, #tpu.memory_space<vmem>>, vector<16x16x32xf32>
    tpu.vector_store %arg10[%c1, %c1_22, %c0_23], %19 {strides = array<i32>} : memref<18x18x32xf32, #tpu.memory_space<vmem>>, vector<16x16x32xf32>,
    %c0_24 = arith.constant 0 : index
    %c0_25 = arith.constant 0 : index
    %c0_26 = arith.constant 0 : index
    %21 = vector.load %arg10[%c0_24, %c0_25, %c0_26] : memref<18x18x32xf32, #tpu.memory_space<vmem>>, vector<16x16x32xf32>
    %c0_27 = arith.constant 0 : index
    %c1_28 = arith.constant 1 : index
    %c0_29 = arith.constant 0 : index
    %22 = vector.load %arg10[%c0_27, %c1_28, %c0_29] : memref<18x18x32xf32, #tpu.memory_space<vmem>>, vector<16x16x32xf32>
    %c0_30 = arith.constant 0 : index
    %c2 = arith.constant 2 : index
    %c0_31 = arith.constant 0 : index
    %23 = vector.load %arg10[%c0_30, %c2, %c0_31] : memref<18x18x32xf32, #tpu.memory_space<vmem>>, vector<16x16x32xf32>
    %c1_32 = arith.constant 1 : index
    %c0_33 = arith.constant 0 : index
    %c0_34 = arith.constant 0 : index
    %24 = vector.load %arg10[%c1_32, %c0_33, %c0_34] : memref<18x18x32xf32, #tpu.memory_space<vmem>>, vector<16x16x32xf32>
    %c1_35 = arith.constant 1 : index
    %c1_36 = arith.constant 1 : index
    %c0_37 = arith.constant 0 : index
    %25 = vector.load %arg10[%c1_35, %c1_36, %c0_37] : memref<18x18x32xf32, #tpu.memory_space<vmem>>, vector<16x16x32xf32>
    %c1_38 = arith.constant 1 : index
    %c2_39 = arith.constant 2 : index
    %c0_40 = arith.constant 0 : index
    %26 = vector.load %arg10[%c1_38, %c2_39, %c0_40] : memref<18x18x32xf32, #tpu.memory_space<vmem>>, vector<16x16x32xf32>
    %c2_41 = arith.constant 2 : index
    %c0_42 = arith.constant 0 : index
    %c0_43 = arith.constant 0 : index
    %27 = vector.load %arg10[%c2_41, %c0_42, %c0_43] : memref<18x18x32xf32, #tpu.memory_space<vmem>>, vector<16x16x32xf32>
    %c2_44 = arith.constant 2 : index
    %c1_45 = arith.constant 1 : index
    %c0_46 = arith.constant 0 : index
    %28 = vector.load %arg10[%c2_44, %c1_45, %c0_46] : memref<18x18x32xf32, #tpu.memory_space<vmem>>, vector<16x16x32xf32>
    %c2_47 = arith.constant 2 : index
    %c2_48 = arith.constant 2 : index
    %c0_49 = arith.constant 0 : index
    %29 = vector.load %arg10[%c2_47, %c2_48, %c0_49] : memref<18x18x32xf32, #tpu.memory_space<vmem>>, vector<16x16x32xf32>
    %30 = tpu.concatenate %21, %22, %23, %24, %25, %26, %27, %28, %29 in 2 : vector<16x16x32xf32>, vector<16x16x32xf32>, vector<16x16x32xf32>, vector<16x16x32xf32>, vector<16x16x32xf32>, vector<16x16x32xf32>, vector<16x16x32xf32>, vector<16x16x32xf32>, vector<16x16x32xf32> -> vector<16x16x288xf32>
    %31 = vector.shape_cast %30 : vector<16x16x288xf32> to vector<256x288xf32>
    %c0_50 = arith.constant 0 : index
    %c0_51 = arith.constant 0 : index
    %32 = vector.load %arg4[%c0_50, %c0_51] : memref<288x32xf32, #tpu.memory_space<vmem>>, vector<288x32xf32>
    %cst_52 = arith.constant dense<0.000000e+00> : vector<256x32xf32>
    %33 = tpu.matmul %31, %32, %cst_52 {dimension_numbers = #tpu.dot_dimension_numbers<[1], [0], [0], [1], [0, 0, 1, 1], [], []>} : vector<256x288xf32>, vector<288x32xf32>, vector<256x32xf32> -> vector<256x32xf32>
    %c0_53 = arith.constant 0 : index
    %c0_54 = arith.constant 0 : index
    %34 = vector.load %arg5[%c0_53, %c0_54] : memref<1x32xf32, #tpu.memory_space<vmem>>, vector<1x32xf32>
    %35 = vector.broadcast %34 : vector<1x32xf32> to vector<256x32xf32>
    %36 = arith.addf %33, %35 : vector<256x32xf32>
    %cst_55 = arith.constant 0.000000e+00 : f32
    %37 = vector.broadcast %cst_55 : f32 to vector<256x32xf32>
    %38 = arith.cmpf ogt, %36, %37 : vector<256x32xf32>
    %cst_56 = arith.constant 0.00999999977 : f32
    %39 = vector.broadcast %cst_56 : f32 to vector<256x32xf32>
    %40 = arith.mulf %39, %36 : vector<256x32xf32>
    %41 = arith.select %38, %36, %40 : vector<256x32xi1>, vector<256x32xf32>
    %c0_57 = arith.constant 0 : index
    %c0_58 = arith.constant 0 : index
    %42 = vector.load %arg6[%c0_57, %c0_58] : memref<32x128xf32, #tpu.memory_space<vmem>>, vector<32x128xf32>
    %cst_59 = arith.constant dense<0.000000e+00> : vector<256x128xf32>
    %43 = tpu.matmul %41, %42, %cst_59 {dimension_numbers = #tpu.dot_dimension_numbers<[1], [0], [0], [1], [0, 0, 1, 1], [], []>} : vector<256x32xf32>, vector<32x128xf32>, vector<256x128xf32> -> vector<256x128xf32>
    %c0_60 = arith.constant 0 : index
    %c0_61 = arith.constant 0 : index
    %44 = vector.load %arg7[%c0_60, %c0_61] : memref<1x128xf32, #tpu.memory_space<vmem>>, vector<1x128xf32>
    %45 = vector.broadcast %44 : vector<1x128xf32> to vector<256x128xf32>
    %46 = arith.addf %43, %45 : vector<256x128xf32>
    %47 = arith.addf %46, %2 : vector<256x128xf32>
    %48 = vector.shape_cast %47 : vector<256x128xf32> to vector<16x16x128xf32>
    %c0_62 = arith.constant 0 : index
    %c0_63 = arith.constant 0 : index
    %c0_64 = arith.constant 0 : index
    %c0_65 = arith.constant 0 : index
    %49 = vector.load %arg8[%c0_62, %c0_63, %c0_64, %c0_65] : memref<1x16x16x128xf32, #tpu.memory_space<vmem>>, vector<1x16x16x128xf32>
    %50 = vector.shape_cast %49 : vector<1x16x16x128xf32> to vector<16x16x128xf32>
    %51 = vector.shape_cast %48 : vector<16x16x128xf32> to vector<1x16x16x128xf32>
    tpu.vector_store %arg8[%c0_62, %c0_63, %c0_64, %c0_65], %51 {strides = array<i32>} : memref<1x16x16x128xf32, #tpu.memory_space<vmem>>, vector<1x16x16x128xf32>,
    %cst_66 = arith.constant dense<0.000000e+00> : vector<128xf32>
    %52 = vector.multi_reduction <add>, %47, %cst_66 [0] : vector<256x128xf32> to vector<128xf32>
    %53 = vector.shape_cast %52 : vector<128xf32> to vector<1x128xf32>
    %54 = arith.mulf %47, %47 : vector<256x128xf32>
    %cst_67 = arith.constant dense<0.000000e+00> : vector<128xf32>
    %55 = vector.multi_reduction <add>, %54, %cst_67 [0] : vector<256x128xf32> to vector<128xf32>
    %56 = vector.shape_cast %55 : vector<128xf32> to vector<1x128xf32>
    %57 = tpu.concatenate %53, %56 in 0 : vector<1x128xf32>, vector<1x128xf32> -> vector<2x128xf32>
    %c0_68 = arith.constant 0 : index
    %c0_69 = arith.constant 0 : index
    %c0_70 = arith.constant 0 : index
    %58 = vector.load %arg9[%c0_68, %c0_69, %c0_70] : memref<1x2x128xf32, #tpu.memory_space<vmem>>, vector<1x2x128xf32>
    %59 = vector.shape_cast %58 : vector<1x2x128xf32> to vector<2x128xf32>
    %60 = vector.shape_cast %57 : vector<2x128xf32> to vector<1x2x128xf32>
    tpu.vector_store %arg9[%c0_68, %c0_69, %c0_70], %60 {strides = array<i32>} : memref<1x2x128xf32, #tpu.memory_space<vmem>>, vector<1x2x128xf32>,
    return
  }
  func.func @transform_0(%arg0: i32) -> (i32, i32, i32, i32) {
    %c0_i32 = arith.constant 0 : i32
    %c0_i32_0 = arith.constant 0 : i32
    %c0_i32_1 = arith.constant 0 : i32
    %c0_i32_2 = arith.constant 0 : i32
    return %arg0, %c0_i32, %c0_i32_0, %c0_i32_1 : i32, i32, i32, i32
  }
  func.func @transform_1(%arg0: i32) -> (i32, i32) {
    %c0_i32 = arith.constant 0 : i32
    %c0_i32_0 = arith.constant 0 : i32
    %c0_i32_1 = arith.constant 0 : i32
    return %c0_i32, %c0_i32_0 : i32, i32
  }
  func.func @transform_2(%arg0: i32) -> (i32, i32) {
    %c0_i32 = arith.constant 0 : i32
    %c0_i32_0 = arith.constant 0 : i32
    %c0_i32_1 = arith.constant 0 : i32
    return %c0_i32, %c0_i32_0 : i32, i32
  }
  func.func @transform_3(%arg0: i32) -> (i32, i32) {
    %c0_i32 = arith.constant 0 : i32
    %c0_i32_0 = arith.constant 0 : i32
    %c0_i32_1 = arith.constant 0 : i32
    return %c0_i32, %c0_i32_0 : i32, i32
  }
  func.func @transform_4(%arg0: i32) -> (i32, i32) {
    %c0_i32 = arith.constant 0 : i32
    %c0_i32_0 = arith.constant 0 : i32
    %c0_i32_1 = arith.constant 0 : i32
    return %c0_i32, %c0_i32_0 : i32, i32
  }
  func.func @transform_5(%arg0: i32) -> (i32, i32) {
    %c0_i32 = arith.constant 0 : i32
    %c0_i32_0 = arith.constant 0 : i32
    %c0_i32_1 = arith.constant 0 : i32
    return %c0_i32, %c0_i32_0 : i32, i32
  }
  func.func @transform_6(%arg0: i32) -> (i32, i32) {
    %c0_i32 = arith.constant 0 : i32
    %c0_i32_0 = arith.constant 0 : i32
    %c0_i32_1 = arith.constant 0 : i32
    return %c0_i32, %c0_i32_0 : i32, i32
  }
  func.func @transform_7(%arg0: i32) -> (i32, i32, i32, i32) {
    %c0_i32 = arith.constant 0 : i32
    %c0_i32_0 = arith.constant 0 : i32
    %c0_i32_1 = arith.constant 0 : i32
    %c0_i32_2 = arith.constant 0 : i32
    return %arg0, %c0_i32, %c0_i32_0, %c0_i32_1 : i32, i32, i32, i32
  }
  func.func @transform_8(%arg0: i32) -> (i32, i32, i32) {
    %c0_i32 = arith.constant 0 : i32
    %c0_i32_0 = arith.constant 0 : i32
    %c0_i32_1 = arith.constant 0 : i32
    return %arg0, %c0_i32, %c0_i32_0 : i32, i32, i32
  }
}

module attributes {stable_mosaic.version = 11 : i64} {
  func.func @_bn_act_kernel(%arg0: i32, %arg1: memref<1x16x16x128xf32, #tpu.memory_space<vmem>>, %arg2: memref<1x128xf32, #tpu.memory_space<vmem>>, %arg3: memref<1x128xf32, #tpu.memory_space<vmem>>, %arg4: memref<1x16x16x128xf32, #tpu.memory_space<vmem>>) attributes {dimension_semantics = [#tpu.dimension_semantics<parallel>], iteration_bounds = array<i64: 2>, scalar_prefetch = 0 : i64, scratch_operands = 0 : i64, tpu.core_type = #tpu.core_type<tc>, window_params = [{transform_indices = @transform_0, window_bounds = array<i64: 1, 16, 16, 128>}, {pipeline_mode = #tpu.pipeline_mode<synchronous>, transform_indices = @transform_1, window_bounds = array<i64: 1, 128>}, {pipeline_mode = #tpu.pipeline_mode<synchronous>, transform_indices = @transform_2, window_bounds = array<i64: 1, 128>}, {transform_indices = @transform_3, window_bounds = array<i64: 1, 16, 16, 128>}]} {
    %c0 = arith.constant 0 : index
    %c0_0 = arith.constant 0 : index
    %0 = vector.load %arg2[%c0, %c0_0] : memref<1x128xf32, #tpu.memory_space<vmem>>, vector<1x128xf32>
    %1 = vector.shape_cast %0 : vector<1x128xf32> to vector<1x1x128xf32>
    %c0_1 = arith.constant 0 : index
    %c0_2 = arith.constant 0 : index
    %2 = vector.load %arg3[%c0_1, %c0_2] : memref<1x128xf32, #tpu.memory_space<vmem>>, vector<1x128xf32>
    %3 = vector.shape_cast %2 : vector<1x128xf32> to vector<1x1x128xf32>
    %c0_3 = arith.constant 0 : index
    %c0_4 = arith.constant 0 : index
    %c0_5 = arith.constant 0 : index
    %c0_6 = arith.constant 0 : index
    %4 = vector.load %arg1[%c0_3, %c0_4, %c0_5, %c0_6] : memref<1x16x16x128xf32, #tpu.memory_space<vmem>>, vector<1x16x16x128xf32>
    %5 = vector.shape_cast %4 : vector<1x16x16x128xf32> to vector<16x16x128xf32>
    %6 = vector.broadcast %1 : vector<1x1x128xf32> to vector<16x16x128xf32>
    %7 = arith.mulf %5, %6 : vector<16x16x128xf32>
    %8 = vector.broadcast %3 : vector<1x1x128xf32> to vector<16x16x128xf32>
    %9 = arith.addf %7, %8 : vector<16x16x128xf32>
    %cst = arith.constant 0.000000e+00 : f32
    %10 = vector.broadcast %cst : f32 to vector<16x16x128xf32>
    %11 = arith.cmpf ogt, %9, %10 : vector<16x16x128xf32>
    %cst_7 = arith.constant 0.00999999977 : f32
    %12 = vector.broadcast %cst_7 : f32 to vector<16x16x128xf32>
    %13 = arith.mulf %12, %9 : vector<16x16x128xf32>
    %14 = arith.select %11, %9, %13 : vector<16x16x128xi1>, vector<16x16x128xf32>
    %c0_8 = arith.constant 0 : index
    %c0_9 = arith.constant 0 : index
    %c0_10 = arith.constant 0 : index
    %c0_11 = arith.constant 0 : index
    %15 = vector.load %arg4[%c0_8, %c0_9, %c0_10, %c0_11] : memref<1x16x16x128xf32, #tpu.memory_space<vmem>>, vector<1x16x16x128xf32>
    %16 = vector.shape_cast %15 : vector<1x16x16x128xf32> to vector<16x16x128xf32>
    %17 = vector.shape_cast %14 : vector<16x16x128xf32> to vector<1x16x16x128xf32>
    tpu.vector_store %arg4[%c0_8, %c0_9, %c0_10, %c0_11], %17 {strides = array<i32>} : memref<1x16x16x128xf32, #tpu.memory_space<vmem>>, vector<1x16x16x128xf32>,
    return
  }
  func.func @transform_0(%arg0: i32) -> (i32, i32, i32, i32) {
    %c0_i32 = arith.constant 0 : i32
    %c0_i32_0 = arith.constant 0 : i32
    %c0_i32_1 = arith.constant 0 : i32
    %c0_i32_2 = arith.constant 0 : i32
    return %arg0, %c0_i32, %c0_i32_0, %c0_i32_1 : i32, i32, i32, i32
  }
  func.func @transform_1(%arg0: i32) -> (i32, i32) {
    %c0_i32 = arith.constant 0 : i32
    %c0_i32_0 = arith.constant 0 : i32
    %c0_i32_1 = arith.constant 0 : i32
    return %c0_i32, %c0_i32_0 : i32, i32
  }
  func.func @transform_2(%arg0: i32) -> (i32, i32) {
    %c0_i32 = arith.constant 0 : i32
    %c0_i32_0 = arith.constant 0 : i32
    %c0_i32_1 = arith.constant 0 : i32
    return %c0_i32, %c0_i32_0 : i32, i32
  }
  func.func @transform_3(%arg0: i32) -> (i32, i32, i32, i32) {
    %c0_i32 = arith.constant 0 : i32
    %c0_i32_0 = arith.constant 0 : i32
    %c0_i32_1 = arith.constant 0 : i32
    %c0_i32_2 = arith.constant 0 : i32
    return %arg0, %c0_i32, %c0_i32_0, %c0_i32_1 : i32, i32, i32, i32
  }
}

</mosaic_0001>

<bundles_post_ra>
// kernel: resblock_forward.3
= control target key start
LH: loop header
LB: loop body
LE: loop exit
PB: predicated region body
PF: predicated region fallthrough
CT: control target
= control target key end

     0   :  { %8 = vsyncpa [#allocation3], 0  ;;  %s1018_s0 = inlined_call_operand.hbm [shape: f32[2,16,16,128], index: 0, kind: input, shape index: {}, may-alias: {0,3}]   ;;  %s1019_s1 = inlined_call_operand.vmem [shape: f32[1,128], index: 1, kind: input, shape index: {}]   ;;  %s1020_s2 = inlined_call_operand.vmem [shape: f32[1,128], index: 2, kind: input, shape index: {}]   ;;  %s1021_s3 = inlined_call_operand.hbm [shape: f32[2,16,16,128], index: 3, kind: output, shape index: {}, may-alias: {0,3}]  }
   0x1   :  { %10 = vsyncpa [#allocation3 + $0x1], 0 }
   0x2   :  { %11 = vsyncpa [#allocation4], 0 }
   0x3   :  { %13 = vsyncpa [#allocation4 + $0x1], 0  ;;  %s706_s12 = smov 0   ;;  %s708_s13 = smov 0  }
   0x4   :  { %s710_s14 = smov 0   ;;  %s712_s15 = smov 0  }
   0x5 LB: > { %s727_s16 = sadd.s32 4294967295, %s678_s15   ;;  %s514_s17 = sadd.s32 4294967294, %s678_s15   ;;  %s678_s15 = sphi %s712_s15, %s1034_s15   ;;  %s674_s14 = sphi %s710_s14, %s1033_s14   ;;  %s670_s13 = sphi %s708_s13, %s1032_s13   ;;  %s666_s12 = sphi %s706_s12, %s1031_s12  }
   0x6   : > { %s731_s18 = sadd.s32 1, %s678_s15   ;;  %s26_s19 = sadd.s32 1, %s674_s14 }
   0x7   : > { %s23_s20 = ssub.s32 %s678_s15, %s731_s18  ;;  %p33_p0 = scmp.ne.s32.totalorder %s674_s14, %s670_s13 }
   0x8   : > { %p24_p1 = scmp.eq.s32.totalorder %s23_s20, 0  ;;  %p34_p2 = scmp.eq.s32.totalorder %s678_s15, 0 }
   0x9   : > { %p39_p3 = scmp.ne.s32.totalorder %s670_s13, %s666_s12  ;;  %p40_p4 = scmp.eq.s32.totalorder %s727_s16, 0 }
   0xa   : > { %s743_s21 = scalar_select %p24_p1, %s674_s14, %s26_s19  }
   0xb   : > { %p745_p5 = por %p34_p2, %p33_p0  ;;  %p749_p6 = por %p40_p4, %p39_p3 }
   0xc   : > { %p105_p7 = scmp.eq.s32.totalorder %s727_s16, 1  ;;  %p111_p8 = scmp.eq.s32.totalorder %s514_s17, 1 }
   0xd   : > { %p544_p10 = scmp.lt.s32.totalorder %s678_s15, 2  ;;  %s137_s26 = sand.u32 1, %s674_s14  }
   0xe   : > { %p756_p11 = por %p105_p7, %p33_p0  ;;  %p760_p12 = por %p111_p8, %p39_p3 }
   0xf   : > { %s530_s27 = sshll.u32 %s678_s15, 12  ;;  %s517_s28 = sshll.u32 %s137_s26, 8 }
  0x10   : > { %s1025_s24 = scalar_select %p756_p11, 1, 0 }
  0x11   : > { %s1026_s25 = scalar_select %p760_p12, 1, 0 }
  0x12   : > { %s769_s4 = scalar_lea.hbm %s1018_s0, %s530_s27  ;;  %s141_s5 = scalar_lea.vmem [#allocation2], %s517_s28 }
  0x13   : > { %s148_s6 = sshll.u32 %s141_s5, 4  ;;  %p773_p13 = pnand %p544_p10, %p745_p5  ;;  %s777_s6 = int_to_ptr.vmem [resolvable:$true] %s148_s6 }
  0x14   : > { %s779_s8 = scalar_lea.sflag [#allocation3], %s137_s26  ;;  %s582_s9 = scalar_lea.hbm %s769_s4, 4096 }
  0x15   : > { %p583_p0 = scmp.ne.s32.totalorder %s769_s4, %s582_s9  ;;  %p584_p1 = pneg %p773_p13 }
  0x16   : > { %s587_s17 = scalar_lea.hbm %s1018_s0, 8192  ;;  %p588_p4 = scmp.lt.u32.totalorder %s769_s4, %s1018_s0 }
  0x17   : > { %p585_p2 = pnand %p584_p1, %p583_p0  ;;  %p589_p5 = scmp.lt.u32.totalorder %s587_s17, %s582_s9 }
  0x18   : > { %p591_p8 = scmp.lt.u32.totalorder %s582_s9, %s769_s4 }
  0x19   : > { %p586_p3 = pneg %p585_p2  ;;  %p590_p7 = por %p589_p5, %p588_p4 }
  0x1b   : > { %p592_p10 = por %p591_p8, %p590_p7 }
  0x1d   : > { %p593_p9 = pnand %p592_p10, %p586_p3 }
  0x1f   : > { %596 = shalt.err (!%p593_p9)
}
  0x20   : > { %s597_s22 = scalar_lea.vmem %s777_s6, 4096  ;;  %s680_s26 = smov [#allocation2]  }
  0x21   : > { %p598_p0 = scmp.ne.s32.totalorder %s777_s6, %s597_s22  ;;  %s602_s27 = sshll.u32 %s680_s26, 4  ;;  %s603_s27 = int_to_ptr.vmem [resolvable:$false] %s602_s27 }
  0x22   : > { %s604_s28 = scalar_lea.vmem %s603_s27, 8192  ;;  %p605_p11 = scmp.lt.s32.totalorder %s777_s6, %s603_s27 }
  0x23   : > { %p600_p2 = pnand %p598_p0, %p584_p1  ;;  %p606_p4 = scmp.lt.s32.totalorder %s604_s28, %s597_s22 }
  0x25   : > { %p601_p12 = pneg %p600_p2  ;;  %p607_p5 = por %p606_p4, %p605_p11 }
  0x27   : > { %p608_p7 = pnand %p607_p5, %p601_p12 }
  0x29   : > { %611 = shalt.err (!%p608_p7)
}
  0x2a   : > { %s681_s29 = smov 128   ;;  %s682_s30 = smov 8  }
  0x2b   : > { %539 = dma.hbm_to_vmem [thread:$0]  (!%p773_p13), %s769_s4, 4096, %s777_s6, %s779_s8, %s681_s29, %s681_s29, %s682_s30  }
  0x2c   : > { %p520_p9 = scmp.ge.s32.totalorder %s678_s15, 1  ;;  %p156_p1 = scmp.lt.s32.totalorder %s678_s15, 3 }
  0x2e   : > { %p157_p3 = pnand %p520_p9, %p156_p1 }
  0x2f   : > { %s810_s5 = sand.u32 (!%p157_p3), 1, %s670_s13  }
  0x30   : > { %160 = sbr.rel (%p157_p3) target bundleno = 117 (0x75), region = 32  ;;  %s521_s9 = sshll.u32 (!%p157_p3), %s810_s5, 8 }
  0x31   : > { %s163_s10 = scalar_lea.sflag (!%p157_p3), [#allocation3], %s810_s5  ;;  %s816_s11 = scalar_lea.vmem (!%p157_p3), [#allocation2], %s521_s9 }
  0x37   : > { %657 = dma.done.wait (%p749_p6), %s163_s10, 4096  }
  0x38   : > { %659 = vsyncadd (%p749_p6), %s163_s10, 4294963200  ;;  %v825_v0 = vld [vmem:[%s1019_s1] ss:$0 sm:$0xff]  ;;  %v192_v4 = vld [vmem:[%s816_s11 + $0x8] sm:$0xff]  ;;  %s859_s23 = scalar_lea.vmem [#allocation5], %s521_s9  ;;  %s531_s17 = sshll.u32 %s727_s16, 12 }
  0x39   : > { %v830_v1 = vld [vmem:[%s1020_s2] ss:$0 sm:$0xff]  ;;  %v193_v5 = vld [vmem:[%s816_s11 + $0x10] sm:$0xff]  ;;  %v194_v6 = vld [vmem:[%s816_s11 + $0x18] sm:$0xff]  ;;  %v230_v7 = vmul.f32 %v825_v0, %v192_v4  ;;  %s441_s19 = sshll.u32 %s859_s23, 4  ;;  %s970_s26 = scalar_lea.hbm %s1021_s3, %s531_s17  ;;  %s972_s19 = int_to_ptr.vmem [resolvable:$true] %s441_s19 }
  0x3a   : > { %v191_v2 = vld [vmem:[%s816_s11] sm:$0xff]  ;;  %v231_v8 = vmul.f32 %v825_v0, %v193_v5  ;;  %v232_v9 = vmul.f32 %v825_v0, %v194_v6  ;;  %v196_v11 = vld [vmem:[%s816_s11 + $0x28] sm:$0xff]  ;;  %v197_v12 = vld [vmem:[%s816_s11 + $0x30] sm:$0xff]  ;;  %s428_s16 = scalar_lea.sflag [#allocation4], %s810_s5  ;;  %s612_s27 = scalar_lea.vmem %s972_s19, 4096 }
  0x3b   : > { %v229_v3 = vmul.f32 %v825_v0, %v191_v2  ;;  %v195_v10 = vld [vmem:[%s816_s11 + $0x20] sm:$0xff]  ;;  %v234_v15 = vmul.f32 %v825_v0, %v196_v11  ;;  %v235_v16 = vmul.f32 %v825_v0, %v197_v12  ;;  %v198_v17 = vld [vmem:[%s816_s11 + $0x38] sm:$0xff]  ;;  %v268_v18 = vadd.f32 %v830_v1, %v230_v7  ;;  %v200_v30 = vld [vmem:[%s816_s11 + $0x48] sm:$0xff]  ;;  %p613_p6 = scmp.ne.s32.totalorder %s972_s19, %s612_s27  ;;  %p1028_p11 = scmp.ne.s32.totalorder %s1025_s24, 0 }
  0x3c   : > { %v233_v14 = vmul.f32 %v825_v0, %v195_v10  ;;  %v269_v19 = vadd.f32 %v830_v1, %v231_v8  ;;  %v270_v20 = vadd.f32 %v830_v1, %v232_v9  ;;  %v236_v21 = vmul.f32 %v825_v0, %v198_v17  ;;  %v199_v25 = vld [vmem:[%s816_s11 + $0x40] sm:$0xff]  ;;  %v201_v31 = vld [vmem:[%s816_s11 + $0x50] sm:$0xff]  ;;  %v202_v43 = vld [vmem:[%s816_s11 + $0x58] sm:$0xff]  ;;  %s683_s28 = smov [#allocation5]  }
  0x3d   : > { %v267_v13 = vadd.f32 %v830_v1, %v229_v3  ;;  %v272_v24 = vadd.f32 %v830_v1, %v234_v15  ;;  %vm300_vm1 = vcmp.gt.f32.partialorder %v268_v18, 0.0  ;;  %v332_v26 = vmul.f32 0.01, %v268_v18  ;;  %v203_v44 = vld [vmem:[%s816_s11 + $0x60] sm:$0xff]  ;;  %v204_v45 = vld [vmem:[%s816_s11 + $0x68] sm:$0xff]  ;;  %v205_v56 = vld [vmem:[%s816_s11 + $0x70] sm:$0xff]  ;;  %p614_p12 = pnand %p613_p6, %p1028_p11 }
  0x3e   : > { %v271_v23 = vadd.f32 %v830_v1, %v233_v14  ;;  %vm301_vm2 = vcmp.gt.f32.partialorder %v269_v19, 0.0  ;;  %v333_v27 = vmul.f32 0.01, %v269_v19  ;;  %vm302_vm3 = vcmp.gt.f32.partialorder %v270_v20, 0.0  ;;  %v206_v4 = vld [vmem:[%s816_s11 + $0x78] sm:$0xff]  ;;  %v207_v5 = vld [vmem:[%s816_s11 + $0x80] sm:$0xff] }
  0x3f   : > { %vm299_vm0 = vcmp.gt.f32.partialorder %v267_v13, 0.0  ;;  %v331_v22 = vmul.f32 0.01, %v267_v13  ;;  %v334_v29 = vmul.f32 0.01, %v270_v20  ;;  %v364_v32 = vsel %vm300_vm1, %v268_v18, %v332_v26  ;;  %v208_v9 = vld [vmem:[%s816_s11 + $0x88] sm:$0xff]  ;;  %p615_p13 = pneg %p614_p12 }
  0x40   : > { %vm303_vm4 = vcmp.gt.f32.partialorder %v271_v23, 0.0  ;;  %v365_v33 = vsel %vm301_vm2, %v269_v19, %v333_v27  ;;  %v335_v34 = vmul.f32 0.01, %v271_v23  ;;  %vm304_vm5 = vcmp.gt.f32.partialorder %v272_v24, 0.0  ;;  %396 = vst [vmem:[%s859_s23 + $0x8] sm:$0xff] %v364_v32  ;;  %v209_v10 = vld [vmem:[%s816_s11 + $0x90] sm:$0xff] }
  0x41   : > { %v363_v28 = vsel %vm299_vm0, %v267_v13, %v331_v22  ;;  %397 = vst [vmem:[%s859_s23 + $0x10] sm:$0xff] %v365_v33  ;;  %v366_v35 = vsel %vm302_vm3, %v270_v20, %v334_v29  ;;  %v336_v36 = vmul.f32 0.01, %v272_v24  ;;  %v273_v37 = vadd.f32 %v830_v1, %v235_v16  ;;  %v210_v17 = vld [vmem:[%s816_s11 + $0x98] sm:$0xff]  ;;  %v211_v18 = vld [vmem:[%s816_s11 + $0xa0] sm:$0xff]  ;;  %v212_v32 = vld [vmem:[%s816_s11 + $0xa8] sm:$0xff] }
  0x42   : > { %395 = vst [vmem:[%s859_s23] sm:$0xff] %v363_v28  ;;  %v274_v38 = vadd.f32 %v830_v1, %v236_v21  ;;  %398 = vst [vmem:[%s859_s23 + $0x18] sm:$0xff] %v366_v35  ;;  %v367_v39 = vsel %vm303_vm4, %v271_v23, %v335_v34  ;;  %v237_v40 = vmul.f32 %v825_v0, %v199_v25  ;;  %v213_v33 = vld [vmem:[%s816_s11 + $0xb0] sm:$0xff]  ;;  %s616_s29 = sshll.u32 %s683_s28, 4  ;;  %s617_s29 = int_to_ptr.vmem [resolvable:$false] %s616_s29 }
  0x43   : > { %v238_v41 = vmul.f32 %v825_v0, %v200_v30  ;;  %v239_v42 = vmul.f32 %v825_v0, %v201_v31  ;;  %399 = vst [vmem:[%s859_s23 + $0x20] sm:$0xff] %v367_v39  ;;  %v368_v46 = vsel %vm304_vm5, %v272_v24, %v336_v36  ;;  %vm305_vm6 = vcmp.gt.f32.partialorder %v273_v37, 0.0  ;;  %s618_s30 = scalar_lea.vmem %s617_s29, 8192  ;;  %p619_p8 = scmp.lt.s32.totalorder %s972_s19, %s617_s29 }
  0x44   : > { %v337_v47 = vmul.f32 0.01, %v273_v37  ;;  %vm306_vm7 = vcmp.gt.f32.partialorder %v274_v38, 0.0  ;;  %400 = vst [vmem:[%s859_s23 + $0x28] sm:$0xff] %v368_v46  ;;  %v338_v48 = vmul.f32 0.01, %v274_v38  ;;  %v275_v49 = vadd.f32 %v830_v1, %v237_v40  ;;  %p620_p10 = scmp.lt.s32.totalorder %s618_s30, %s612_s27 }
  0x45   : > { %v276_v50 = vadd.f32 %v830_v1, %v238_v41  ;;  %v277_v51 = vadd.f32 %v830_v1, %v239_v42  ;;  %v240_v53 = vmul.f32 %v825_v0, %v202_v43  ;;  %v241_v54 = vmul.f32 %v825_v0, %v203_v44  ;;  %v214_v40 = vld [vmem:[%s816_s11 + $0xb8] sm:$0xff]  ;;  %v216_v46 = vld [vmem:[%s816_s11 + $0xc8] sm:$0xff] }
  0x46   : > { %v369_v52 = vsel %vm305_vm6, %v273_v37, %v337_v47  ;;  %v242_v55 = vmul.f32 %v825_v0, %v204_v45  ;;  %v370_v57 = vsel %vm306_vm7, %v274_v38, %v338_v48  ;;  %vm307_vm8 = vcmp.gt.f32.partialorder %v275_v49, 0.0  ;;  %v215_v45 = vld [vmem:[%s816_s11 + $0xc0] sm:$0xff]  ;;  %v217_v47 = vld [vmem:[%s816_s11 + $0xd0] sm:$0xff]  ;;  %p621_p0 = por %p620_p10, %p619_p8 }
  0x47   : > { %401 = vst [vmem:[%s859_s23 + $0x30] sm:$0xff] %v369_v52  ;;  %v339_v58 = vmul.f32 0.01, %v275_v49  ;;  %vm308_vm9 = vcmp.gt.f32.partialorder %v276_v50, 0.0  ;;  %402 = vst [vmem:[%s859_s23 + $0x38] sm:$0xff] %v370_v57  ;;  %vm309_vm10 = vcmp.gt.f32.partialorder %v277_v51, 0.0  ;;  %v278_v61 = vadd.f32 %v830_v1, %v240_v53 }
  0x48   : > { %v340_v59 = vmul.f32 0.01, %v276_v50  ;;  %v341_v60 = vmul.f32 0.01, %v277_v51  ;;  %v279_v63 = vadd.f32 %v830_v1, %v241_v54  ;;  %v280_v2 = vadd.f32 %v830_v1, %v242_v55  ;;  %p622_p2 = pnand %p621_p0, %p615_p13 }
  0x49   : > { %v371_v62 = vsel %vm307_vm8, %v275_v49, %v339_v58  ;;  %v243_v3 = vmul.f32 %v825_v0, %v205_v56  ;;  %vm310_vm11 = vcmp.gt.f32.partialorder %v278_v61, 0.0  ;;  %v342_v8 = vmul.f32 0.01, %v278_v61  ;;  %v218_v58 = vld [vmem:[%s816_s11 + $0xd8] sm:$0xff] }
  0x4a   : > { %403 = vst [vmem:[%s859_s23 + $0x40] sm:$0xff] %v371_v62  ;;  %v372_v6 = vsel %vm308_vm9, %v276_v50, %v340_v59  ;;  %v373_v7 = vsel %vm309_vm10, %v277_v51, %v341_v60  ;;  %vm311_vm12 = vcmp.gt.f32.partialorder %v279_v63, 0.0  ;;  %v343_v11 = vmul.f32 0.01, %v279_v63  ;;  %v219_v59 = vld [vmem:[%s816_s11 + $0xe0] sm:$0xff] }
  0x4b   : > { %404 = vst [vmem:[%s859_s23 + $0x48] sm:$0xff] %v372_v6  ;;  %405 = vst [vmem:[%s859_s23 + $0x50] sm:$0xff] %v373_v7  ;;  %vm312_vm13 = vcmp.gt.f32.partialorder %v280_v2, 0.0  ;;  %v344_v12 = vmul.f32 0.01, %v280_v2  ;;  %v374_v13 = vsel %vm310_vm11, %v278_v61, %v342_v8  ;;  %v281_v14 = vadd.f32 %v830_v1, %v243_v3 }
  0x4c   : > { %v244_v15 = vmul.f32 %v825_v0, %v206_v4  ;;  %v245_v16 = vmul.f32 %v825_v0, %v207_v5  ;;  %406 = vst [vmem:[%s859_s23 + $0x58] sm:$0xff] %v374_v13  ;;  %v375_v19 = vsel %vm311_vm12, %v279_v63, %v343_v11  ;;  %v246_v21 = vmul.f32 %v825_v0, %v208_v9  ;;  %v221_v11 = vld [vmem:[%s816_s11 + $0xf0] sm:$0xff] }
  0x4d   : > { %v376_v20 = vsel %vm312_vm13, %v280_v2, %v344_v12  ;;  %v247_v22 = vmul.f32 %v825_v0, %v209_v10  ;;  %407 = vst [vmem:[%s859_s23 + $0x60] sm:$0xff] %v375_v19  ;;  %vm313_vm14 = vcmp.gt.f32.partialorder %v281_v14, 0.0  ;;  %v345_v23 = vmul.f32 0.01, %v281_v14  ;;  %v220_v10 = vld [vmem:[%s816_s11 + $0xe8] sm:$0xff] }
  0x4e   : > { %408 = vst [vmem:[%s859_s23 + $0x68] sm:$0xff] %v376_v20  ;;  %v282_v24 = vadd.f32 %v830_v1, %v244_v15  ;;  %v283_v25 = vadd.f32 %v830_v1, %v245_v16  ;;  %v284_v26 = vadd.f32 %v830_v1, %v246_v21  ;;  %v248_v28 = vmul.f32 %v825_v0, %v210_v17 }
  0x4f   : > { %v285_v27 = vadd.f32 %v830_v1, %v247_v22  ;;  %v249_v29 = vmul.f32 %v825_v0, %v211_v18  ;;  %v377_v30 = vsel %vm313_vm14, %v281_v14, %v345_v23  ;;  %v250_v43 = vmul.f32 %v825_v0, %v212_v32  ;;  %v222_v18 = vld [vmem:[%s816_s11 + $0xf8] sm:$0xff] }
  0x50   : > { %vm314_vm15 = vcmp.gt.f32.partialorder %v282_v24, 0.0  ;;  %v346_v31 = vmul.f32 0.01, %v282_v24  ;;  %vm315_vm0 = vcmp.gt.f32.partialorder %v283_v25, 0.0  ;;  %409 = vst [vmem:[%s859_s23 + $0x70] sm:$0xff] %v377_v30  ;;  %vm316_vm1 = vcmp.gt.f32.partialorder %v284_v26, 0.0 }
  0x51   : > { %v347_v34 = vmul.f32 0.01, %v283_v25  ;;  %v348_v35 = vmul.f32 0.01, %v284_v26  ;;  %vm317_vm2 = vcmp.gt.f32.partialorder %v285_v27, 0.0  ;;  %v286_v38 = vadd.f32 %v830_v1, %v248_v28 }
  0x52   : > { %v378_v36 = vsel %vm314_vm15, %v282_v24, %v346_v31  ;;  %v349_v37 = vmul.f32 0.01, %v285_v27  ;;  %v287_v39 = vadd.f32 %v830_v1, %v249_v29  ;;  %v251_v44 = vmul.f32 %v825_v0, %v213_v33 }
  0x53   : > { %410 = vst [vmem:[%s859_s23 + $0x78] sm:$0xff] %v378_v36  ;;  %v379_v41 = vsel %vm315_vm0, %v283_v25, %v347_v34  ;;  %v380_v42 = vsel %vm316_vm1, %v284_v26, %v348_v35  ;;  %vm318_vm3 = vcmp.gt.f32.partialorder %v286_v38, 0.0  ;;  %v350_v49 = vmul.f32 0.01, %v286_v38 }
  0x54   : > { %411 = vst [vmem:[%s859_s23 + $0x80] sm:$0xff] %v379_v41  ;;  %412 = vst [vmem:[%s859_s23 + $0x88] sm:$0xff] %v380_v42  ;;  %v381_v48 = vsel %vm317_vm2, %v285_v27, %v349_v37  ;;  %vm319_vm4 = vcmp.gt.f32.partialorder %v287_v39, 0.0  ;;  %v351_v50 = vmul.f32 0.01, %v287_v39  ;;  %v288_v51 = vadd.f32 %v830_v1, %v250_v43 }
  0x55   : > { %413 = vst [vmem:[%s859_s23 + $0x90] sm:$0xff] %v381_v48  ;;  %v289_v52 = vadd.f32 %v830_v1, %v251_v44  ;;  %v252_v53 = vmul.f32 %v825_v0, %v214_v40  ;;  %v382_v54 = vsel %vm318_vm3, %v286_v38, %v350_v49  ;;  %v253_v55 = vmul.f32 %v825_v0, %v215_v45 }
  0x56   : > { %v254_v56 = vmul.f32 %v825_v0, %v216_v46  ;;  %v255_v57 = vmul.f32 %v825_v0, %v217_v47  ;;  %414 = vst [vmem:[%s859_s23 + $0x98] sm:$0xff] %v382_v54  ;;  %v383_v60 = vsel %vm319_vm4, %v287_v39, %v351_v50  ;;  %vm320_vm5 = vcmp.gt.f32.partialorder %v288_v51, 0.0 }
  0x57   : > { %v352_v61 = vmul.f32 0.01, %v288_v51  ;;  %vm321_vm6 = vcmp.gt.f32.partialorder %v289_v52, 0.0  ;;  %415 = vst [vmem:[%s859_s23 + $0xa0] sm:$0xff] %v383_v60  ;;  %v353_v62 = vmul.f32 0.01, %v289_v52  ;;  %v290_v63 = vadd.f32 %v830_v1, %v252_v53 }
  0x58   : > { %v291_v2 = vadd.f32 %v830_v1, %v253_v55  ;;  %v292_v3 = vadd.f32 %v830_v1, %v254_v56  ;;  %v293_v5 = vadd.f32 %v830_v1, %v255_v57  ;;  %v256_v6 = vmul.f32 %v825_v0, %v218_v58 }
  0x59   : > { %v384_v4 = vsel %vm320_vm5, %v288_v51, %v352_v61  ;;  %v257_v7 = vmul.f32 %v825_v0, %v219_v59  ;;  %v385_v8 = vsel %vm321_vm6, %v289_v52, %v353_v62  ;;  %vm322_vm7 = vcmp.gt.f32.partialorder %v290_v63, 0.0 }
  0x5a   : > { %416 = vst [vmem:[%s859_s23 + $0xa8] sm:$0xff] %v384_v4  ;;  %v354_v9 = vmul.f32 0.01, %v290_v63  ;;  %vm323_vm8 = vcmp.gt.f32.partialorder %v291_v2, 0.0  ;;  %417 = vst [vmem:[%s859_s23 + $0xb0] sm:$0xff] %v385_v8  ;;  %vm324_vm9 = vcmp.gt.f32.partialorder %v292_v3, 0.0  ;;  %v294_v16 = vadd.f32 %v830_v1, %v256_v6 }
  0x5b   : > { %v355_v12 = vmul.f32 0.01, %v291_v2  ;;  %v356_v13 = vmul.f32 0.01, %v292_v3  ;;  %vm325_vm10 = vcmp.gt.f32.partialorder %v293_v5, 0.0  ;;  %v295_v17 = vadd.f32 %v830_v1, %v257_v7 }
  0x5c   : > { %v386_v14 = vsel %vm322_vm7, %v290_v63, %v354_v9  ;;  %v357_v15 = vmul.f32 0.01, %v293_v5  ;;  %v258_v21 = vmul.f32 %v825_v0, %v220_v10  ;;  %v259_v22 = vmul.f32 %v825_v0, %v221_v11 }
  0x5d   : > { %418 = vst [vmem:[%s859_s23 + $0xb8] sm:$0xff] %v386_v14  ;;  %v387_v19 = vsel %vm323_vm8, %v291_v2, %v355_v12  ;;  %v388_v20 = vsel %vm324_vm9, %v292_v3, %v356_v13  ;;  %vm326_vm11 = vcmp.gt.f32.partialorder %v294_v16, 0.0  ;;  %v358_v24 = vmul.f32 0.01, %v294_v16 }
  0x5e   : > { %419 = vst [vmem:[%s859_s23 + $0xc0] sm:$0xff] %v387_v19  ;;  %420 = vst [vmem:[%s859_s23 + $0xc8] sm:$0xff] %v388_v20  ;;  %v389_v23 = vsel %vm325_vm10, %v293_v5, %v357_v15  ;;  %vm327_vm12 = vcmp.gt.f32.partialorder %v295_v17, 0.0  ;;  %v359_v25 = vmul.f32 0.01, %v295_v17  ;;  %v296_v26 = vadd.f32 %v830_v1, %v258_v21 }
  0x5f   : > { %421 = vst [vmem:[%s859_s23 + $0xd0] sm:$0xff] %v389_v23  ;;  %v297_v27 = vadd.f32 %v830_v1, %v259_v22  ;;  %v260_v28 = vmul.f32 %v825_v0, %v222_v18  ;;  %v390_v29 = vsel %vm326_vm11, %v294_v16, %v358_v24 }
  0x60   : > { %422 = vst [vmem:[%s859_s23 + $0xd8] sm:$0xff] %v390_v29  ;;  %v391_v30 = vsel %vm327_vm12, %v295_v17, %v359_v25  ;;  %vm328_vm13 = vcmp.gt.f32.partialorder %v296_v26, 0.0  ;;  %v360_v31 = vmul.f32 0.01, %v296_v26 }
  0x61   : > { %vm329_vm14 = vcmp.gt.f32.partialorder %v297_v27, 0.0  ;;  %423 = vst [vmem:[%s859_s23 + $0xe0] sm:$0xff] %v391_v30  ;;  %v361_v32 = vmul.f32 0.01, %v297_v27  ;;  %v298_v33 = vadd.f32 %v830_v1, %v260_v28 }
  0x62   : > { %v392_v34 = vsel %vm328_vm13, %v296_v26, %v360_v31 }
  0x63   : > { %424 = vst [vmem:[%s859_s23 + $0xe8] sm:$0xff] %v392_v34  ;;  %v393_v35 = vsel %vm329_vm14, %v297_v27, %v361_v32  ;;  %vm330_vm15 = vcmp.gt.f32.partialorder %v298_v33, 0.0  ;;  %v362_v0 = vmul.f32 0.01, %v298_v33 }
  0x64   : > { %425 = vst [vmem:[%s859_s23 + $0xf0] sm:$0xff] %v393_v35 }
  0x65   : > { %v394_v36 = vsel %vm330_vm15, %v298_v33, %v362_v0 }
  0x66   : > { %426 = vst [vmem:[%s859_s23 + $0xf8] sm:$0xff] %v394_v36 }
  0x67   : > { %625 = shalt.err (!%p622_p2)
}
  0x68   : > { %s626_s9 = scalar_lea.hbm %s970_s26, 4096  ;;  %s630_s4 = scalar_lea.hbm %s1021_s3, 8192 }
  0x69   : > { %p627_p4 = scmp.ne.s32.totalorder %s970_s26, %s626_s9  ;;  %p631_p9 = scmp.lt.u32.totalorder %s970_s26, %s1021_s3 }
  0x6a   : > { %p632_p1 = scmp.lt.u32.totalorder %s630_s4, %s626_s9  ;;  %p634_p6 = scmp.lt.u32.totalorder %s626_s9, %s970_s26 }
  0x6b   : > { %p628_p5 = pnand %p627_p4, %p1028_p11 }
  0x6c   : > { %p633_p3 = por %p632_p1, %p631_p9 }
  0x6d   : > { %p629_p7 = pneg %p628_p5 }
  0x6e   : > { %p635_p12 = por %p634_p6, %p633_p3 }
  0x70   : > { %p636_p13 = pnand %p635_p12, %p629_p7 }
  0x72   : > { %639 = shalt.err (!%p636_p13)
}
  0x73   : > { %s684_s8 = smov 128   ;;  %s685_s23 = smov 8  }
  0x74   : > { %534 = dma.vmem_to_hbm [thread:$0]  (%p1028_p11), %s972_s19, 4096, %s970_s26, %s428_s16, %s684_s8, %s684_s8, %s685_s23  }
  0x75 PF: > { %s456_s17 = sand.u32 1, %s666_s12   ;;  %p1029_p8 = scmp.ne.s32.totalorder %s1026_s25, 0 }
  0x76   : > { %p1030_p10 = scmp.ge.s32.totalorder %s678_s15, 2  ;;  %s457_s20 = scalar_lea.sflag [#allocation4], %s456_s17 }
  0x78   : > { %p541_p0 = pnand %p1030_p10, %p1029_p8 }
  0x7a   : > { %661 = dma.done.wait (!%p541_p0), %s457_s20, 4096  }
  0x7b   : > { %663 = vsyncadd (!%p541_p0), %s457_s20, 4294963200  ;;  %p16_p2 = scmp.ge.s32.totalorder %s731_s18, 4   ;;  %s1031_s12 = smov %s670_s13 }
  0x7c   : > { %s1032_s13 = smov %s674_s14  ;;  %s1033_s14 = smov %s743_s21 }
  0x7d   : > { %s1034_s15 = smov %s731_s18  ;;  %18 = sbr.rel (!%p16_p2) target bundleno = 5 (0x5), region = 77 }
  0x84   :  { %462 = vsyncpa [#allocation3], 1 }
  0x85   :  { %464 = vsyncpa [#allocation3 + $0x1], 1 }
  0x86   :  { %465 = vsyncpa [#allocation4], 1 }
  0x87   :  { %467 = vsyncpa [#allocation4 + $0x1], 1 }

// kernel: resblock_forward.2
= control target key start
LH: loop header
LB: loop body
LE: loop exit
PB: predicated region body
PF: predicated region fallthrough
CT: control target
= control target key end

     0   :  { %14 = vsyncpa [#allocation4], 0  ;;  %s6018_s0 = inlined_call_operand.hbm [shape: f32[2,16,16,128], index: 0, kind: input, shape index: {}]   ;;  %s6019_s1 = inlined_call_operand.vmem [shape: f32[128,32], index: 1, kind: input, shape index: {}]   ;;  %s6020_s2 = inlined_call_operand.vmem [shape: f32[1,32], index: 2, kind: input, shape index: {}]   ;;  %s6021_s3 = inlined_call_operand.hbm [shape: f32[288,32], index: 3, kind: input, shape index: {}]   ;;  %s6022_s4 = inlined_call_operand.vmem [shape: f32[1,32], index: 4, kind: input, shape index: {}]   ;;  %s6023_s5 = inlined_call_operand.vmem [shape: f32[32,128], index: 5, kind: input, shape index: {}]   ;;  %s6024_s6 = inlined_call_operand.vmem [shape: f32[1,128], index: 6, kind: input, shape index: {}]   ;;  %s6025_s7 = inlined_call_operand.hbm [shape: f32[2,16,16,128], index: 7, kind: output, shape index: {0}]   ;;  %s6026_s8 = inlined_call_operand.vmem [shape: f32[2,2,128], index: 8, kind: output, shape index: {1}]  }
   0x1   :  { %16 = vsyncpa [#allocation4 + $0x1], 0 }
   0x2   :  { %17 = vsyncpa [#allocation7], 0 }
   0x3   :  { %18 = vsyncpa [#allocation5], 0 }
   0x4   :  { %20 = vsyncpa [#allocation5 + $0x1], 0  ;;  %s4637_s27 = smov 0   ;;  %s4639_s28 = smov 0  }
   0x5   :  { %s4641_s29 = smov 0   ;;  %s4643_s30 = smov 0  }
   0x6 LB: > { %s4658_s9 = sadd.s32 4294967295, %s4578_s30   ;;  %s3374_s10 = sadd.s32 4294967294, %s4578_s30   ;;  %s4578_s30 = sphi %s4643_s30, %s6048_s30   ;;  %s4574_s29 = sphi %s4641_s29, %s6051_s29   ;;  %s4570_s28 = sphi %s4639_s28, %s6050_s28   ;;  %s4566_s27 = sphi %s4637_s27, %s6049_s27  }
   0x7   : > { %p46_p0 = scmp.ne.s32.totalorder %s4570_s28, %s4566_s27  ;;  %p6027_p1 = scmp.eq.s32.totalorder %s4658_s9, 0 }
   0x8   : > { %p202_p3 = scmp.eq.s32.totalorder %s3374_s10, 1  ;;  %p3375_p5 = scmp.ge.s32.totalorder %s4578_s30, 1 }
   0x9   : > { %p4667_p4 = por %p6027_p1, %p46_p0  ;;  %p235_p7 = scmp.lt.s32.totalorder %s4578_s30, 3 }
   0xa   : > { %p4672_p6 = por %p202_p3, %p46_p0  ;;  %s4580_s14 = smov [#allocation6]  }
   0xb   : > { %s6033_s11 = scalar_select %p4667_p4, 1, 0 }
   0xc   : > { %s6034_s12 = scalar_select %p4672_p6, 1, 0 }
   0xd   : > { %p4677_p8 = pnand %p3375_p5, %p235_p7  ;;  %s253_s15 = sshll.u32 %s4580_s14, 4  ;;  %s4681_s15 = int_to_ptr.vmem [resolvable:$true] %s253_s15 }
   0xe   : > { %s4693_s17 = sadd.s32 1, %s4578_s30   ;;  %s33_s18 = sadd.s32 1, %s4574_s29 }
   0xf   : > { %s6035_s13 = scalar_select %p4677_p8, 1, 0 }
  0x10   : > { %p3880_p9 = pneg %p4677_p8  ;;  %6037 = sst [smem:[#allocation12_spill]] %s4693_s17 }
  0x11   : > { %s30_s19 = ssub.s32 %s4578_s30, %s4693_s17  ;;  %s4450_s22 = scalar_lea.hbm %s6021_s3, 4608 }
  0x12   : > { %p4688_p11 = pnand %p3880_p9, %p6027_p1  ;;  %p4451_p12 = scmp.ne.s32.totalorder %s6021_s3, %s4450_s22 }
  0x13   : > { %p4457_p5 = scmp.lt.u32.totalorder %s4450_s22, %s6021_s3 }
  0x14   : > { %p4452_p13 = pneg %p4688_p11 }
  0x16   : > { %p4453_p0 = pnand %p4452_p13, %p4451_p12 }
  0x18   : > { %p4454_p3 = pneg %p4453_p0 }
  0x1a   : > { %p4459_p7 = pnand %p4457_p5, %p4454_p3 }
  0x1c   : > { %4462 = shalt.err (!%p4459_p7)
}
  0x1d   : > { %s4463_s10 = scalar_lea.vmem %s4681_s15, 4608  ;;  %p4471_p2 = scmp.lt.s32.totalorder %s4681_s15, %s4681_s15 }
  0x1e   : > { %p4464_p9 = scmp.ne.s32.totalorder %s4681_s15, %s4463_s10  ;;  %p4472_p6 = scmp.lt.s32.totalorder %s4463_s10, %s4463_s10 }
  0x20   : > { %p4466_p10 = pnand %p4464_p9, %p4452_p13  ;;  %p4473_p4 = por %p4472_p6, %p4471_p2 }
  0x22   : > { %p4467_p1 = pneg %p4466_p10 }
  0x24   : > { %p4474_p8 = pnand %p4473_p4, %p4467_p1 }
  0x26   : > { %4477 = shalt.err (!%p4474_p8)
}
  0x27   : > { %s6032_s14 = smov 128   ;;  %s4582_s20 = smov 8  }
  0x28   : > { %3883 = dma.hbm_to_vmem [thread:$0]  (!%p4688_p11), %s6021_s3, 4608, %s4681_s15, [#allocation7], %s6032_s14, %s6032_s14, %s4582_s20  }
  0x29   : > { %p31_p1 = scmp.eq.s32.totalorder %s30_s19, 0  ;;  %p40_p2 = scmp.ne.s32.totalorder %s4574_s29, %s4570_s28 }
  0x2a   : > { %p41_p4 = scmp.eq.s32.totalorder %s4578_s30, 0  ;;  %p3893_p6 = scmp.lt.s32.totalorder %s4578_s30, 2 }
  0x2b   : > { %s4727_s23 = scalar_select %p31_p1, %s4574_s29, %s33_s18  }
  0x2c   : > { %p42_p8 = por %p41_p4, %p40_p2  ;;  %p6038_p10 = scmp.eq.s32.totalorder %s4658_s9, 1 }
  0x2d   : > { %s276_s16 = sand.u32 1, %s4574_s29   ;;  %s3458_s25 = sshll.u32 %s4578_s30, 12 }
  0x2e   : > { %p4731_p12 = por %p6038_p10, %p40_p2  ;;  %s3378_s26 = sshll.u32 %s276_s16, 8 }
  0x2f   : > { %s4740_s21 = scalar_lea.hbm %s6018_s0, %s3458_s25  ;;  %s280_s15 = scalar_lea.vmem [#allocation3], %s3378_s26 }
  0x30   : > { %s287_s18 = sshll.u32 %s280_s15, 4  ;;  %p4742_p11 = pnand %p3893_p6, %p42_p8  ;;  %s4746_s18 = int_to_ptr.vmem [resolvable:$true] %s287_s18 }
  0x31   : > { %s4748_s22 = scalar_lea.sflag [#allocation4], %s276_s16  ;;  %s4478_s14 = scalar_lea.hbm %s4740_s21, 4096 }
  0x32   : > { %p4479_p13 = scmp.ne.s32.totalorder %s4740_s21, %s4478_s14  ;;  %p4480_p0 = pneg %p4742_p11 }
  0x33   : > { %s4483_s26 = scalar_lea.hbm %s6018_s0, 8192  ;;  %p4484_p7 = scmp.lt.u32.totalorder %s4740_s21, %s6018_s0 }
  0x34   : > { %p4481_p3 = pnand %p4480_p0, %p4479_p13  ;;  %p4485_p9 = scmp.lt.u32.totalorder %s4483_s26, %s4478_s14 }
  0x35   : > { %p4487_p2 = scmp.lt.u32.totalorder %s4478_s14, %s4740_s21 }
  0x36   : > { %p4482_p5 = pneg %p4481_p3  ;;  %p4486_p1 = por %p4485_p9, %p4484_p7 }
  0x38   : > { %p4488_p4 = por %p4487_p2, %p4486_p1 }
  0x3a   : > { %p4489_p6 = pnand %p4488_p4, %p4482_p5 }
  0x3c   : > { %4492 = shalt.err (!%p4489_p6)
}
  0x3d   : > { %s4493_s16 = scalar_lea.vmem %s4746_s18, 4096  ;;  %s4583_s17 = smov [#allocation3]  }
  0x3e   : > { %p4494_p8 = scmp.ne.s32.totalorder %s4746_s18, %s4493_s16  ;;  %s4498_s25 = sshll.u32 %s4583_s17, 4  ;;  %s4499_s25 = int_to_ptr.vmem [resolvable:$false] %s4498_s25 }
  0x3f   : > { %s4500_s10 = scalar_lea.vmem %s4499_s25, 8192  ;;  %p4501_p3 = scmp.lt.s32.totalorder %s4746_s18, %s4499_s25 }
  0x40   : > { %p4496_p10 = pnand %p4494_p8, %p4480_p0  ;;  %p4502_p7 = scmp.lt.s32.totalorder %s4500_s10, %s4493_s16 }
  0x42   : > { %p4497_p13 = pneg %p4496_p10  ;;  %p4503_p9 = por %p4502_p7, %p4501_p3 }
  0x44   : > { %p4504_p1 = pnand %p4503_p9, %p4497_p13 }
  0x46   : > { %4507 = shalt.err (!%p4504_p1)
}
  0x47   : > { %s6041_s14 = smov 128   ;;  %p6042_p0 = scmp.ne.s32.totalorder %s6035_s13, 0 }
  0x48   : > { %3887 = dma.hbm_to_vmem [thread:$0]  (!%p4742_p11), %s4740_s21, 4096, %s4746_s18, %s4748_s22, %s6041_s14, %s6041_s14, %s4582_s20  }
  0x49   : > { %299 = sbr.rel (%p6042_p0) target bundleno = 1139 (0x473), region = 48  ;;  %s4782_s26 = sand.u32 (!%p6042_p0), 1, %s4570_s28  }
  0x4a   : > { %s3382_s15 = sshll.u32 (!%p6042_p0), %s4782_s26, 8  ;;  %s302_s16 = scalar_lea.sflag (!%p6042_p0), [#allocation4], %s4782_s26 }
  0x4b   : > { %s4788_s19 = scalar_lea.vmem (!%p6042_p0), [#allocation3], %s3382_s15  ;;  %p6043_p5 = scmp.ne.s32.totalorder (!%p6042_p0), %s6033_s11, 0 }
  0x50   : > { %4553 = dma.done.wait (%p6043_p5), %s302_s16, 4096  }
  0x51   : > { %4555 = vsyncadd (%p6043_p5), %s302_s16, 4294963200  ;;  %p6044_p11 = scmp.eq.s32.totalorder %s4658_s9, 0 }
  0x53   : > { %4557 = dma.done.wait (%p6044_p11), [#allocation7], 4608   ;;  %p6045_p2 = pmov %p6044_p11 }
  0x54   : > { %v382_v0 = vld [vmem:[%s6019_s1] sm:$0xff]  ;;  %v383_v1 = vld [vmem:[%s6019_s1 + $0x8] sm:$0xff]  ;;  %v384_v2 = vld [vmem:[%s6019_s1 + $0x10] sm:$0xff]  ;;  %vm726_vm0 = vcmask 261120   ;;  %vm729_vm1 = vcmask 254976   ;;  %vm735_vm2 = vcmask 253952  }
  0x55   : > { %4559 = vsyncadd (%p6045_p2), [#allocation7], 4294962688  ;;  %v3772_v3 = vpack.c.bf16 %v383_v1, %v382_v0  ;;  %v385_v4 = vld [vmem:[%s6019_s1 + $0x18] sm:$0xff]  ;;  %v386_v6 = vld [vmem:[%s6019_s1 + $0x20] sm:$0xff]  ;;  %v4584_v56 = vmov 0.0   ;;  %v4585_v1 = vmov 0.0|0.0  }
  0x56   : > { %v3776_v5 = vpack.c.bf16 %v385_v4, %v384_v2  ;;  %v387_v7 = vld [vmem:[%s6019_s1 + $0x28] sm:$0xff]  ;;  %v350_v9 = vld [vmem:[%s4788_s19] sm:$0xff]  ;;  %v389_v11 = vld [vmem:[%s6019_s1 + $0x38] sm:$0xff]  ;;  %728 = vst.msk [vmem:[#allocation2 + $0x8] sm:$0xff] %vm726_vm0, %v4584_v56  ;;  %3804 = vmatprep.subr.bf16.mxu1 %v4585_v1  ;;  %s4586_s20 = smov 32   ;;  %s4587_s21 = smov 96  }
  0x57   : > { %3773 = vmatprep.subr.bf16.mxu0 %v3772_v3  ;;  %v3780_v8 = vpack.c.bf16 %v387_v7, %v386_v6  ;;  %v388_v10 = vld [vmem:[%s6019_s1 + $0x30] sm:$0xff]  ;;  %3612 = vmatprep.mubr.f32.mxu0 %v350_v9  ;;  %v390_v13 = vld [vmem:[%s6019_s1 + $0x40] sm:$0xff]  ;;  %v391_v14 = vld [vmem:[%s6019_s1 + $0x48] sm:$0xff]  ;;  %730 = vst.msk [vmem:[#allocation2 + $0x10] sm:$0x3] %vm729_vm1, %v4584_v56  ;;  %s4588_s18 = smov 64  }
  0x58   : > { %3775 = vmatpush3.bf16.msra.mxu0 %v3772_v3  ;;  %v3784_v12 = vpack.c.bf16 %v389_v11, %v388_v10  ;;  %v3788_v15 = vpack.c.bf16 %v391_v14, %v390_v13  ;;  %v392_v16 = vld [vmem:[%s6019_s1 + $0x50] sm:$0xff]  ;;  %v393_v17 = vld [vmem:[%s6019_s1 + $0x58] sm:$0xff]  ;;  %v394_v19 = vld [vmem:[%s6019_s1 + $0x60] sm:$0xff]  ;;  %755 = vst.msk [vmem:[#allocation2 + $0x29] sm:$0x1] %vm735_vm2, %v4584_v56  ;;  %s5868_s17 = scalar_lea.vmem [#allocation8], %s3382_s15 }
  0x59   : > { %3777 = vmatprep.subr.bf16.mxu0 %v3776_v5  ;;  %v3792_v18 = vpack.c.bf16 %v393_v17, %v392_v16  ;;  %v395_v20 = vld [vmem:[%s6019_s1 + $0x68] sm:$0xff]  ;;  %v396_v22 = vld [vmem:[%s6019_s1 + $0x70] sm:$0xff]  ;;  %v397_v23 = vld [vmem:[%s6019_s1 + $0x78] sm:$0xff]  ;;  %727 = vst.msk [vmem:[#allocation2] sm:$0xff] %vm726_vm0, %v4584_v56  ;;  %s3459_s15 = sshll.u32 %s4658_s9, 12  ;;  %s3264_s11 = sshll.u32 %s5868_s17, 4  ;;  %s5966_s11 = int_to_ptr.vmem [resolvable:$true] %s3264_s11 }
  0x5a   : > { %v3796_v21 = vpack.c.bf16 %v395_v20, %v394_v19  ;;  %v3800_v24 = vpack.c.bf16 %v397_v23, %v396_v22  ;;  %v351_v25 = vld [vmem:[%s4788_s19 + $0x8] sm:$0xff]  ;;  %v352_v26 = vld [vmem:[%s4788_s19 + $0x10] sm:$0xff]  ;;  %v353_v27 = vld [vmem:[%s4788_s19 + $0x18] sm:$0xff]  ;;  %732 = vst.msk [vmem:[#allocation2 + $0x198] sm:$0xff] %vm726_vm0, %v4584_v56  ;;  %s5964_s14 = scalar_lea.hbm %s6025_s7, %s3459_s15  ;;  %s3247_s16 = scalar_lea.sflag [#allocation5], %s4782_s26 }
  0x5b   : > { %v354_v28 = vld [vmem:[%s4788_s19 + $0x20] sm:$0xff]  ;;  %v355_v29 = vld [vmem:[%s4788_s19 + $0x28] sm:$0xff]  ;;  %v356_v30 = vld [vmem:[%s4788_s19 + $0x30] sm:$0xff]  ;;  %733 = vst.msk [vmem:[#allocation2 + $0x1a0] sm:$0xff] %vm726_vm0, %v4584_v56  ;;  %s4508_s13 = scalar_lea.vmem %s5966_s11, 4096 }
  0x5c   : > { %3779 = vmatpush3.bf16.msra.mxu0 %v3776_v5  ;;  %v357_v31 = vld [vmem:[%s4788_s19 + $0x38] sm:$0xff]  ;;  %v358_v32 = vld [vmem:[%s4788_s19 + $0x40] sm:$0xff]  ;;  %v359_v33 = vld [vmem:[%s4788_s19 + $0x48] sm:$0xff]  ;;  %734 = vst.msk [vmem:[#allocation2 + $0x1a8] sm:$0x3] %vm729_vm1, %v4584_v56  ;;  %p4509_p4 = scmp.ne.s32.totalorder %s5966_s11, %s4508_s13 }
  0x5d   : > { %3781 = vmatprep.subr.bf16.mxu0 %v3780_v8  ;;  %v360_v34 = vld [vmem:[%s4788_s19 + $0x50] sm:$0xff]  ;;  %v361_v35 = vld [vmem:[%s4788_s19 + $0x58] sm:$0xff]  ;;  %v362_v36 = vld [vmem:[%s4788_s19 + $0x60] sm:$0xff]  ;;  %737 = vst.msk [vmem:[#allocation2 + $0x18] sm:$0x1] %vm735_vm2, %v4584_v56 }
  0x5e   : > { %v363_v37 = vld [vmem:[%s4788_s19 + $0x68] sm:$0xff]  ;;  %v364_v38 = vld [vmem:[%s4788_s19 + $0x70] sm:$0xff]  ;;  %v365_v39 = vld [vmem:[%s4788_s19 + $0x78] sm:$0xff]  ;;  %738 = vst.msk [vmem:[#allocation2 + $0x30] sm:$0x1] %vm735_vm2, %v4584_v56  ;;  %p4510_p6 = pnand %p4509_p4, %p4731_p12 }
  0x5f   : > { %v366_v40 = vld [vmem:[%s4788_s19 + $0x80] sm:$0xff]  ;;  %v367_v41 = vld [vmem:[%s4788_s19 + $0x88] sm:$0xff]  ;;  %v368_v42 = vld [vmem:[%s4788_s19 + $0x90] sm:$0xff]  ;;  %739 = vst.msk [vmem:[#allocation2 + $0x48] sm:$0x1] %vm735_vm2, %v4584_v56 }
  0x60   : > { %3783 = vmatpush3.bf16.msra.mxu0 %v3780_v8  ;;  %v369_v43 = vld [vmem:[%s4788_s19 + $0x98] sm:$0xff]  ;;  %v370_v44 = vld [vmem:[%s4788_s19 + $0xa0] sm:$0xff]  ;;  %v371_v45 = vld [vmem:[%s4788_s19 + $0xa8] sm:$0xff]  ;;  %740 = vst.msk [vmem:[#allocation2 + $0x60] sm:$0x1] %vm735_vm2, %v4584_v56  ;;  %p4511_p8 = pneg %p4510_p6 }
  0x61   : > { %3785 = vmatprep.subr.bf16.mxu0 %v3784_v12  ;;  %v372_v46 = vld [vmem:[%s4788_s19 + $0xb0] sm:$0xff]  ;;  %v373_v47 = vld [vmem:[%s4788_s19 + $0xb8] sm:$0xff]  ;;  %v374_v48 = vld [vmem:[%s4788_s19 + $0xc0] sm:$0xff]  ;;  %741 = vst.msk [vmem:[#allocation2 + $0x78] sm:$0x1] %vm735_vm2, %v4584_v56 }
  0x62   : > { %v375_v49 = vld [vmem:[%s4788_s19 + $0xc8] sm:$0xff]  ;;  %v376_v50 = vld [vmem:[%s4788_s19 + $0xd0] sm:$0xff]  ;;  %v377_v51 = vld [vmem:[%s4788_s19 + $0xd8] sm:$0xff]  ;;  %742 = vst.msk [vmem:[#allocation2 + $0x90] sm:$0x1] %vm735_vm2, %v4584_v56 }
  0x63   : > { %v378_v52 = vld [vmem:[%s4788_s19 + $0xe0] sm:$0xff]  ;;  %v379_v53 = vld [vmem:[%s4788_s19 + $0xe8] sm:$0xff]  ;;  %v380_v54 = vld [vmem:[%s4788_s19 + $0xf0] sm:$0xff]  ;;  %743 = vst.msk [vmem:[#allocation2 + $0xa8] sm:$0x1] %vm735_vm2, %v4584_v56 }
  0x64   : > { %3787 = vmatpush3.bf16.msra.mxu0 %v3784_v12  ;;  %v381_v55 = vld [vmem:[%s4788_s19 + $0xf8] sm:$0xff]  ;;  %744 = vst.msk [vmem:[#allocation2 + $0xc0] sm:$0x1] %vm735_vm2, %v4584_v56  ;;  %745 = vst.msk [vmem:[#allocation2 + $0xd8] sm:$0x1] %vm735_vm2, %v4584_v56  ;;  %v2088_v57 = vld [vmem:[#allocation6 + $0x100] sm:$0xff] }
  0x65   : > { %3789 = vmatprep.subr.bf16.mxu0 %v3788_v15  ;;  %746 = vst.msk [vmem:[#allocation2 + $0xf0] sm:$0x1] %vm735_vm2, %v4584_v56  ;;  %747 = vst.msk [vmem:[#allocation2 + $0x108] sm:$0x1] %vm735_vm2, %v4584_v56  ;;  %v2089_v58 = vld [vmem:[#allocation6 + $0x108] sm:$0xff]  ;;  %v2090_v60 = vld [vmem:[#allocation6 + $0x110] sm:$0xff] }
  0x66   : > { %748 = vst.msk [vmem:[#allocation2 + $0x120] sm:$0x1] %vm735_vm2, %v4584_v56  ;;  %749 = vst.msk [vmem:[#allocation2 + $0x138] sm:$0x1] %vm735_vm2, %v4584_v56  ;;  %v4918_v59 = vpack.c.bf16 %v2089_v58, %v2088_v57  ;;  %v2091_v61 = vld [vmem:[#allocation6 + $0x118] sm:$0xff]  ;;  %v2056_v63 = vld [vmem:[#allocation6] sm:$0xff] }
  0x67   : > { %750 = vst.msk [vmem:[#allocation2 + $0x150] sm:$0x1] %vm735_vm2, %v4584_v56  ;;  %751 = vst.msk [vmem:[#allocation2 + $0x168] sm:$0x1] %vm735_vm2, %v4584_v56  ;;  %v4922_v62 = vpack.c.bf16 %v2091_v61, %v2090_v60  ;;  %v2057_v0 = vld [vmem:[#allocation6 + $0x8] sm:$0xff]  ;;  %v2058_v3 = vld [vmem:[#allocation6 + $0x10] sm:$0xff] }
  0x68   : > { %3791 = vmatpush3.bf16.msra.mxu0 %v3788_v15  ;;  %752 = vst.msk [vmem:[#allocation2 + $0x180] sm:$0x1] %vm735_vm2, %v4584_v56  ;;  %756 = vst.msk [vmem:[#allocation2 + $0x41] sm:$0x1] %vm735_vm2, %v4584_v56  ;;  %v3805_v2 = vpack.c.bf16 %v2057_v0, %v2056_v63  ;;  %v2059_v4 = vld [vmem:[#allocation6 + $0x18] sm:$0xff]  ;;  %v2060_v6 = vld [vmem:[#allocation6 + $0x20] sm:$0xff] }
  0x69   : > { %3793 = vmatprep.subr.bf16.mxu0 %v3792_v18  ;;  %757 = vst.msk [vmem:[#allocation2 + $0x59] sm:$0x1] %vm735_vm2, %v4584_v56  ;;  %758 = vst.msk [vmem:[#allocation2 + $0x71] sm:$0x1] %vm735_vm2, %v4584_v56  ;;  %v3808_v5 = vpack.c.bf16 %v2059_v4, %v2058_v3  ;;  %v2061_v7 = vld [vmem:[#allocation6 + $0x28] sm:$0xff]  ;;  %v2062_v9 = vld [vmem:[#allocation6 + $0x30] sm:$0xff] }
  0x6a   : > { %759 = vst.msk [vmem:[#allocation2 + $0x89] sm:$0x1] %vm735_vm2, %v4584_v56  ;;  %760 = vst.msk [vmem:[#allocation2 + $0xa1] sm:$0x1] %vm735_vm2, %v4584_v56  ;;  %3806 = vmatpush1.bf16.msra.mxu1 %v3805_v2  ;;  %v3811_v8 = vpack.c.bf16 %v2061_v7, %v2060_v6  ;;  %v2063_v10 = vld [vmem:[#allocation6 + $0x38] sm:$0xff]  ;;  %v2064_v12 = vld [vmem:[#allocation6 + $0x40] sm:$0xff] }
  0x6b   : > { %761 = vst.msk [vmem:[#allocation2 + $0xb9] sm:$0x1] %vm735_vm2, %v4584_v56  ;;  %762 = vst.msk [vmem:[#allocation2 + $0xd1] sm:$0x1] %vm735_vm2, %v4584_v56  ;;  %3807 = vmatprep.subr.bf16.mxu1 %v4585_v1  ;;  %v3814_v11 = vpack.c.bf16 %v2063_v10, %v2062_v9  ;;  %v2065_v13 = vld [vmem:[#allocation6 + $0x48] sm:$0xff]  ;;  %v2066_v15 = vld [vmem:[#allocation6 + $0x50] sm:$0xff] }
  0x6c   : > { %3795 = vmatpush3.bf16.msra.mxu0 %v3792_v18  ;;  %763 = vst.msk [vmem:[#allocation2 + $0xe9] sm:$0x1] %vm735_vm2, %v4584_v56  ;;  %764 = vst.msk [vmem:[#allocation2 + $0x101] sm:$0x1] %vm735_vm2, %v4584_v56  ;;  %v3817_v14 = vpack.c.bf16 %v2065_v13, %v2064_v12  ;;  %v2067_v16 = vld [vmem:[#allocation6 + $0x58] sm:$0xff]  ;;  %v2068_v18 = vld [vmem:[#allocation6 + $0x60] sm:$0xff] }
  0x6d   : > { %3797 = vmatprep.subr.bf16.mxu0 %v3796_v21  ;;  %765 = vst.msk [vmem:[#allocation2 + $0x119] sm:$0x1] %vm735_vm2, %v4584_v56  ;;  %766 = vst.msk [vmem:[#allocation2 + $0x131] sm:$0x1] %vm735_vm2, %v4584_v56  ;;  %v3820_v17 = vpack.c.bf16 %v2067_v16, %v2066_v15  ;;  %v2069_v19 = vld [vmem:[#allocation6 + $0x68] sm:$0xff]  ;;  %v2071_v22 = vld [vmem:[#allocation6 + $0x78] sm:$0xff] }
  0x6e   : > { %767 = vst.msk [vmem:[#allocation2 + $0x149] sm:$0x1] %vm735_vm2, %v4584_v56  ;;  %768 = vst.msk [vmem:[#allocation2 + $0x161] sm:$0x1] %vm735_vm2, %v4584_v56  ;;  %3809 = vmatpush1.bf16.msra.mxu1 %v3808_v5  ;;  %v3823_v20 = vpack.c.bf16 %v2069_v19, %v2068_v18  ;;  %v2084_v2 = vld [vmem:[#allocation6 + $0xe0] sm:$0xff]  ;;  %v2085_v3 = vld [vmem:[#allocation6 + $0xe8] sm:$0xff] }
  0x6f   : > { %769 = vst.msk [vmem:[#allocation2 + $0x179] sm:$0x1] %vm735_vm2, %v4584_v56  ;;  %770 = vst.msk [vmem:[#allocation2 + $0x191] sm:$0x1] %vm735_vm2, %v4584_v56  ;;  %3810 = vmatprep.subr.bf16.mxu1 %v4585_v1  ;;  %v838_v5 = vld [vmem:[#allocation2 + $0x9] sm:$0xff]  ;;  %v3847_v6 = vpack.c.bf16 %v2085_v3, %v2084_v2  ;;  %v837_v9 = vld [vmem:[#allocation2 + $0x1] sm:$0xff] }
  0x70   : > { %3799 = vmatpush3.bf16.msra.mxu0 %v3796_v21  ;;  %754 = vst.msk [vmem:[#allocation2 + $0x11] sm:$0x1] %vm735_vm2, %v4584_v56  ;;  %736 = vst.msk [vmem:[#allocation2] sm:$0x1] %vm735_vm2, %v4584_v56  ;;  %v2070_v21 = vld [vmem:[#allocation6 + $0x70] sm:$0xff] }
  0x71   : > { %3801 = vmatprep.subr.bf16.mxu0 %v3800_v24  ;;  %753 = vst.msk [vmem:[#allocation2 + $0x198] sm:$0x1] %vm735_vm2, %v4584_v56  ;;  %771 = vst.msk [vmem:[#allocation2 + $0x1a9] sm:$0x1] %vm735_vm2, %v4584_v56  ;;  %v3826_v23 = vpack.c.bf16 %v2071_v22, %v2070_v21  ;;  %v2087_v21 = vld [vmem:[#allocation6 + $0xf8] sm:$0xff] }
  0x72   : > { %3812 = vmatpush1.bf16.msra.mxu1 %v3811_v8 }
  0x73   : > { %3813 = vmatprep.subr.bf16.mxu1 %v4585_v1 }
  0x74   : > { %3803 = vmatpush3.bf16.msra.mxu0 %v3800_v24  ;;  %v2072_v24 = vld [vmem:[#allocation6 + $0x80] sm:$0xff] }
  0x75   : > { %3853 = vmatprep.subr.bf16.mxu0 %v4918_v59 }
  0x76   : > { %3815 = vmatpush1.bf16.msra.mxu1 %v3814_v11 }
  0x77   : > { %3613 = vmatmul.mubr.f32.vlgmr.msra.gmra.mrb[0].mxu0 %v351_v25  ;;  %3816 = vmatprep.subr.bf16.mxu1 %v4585_v1  ;;  %v2073_v25 = vld [vmem:[#allocation6 + $0x88] sm:$0xff] }
  0x78   : > { %3615 = vmatprep.mubr.f32.mxu0 %v352_v26  ;;  %3855 = vmatpush3.bf16.msra.mxu0 %v4918_v59  ;;  %v3829_v26 = vpack.c.bf16 %v2073_v25, %v2072_v24  ;;  %v869_v24 = vld [vmem:[#allocation2 + $0x2] sm:$0xff] }
  0x79   : > { %3857 = vmatprep.subr.bf16.mxu0 %v4922_v62 }
  0x7a   : > { %3818 = vmatpush1.bf16.msra.mxu1 %v3817_v14 }
  0x7b   : > { %3616 = vmatmul.mubr.f32.gmra.mrb[2].mxu0 %v353_v27  ;;  %3819 = vmatprep.subr.bf16.mxu1 %v4585_v1  ;;  %v2074_v27 = vld [vmem:[#allocation6 + $0x90] sm:$0xff] }
  0x7c   : > { %3618 = vmatprep.mubr.f32.mxu0 %v354_v28  ;;  %3859 = vmatpush3.bf16.msra.mxu0 %v4922_v62  ;;  %v2075_v28 = vld [vmem:[#allocation6 + $0x98] sm:$0xff] }
  0x7e   : > { %3821 = vmatpush1.bf16.msra.mxu1 %v3820_v17 }
  0x7f   : > { %3619 = vmatmul.mubr.f32.gmra.mrb[4].mxu0 %v355_v29  ;;  %3822 = vmatprep.subr.bf16.mxu1 %v4585_v1  ;;  %v3832_v29 = vpack.c.bf16 %v2075_v28, %v2074_v27 }
  0x80   : > { %3621 = vmatprep.mubr.f32.mxu0 %v356_v30  ;;  %v2076_v30 = vld [vmem:[#allocation6 + $0xa0] sm:$0xff] }
  0x82   : > { %3824 = vmatpush1.bf16.msra.mxu1 %v3823_v20  ;;  %v2086_v20 = vld [vmem:[#allocation6 + $0xf0] sm:$0xff] }
  0x83   : > { %3622 = vmatmul.mubr.f32.gmra.mrb[6].mxu0 %v357_v31  ;;  %3825 = vmatprep.subr.bf16.mxu1 %v4585_v1  ;;  %v2077_v31 = vld [vmem:[#allocation6 + $0xa8] sm:$0xff]  ;;  %v3850_v25 = vpack.c.bf16 %v2087_v21, %v2086_v20 }
  0x84   : > { %3624 = vmatprep.mubr.f32.mxu0 %v358_v32  ;;  %v3835_v32 = vpack.c.bf16 %v2077_v31, %v2076_v30 }
  0x86   : > { %3827 = vmatpush1.bf16.msra.mxu1 %v3826_v23 }
  0x87   : > { %3625 = vmatmul.mubr.f32.gmra.mrb[8].mxu0 %v359_v33  ;;  %3828 = vmatprep.subr.bf16.mxu1 %v4585_v1  ;;  %v2078_v33 = vld [vmem:[#allocation6 + $0xb0] sm:$0xff] }
  0x88   : > { %3627 = vmatprep.mubr.f32.mxu0 %v360_v34  ;;  %v2079_v34 = vld [vmem:[#allocation6 + $0xb8] sm:$0xff] }
  0x8a   : > { %3830 = vmatpush1.bf16.msra.mxu1 %v3829_v26 }
  0x8b   : > { %3628 = vmatmul.mubr.f32.gmra.mrb[10].mxu0 %v361_v35  ;;  %3831 = vmatprep.subr.bf16.mxu1 %v4585_v1  ;;  %v4941_v35 = vld [vmem:[%s6020_s2] ss:$0 sm:$0xff] }
  0x8c   : > { %3630 = vmatprep.mubr.f32.mxu0 %v362_v36  ;;  %v3838_v36 = vpack.c.bf16 %v2079_v34, %v2078_v33 }
  0x8e   : > { %3833 = vmatpush1.bf16.msra.mxu1 %v3832_v29 }
  0x8f   : > { %3631 = vmatmul.mubr.f32.gmra.mrb[12].mxu0 %v363_v37  ;;  %3834 = vmatprep.subr.bf16.mxu1 %v4585_v1 }
  0x90   : > { %3633 = vmatprep.mubr.f32.mxu0 %v364_v38 }
  0x92   : > { %3836 = vmatpush1.bf16.msra.mxu1 %v3835_v32 }
  0x93   : > { %3634 = vmatmul.mubr.f32.gmra.mrb[14].mxu0 %v365_v39  ;;  %3837 = vmatprep.subr.bf16.mxu1 %v4585_v1 }
  0x94   : > { %3636 = vmatprep.mubr.f32.mxu0 %v366_v40 }
  0x96   : > { %3839 = vmatpush1.bf16.msra.mxu1 %v3838_v36 }
  0x97   : > { %3637 = vmatmul.mubr.f32.gmra.mrb[16].mxu0 %v367_v41  ;;  %3840 = vmatprep.subr.bf16.mxu1 %v4585_v1  ;;  %v2080_v41 = vld [vmem:[#allocation6 + $0xc0] sm:$0xff] }
  0x98   : > { %3639 = vmatprep.mubr.f32.mxu0 %v368_v42  ;;  %v2081_v42 = vld [vmem:[#allocation6 + $0xc8] sm:$0xff] }
  0x9b   : > { %3640 = vmatmul.mubr.f32.gmra.mrb[18].mxu0 %v369_v43 }
  0x9c   : > { %3642 = vmatprep.mubr.f32.mxu0 %v370_v44  ;;  %v3841_v44 = vpack.c.bf16 %v2081_v42, %v2080_v41  ;;  %v870_v41 = vld [vmem:[#allocation2 + $0xa] sm:$0xff] }
  0x9e   : > { %3842 = vmatpush1.bf16.msra.mxu1 %v3841_v44 }
  0x9f   : > { %3643 = vmatmul.mubr.f32.gmra.mrb[20].mxu0 %v371_v45  ;;  %3843 = vmatprep.subr.bf16.mxu1 %v4585_v1 }
  0xa0   : > { %3645 = vmatprep.mubr.f32.mxu0 %v372_v46 }
  0xa3   : > { %3646 = vmatmul.mubr.f32.gmra.mrb[22].mxu0 %v373_v47 }
  0xa4   : > { %3648 = vmatprep.mubr.f32.mxu0 %v374_v48 }
  0xa7   : > { %3649 = vmatmul.mubr.f32.gmra.mrb[24].mxu0 %v375_v49 }
  0xa8   : > { %3651 = vmatprep.mubr.f32.mxu0 %v376_v50 }
  0xab   : > { %3652 = vmatmul.mubr.f32.gmra.mrb[26].mxu0 %v377_v51 }
  0xac   : > { %3654 = vmatprep.mubr.f32.mxu0 %v378_v52  ;;  %v2082_v52 = vld [vmem:[#allocation6 + $0xd0] sm:$0xff] }
  0xaf   : > { %3655 = vmatmul.mubr.f32.gmra.mrb[28].mxu0 %v379_v53  ;;  %v2083_v53 = vld [vmem:[#allocation6 + $0xd8] sm:$0xff] }
  0xb0   : > { %3657 = vmatprep.mubr.f32.mxu0 %v380_v54 }
  0xb3   : > { %3658 = vmatmul.mubr.f32.gmra.mrb[30].mxu0 %v381_v55  ;;  %v3844_v55 = vpack.c.bf16 %v2083_v53, %v2082_v52 }
  0xb5   : > { %3845 = vmatpush1.bf16.msra.mxu1 %v3844_v55 }
  0xb6   : > { %3846 = vmatprep.subr.bf16.mxu1 %v4585_v1 }
  0xb9   : > { %3848 = vmatpush1.bf16.msra.mxu1 %v3847_v6 }
  0xba   : > { %3849 = vmatprep.subr.bf16.mxu1 %v4585_v1 }
  0xbd   : > { %3851 = vmatpush1.bf16.msra.mxu1 %v3850_v25 }
  0xbe   : > { %3868 = vmatprep.subr.bf16.mxu1 %v4918_v59 }
 0x14a   : > { %v3614_v37 = vpop.f32.mrb[0].mxu0 }
 0x14b   : > { %v477_v38 = vadd.f32 %v3614_v37, %v4941_v35  ;;  %v471_v39 = vpop.f32.mrb[1].mxu0 }
 0x14c   : > { %v472_v40 = vadd.f32 %v4941_v35, %v471_v39 }
 0x14d   : > { %vm631_vm3 = vcmp.gt.f32.partialorder %v477_v38, 0.0  ;;  %v663_v43 = vmul.f32 0.01, %v477_v38 }
 0x14e   : > { %vm630_vm4 = vcmp.gt.f32.partialorder %v472_v40, 0.0  ;;  %v662_v45 = vmul.f32 0.01, %v472_v40  ;;  %v3617_v46 = vpop.f32.mrb[2].mxu0 }
 0x14f   : > { %v695_v47 = vsel %vm631_vm3, %v477_v38, %v663_v43  ;;  %v487_v48 = vadd.f32 %v3617_v46, %v4941_v35  ;;  %v481_v49 = vpop.f32.mrb[3].mxu0 }
 0x150   : > { %774 = vst.msk [vmem:[#allocation2 + $0x21] sm:$0xff] %vm726_vm0, %v695_v47  ;;  %v694_v50 = vsel %vm630_vm4, %v472_v40, %v662_v45  ;;  %v482_v51 = vadd.f32 %v4941_v35, %v481_v49 }
 0x151   : > { %773 = vst.msk [vmem:[#allocation2 + $0x19] sm:$0xff] %vm726_vm0, %v694_v50  ;;  %vm633_vm5 = vcmp.gt.f32.partialorder %v487_v48, 0.0  ;;  %v665_v54 = vmul.f32 0.01, %v487_v48 }
 0x152   : > { %vm632_vm6 = vcmp.gt.f32.partialorder %v482_v51, 0.0  ;;  %v664_v56 = vmul.f32 0.01, %v482_v51  ;;  %v3620_v57 = vpop.f32.mrb[4].mxu0 }
 0x153   : > { %v697_v58 = vsel %vm633_vm5, %v487_v48, %v665_v54  ;;  %v497_v60 = vadd.f32 %v3620_v57, %v4941_v35  ;;  %v491_v61 = vpop.f32.mrb[5].mxu0 }
 0x154   : > { %776 = vst.msk [vmem:[#allocation2 + $0x39] sm:$0xff] %vm726_vm0, %v697_v58  ;;  %v696_v63 = vsel %vm632_vm6, %v482_v51, %v664_v56  ;;  %v492_v0 = vadd.f32 %v4941_v35, %v491_v61 }
 0x155   : > { %775 = vst.msk [vmem:[#allocation2 + $0x31] sm:$0xff] %vm726_vm0, %v696_v63  ;;  %vm635_vm7 = vcmp.gt.f32.partialorder %v497_v60, 0.0  ;;  %v667_v4 = vmul.f32 0.01, %v497_v60 }
 0x156   : > { %vm634_vm8 = vcmp.gt.f32.partialorder %v492_v0, 0.0  ;;  %v666_v7 = vmul.f32 0.01, %v492_v0  ;;  %v3623_v8 = vpop.f32.mrb[6].mxu0 }
 0x157   : > { %v699_v10 = vsel %vm635_vm7, %v497_v60, %v667_v4  ;;  %v507_v11 = vadd.f32 %v3623_v8, %v4941_v35  ;;  %v501_v12 = vpop.f32.mrb[7].mxu0  ;;  %v4957_v13 = vld [vmem:[#allocation2 + $0x22] sm:$0xff] }
 0x158   : > { %778 = vst.msk [vmem:[#allocation2 + $0x51] sm:$0xff] %vm726_vm0, %v699_v10  ;;  %v698_v14 = vsel %vm634_vm8, %v492_v0, %v666_v7  ;;  %v502_v15 = vadd.f32 %v4941_v35, %v501_v12  ;;  %v3938_v16 = vpack.i.bf16 %v838_v5, %v4957_v13  ;;  %v4962_v17 = vld [vmem:[#allocation2 + $0x1a] sm:$0xff] }
 0x159   : > { %777 = vst.msk [vmem:[#allocation2 + $0x49] sm:$0xff] %vm726_vm0, %v698_v14  ;;  %vm637_vm9 = vcmp.gt.f32.partialorder %v507_v11, 0.0  ;;  %v669_v18 = vmul.f32 0.01, %v507_v11  ;;  %v3943_v19 = vpack.i.bf16 %v837_v9, %v4962_v17  ;;  %v902_v28 = vld [vmem:[#allocation2 + $0x20] sm:$0xff]  ;;  %v901_v58 = vld [vmem:[#allocation2 + $0x18] sm:$0xff] }
 0x15a   : > { %vm636_vm10 = vcmp.gt.f32.partialorder %v502_v15, 0.0  ;;  %v668_v22 = vmul.f32 0.01, %v502_v15  ;;  %3939 = vrot.lane.b32.xlu1 %v3938_v16, %s4586_s20  ;;  %v3626_v23 = vpop.f32.mrb[8].mxu0  ;;  %v840_v44 = vld [vmem:[#allocation2 + $0x21] sm:$0xff]  ;;  %v5013_v2 = vld [vmem:[#allocation2 + $0x19] sm:$0xff] }
 0x15b   : > { %v701_v26 = vsel %vm637_vm9, %v507_v11, %v669_v18  ;;  %v517_v27 = vadd.f32 %v3626_v23, %v4941_v35  ;;  %v511_v1 = vpop.f32.mrb[9].mxu0  ;;  %3944 = vrot.lane.b32.xlu0 %v3943_v19, %s4586_s20  ;;  %v4970_v29 = vld [vmem:[#allocation2 + $0x39] sm:$0xff] }
 0x15c   : > { %780 = vst.msk [vmem:[#allocation2 + $0x69] sm:$0xff] %vm726_vm0, %v701_v26  ;;  %v700_v30 = vsel %vm636_vm10, %v502_v15, %v668_v22  ;;  %v512_v31 = vadd.f32 %v4941_v35, %v511_v1  ;;  %v4974_v32 = vld [vmem:[#allocation2 + $0x32] sm:$0xff]  ;;  %v3948_v33 = vpack.i.bf16 %v902_v28, %v4970_v29  ;;  %v4982_v37 = vld [vmem:[#allocation2 + $0x3a] sm:$0xff] }
 0x15d   : > { %v4977_v34 = vld [vmem:[#allocation2 + $0x30] sm:$0xff]  ;;  %779 = vst.msk [vmem:[#allocation2 + $0x61] sm:$0xff] %vm726_vm0, %v700_v30  ;;  %vm639_vm11 = vcmp.gt.f32.partialorder %v517_v27, 0.0  ;;  %v671_v36 = vmul.f32 0.01, %v517_v27  ;;  %3668 = vmatprep.mubr.msk.f32.mxu0 %vm726_vm0, %v4974_v32  ;;  %v4989_v42 = vld [vmem:[#allocation2 + $0x38] sm:$0xff]  ;;  %v3953_v48 = vpack.i.bf16 %v840_v44, %v4982_v37  ;;  %v3973_v5 = vpack.i.bf16 %v5013_v2, %v4974_v32 }
 0x15e   : > { %v3958_v38 = vpack.i.bf16 %v869_v24, %v4977_v34  ;;  %vm638_vm12 = vcmp.gt.f32.partialorder %v512_v31, 0.0  ;;  %v670_v39 = vmul.f32 0.01, %v512_v31  ;;  %3669 = vmatmul.mubr.msk.f32.vlgmr.msra.gmra.mrb[32].mxu0 %vm726_vm0, %v4982_v37  ;;  %3949 = vrot.lane.b32.xlu1 %v3948_v33, %s4587_s21  ;;  %v3629_v40 = vpop.f32.mrb[10].mxu0  ;;  %v3968_v52 = vpack.i.bf16 %v870_v41, %v4989_v42  ;;  %v5004_v54 = vld [vmem:[#allocation2 + $0x31] sm:$0xff] }
 0x15f   : > { %v703_v43 = vsel %vm639_vm11, %v517_v27, %v671_v36  ;;  %v527_v45 = vadd.f32 %v3629_v40, %v4941_v35  ;;  %v521_v46 = vpop.f32.mrb[11].mxu0  ;;  %v5002_v53 = vld [vmem:[#allocation2 + $0x52] sm:$0xff]  ;;  %v3963_v0 = vpack.i.bf16 %v901_v58, %v5004_v54 }
 0x160   : > { %3959 = vrot.lane.b32.xlu0 %v3958_v38, %s4588_s18  ;;  %782 = vst.msk [vmem:[#allocation2 + $0x81] sm:$0xff] %vm726_vm0, %v703_v43  ;;  %v702_v47 = vsel %vm638_vm12, %v512_v31, %v670_v39  ;;  %v522_v49 = vadd.f32 %v4941_v35, %v521_v46  ;;  %v4996_v50 = vld [vmem:[#allocation2 + $0x4a] sm:$0xff]  ;;  %v3983_v30 = vpack.i.bf16 %v4970_v29, %v5002_v53 }
 0x161   : > { %781 = vst.msk [vmem:[#allocation2 + $0x79] sm:$0xff] %vm726_vm0, %v702_v47  ;;  %vm641_vm13 = vcmp.gt.f32.partialorder %v527_v45, 0.0  ;;  %v673_v51 = vmul.f32 0.01, %v527_v45  ;;  %3671 = vmatprep.mubr.msk.f32.mxu0 %vm726_vm0, %v4996_v50  ;;  %v5021_v6 = vld [vmem:[#allocation2 + $0x51] sm:$0xff]  ;;  %v5028_v9 = vld [vmem:[#allocation2 + $0x49] sm:$0xff] }
 0x162   : > { %3954 = vrot.lane.b32.xlu1 %v3953_v48, %s4586_s20  ;;  %vm640_vm14 = vcmp.gt.f32.partialorder %v522_v49, 0.0  ;;  %v672_v55 = vmul.f32 0.01, %v522_v49  ;;  %3672 = vmatmul.mubr.msk.f32.gmra.mrb[34].mxu0 %vm726_vm0, %v5002_v53  ;;  %v3632_v56 = vpop.f32.mrb[12].mxu0  ;;  %v3978_v16 = vpack.i.bf16 %v4989_v42, %v5021_v6  ;;  %v3993_v21 = vpack.i.bf16 %v4977_v34, %v5028_v9  ;;  %v5048_v24 = vld [vmem:[#allocation2 + $0x50] sm:$0xff]  ;;  %v1000_v38 = vld [vmem:[#allocation2 + $0x48] sm:$0xff] }
 0x163   : > { %v705_v57 = vsel %vm641_vm13, %v527_v45, %v673_v51  ;;  %v537_v60 = vadd.f32 %v3632_v56, %v4941_v35  ;;  %v531_v61 = vpop.f32.mrb[13].mxu0  ;;  %v5025_v8 = vld [vmem:[#allocation2 + $0x6a] sm:$0xff]  ;;  %v3998_v36 = vpack.i.bf16 %v4957_v13, %v5048_v24  ;;  %v3988_v44 = vpack.i.bf16 %v4962_v17, %v1000_v38 }
 0x164   : > { %3969 = vrot.lane.b32.xlu0 %v3968_v52, %s4588_s18  ;;  %784 = vst.msk [vmem:[#allocation2 + $0x99] sm:$0xff] %vm726_vm0, %v705_v57  ;;  %v704_v63 = vsel %vm640_vm14, %v522_v49, %v672_v55  ;;  %v532_v3 = vadd.f32 %v4941_v35, %v531_v61  ;;  %v5016_v4 = vld [vmem:[#allocation2 + $0x62] sm:$0xff]  ;;  %v4003_v48 = vpack.i.bf16 %v5004_v54, %v4996_v50 }
 0x165   : > { %783 = vst.msk [vmem:[#allocation2 + $0x91] sm:$0xff] %vm726_vm0, %v704_v63  ;;  %vm643_vm15 = vcmp.gt.f32.partialorder %v537_v60, 0.0  ;;  %v675_v7 = vmul.f32 0.01, %v537_v60  ;;  %3674 = vmatprep.mubr.msk.f32.mxu0 %vm726_vm0, %v5016_v4  ;;  %v5079_v49 = vld [vmem:[#allocation2 + $0x69] sm:$0xff]  ;;  %v5087_v52 = vld [vmem:[#allocation2 + $0x61] sm:$0xff] }
 0x166   : > { %3964 = vrot.lane.b32.xlu1 %v3963_v0, %s4587_s21  ;;  %vm642_vm1 = vcmp.gt.f32.partialorder %v532_v3, 0.0  ;;  %v674_v10 = vmul.f32 0.01, %v532_v3  ;;  %3675 = vmatmul.mubr.msk.f32.gmra.mrb[36].mxu0 %vm726_vm0, %v5025_v8  ;;  %v3635_v11 = vpop.f32.mrb[14].mxu0 }
 0x167   : > { %v707_v12 = vsel %vm643_vm15, %v537_v60, %v675_v7  ;;  %v547_v14 = vadd.f32 %v3635_v11, %v4941_v35  ;;  %v541_v15 = vpop.f32.mrb[15].mxu0  ;;  %v5045_v23 = vld [vmem:[#allocation2 + $0x82] sm:$0xff]  ;;  %v4008_v60 = vpack.i.bf16 %v5048_v24, %v5079_v49 }
 0x168   : > { %3974 = vrot.lane.b32.xlu0 %v3973_v5, %s4586_s20  ;;  %786 = vst.msk [vmem:[#allocation2 + $0xb1] sm:$0xff] %vm726_vm0, %v707_v12  ;;  %v706_v18 = vsel %vm642_vm1, %v532_v3, %v674_v10  ;;  %v542_v19 = vadd.f32 %v4941_v35, %v541_v15  ;;  %v5038_v20 = vld [vmem:[#allocation2 + $0x7a] sm:$0xff]  ;;  %v4023_v3 = vpack.i.bf16 %v1000_v38, %v5087_v52  ;;  %v5106_v10 = vld [vmem:[#allocation2 + $0x68] sm:$0xff] }
 0x169   : > { %785 = vst.msk [vmem:[#allocation2 + $0xa9] sm:$0xff] %vm726_vm0, %v706_v18  ;;  %vm645_vm2 = vcmp.gt.f32.partialorder %v547_v14, 0.0  ;;  %v677_v22 = vmul.f32 0.01, %v547_v14  ;;  %3677 = vmatprep.mubr.msk.f32.mxu0 %vm726_vm0, %v5038_v20  ;;  %v4013_v18 = vpack.i.bf16 %v5021_v6, %v5025_v8  ;;  %v4028_v24 = vpack.i.bf16 %v4982_v37, %v5106_v10 }
 0x16a   : > { %3979 = vrot.lane.b32.xlu1 %v3978_v16, %s4587_s21  ;;  %vm644_vm3 = vcmp.gt.f32.partialorder %v542_v19, 0.0  ;;  %v676_v25 = vmul.f32 0.01, %v542_v19  ;;  %3678 = vmatmul.mubr.msk.f32.gmra.mrb[38].mxu0 %vm726_vm0, %v5045_v23  ;;  %v3638_v26 = vpop.f32.mrb[16].mxu0 }
 0x16b   : > { %v709_v27 = vsel %vm645_vm2, %v547_v14, %v677_v22  ;;  %v557_v1 = vadd.f32 %v3638_v26, %v4941_v35  ;;  %v551_v28 = vpop.f32.mrb[17].mxu0  ;;  %v5065_v40 = vld [vmem:[#allocation2 + $0x9a] sm:$0xff] }
 0x16c   : > { %3994 = vrot.lane.b32.xlu0 %v3993_v21, %s4587_s21  ;;  %788 = vst.msk [vmem:[#allocation2 + $0xc9] sm:$0xff] %vm726_vm0, %v709_v27  ;;  %v708_v31 = vsel %vm644_vm3, %v542_v19, %v676_v25  ;;  %v552_v33 = vadd.f32 %v4941_v35, %v551_v28  ;;  %v5058_v34 = vld [vmem:[#allocation2 + $0x92] sm:$0xff]  ;;  %v1002_v25 = vld [vmem:[#allocation2 + $0x60] sm:$0xff] }
 0x16d   : > { %787 = vst.msk [vmem:[#allocation2 + $0xc1] sm:$0xff] %vm726_vm0, %v708_v31  ;;  %vm647_vm4 = vcmp.gt.f32.partialorder %v557_v1, 0.0  ;;  %v679_v39 = vmul.f32 0.01, %v557_v1  ;;  %3680 = vmatprep.mubr.msk.f32.mxu0 %vm726_vm0, %v5058_v34  ;;  %v4018_v31 = vpack.i.bf16 %v4974_v32, %v1002_v25 }
 0x16e   : > { %3984 = vrot.lane.b32.xlu1 %v3983_v30, %s4586_s20  ;;  %vm646_vm5 = vcmp.gt.f32.partialorder %v552_v33, 0.0  ;;  %v678_v29 = vmul.f32 0.01, %v552_v33  ;;  %3681 = vmatmul.mubr.msk.f32.gmra.mrb[40].mxu0 %vm726_vm0, %v5065_v40  ;;  %v3641_v41 = vpop.f32.mrb[18].mxu0 }
 0x16f   : > { %v711_v13 = vsel %vm647_vm4, %v557_v1, %v679_v39  ;;  %v567_v42 = vadd.f32 %v3641_v41, %v4941_v35  ;;  %v561_v43 = vpop.f32.mrb[19].mxu0  ;;  %v5084_v17 = vld [vmem:[#allocation2 + $0xb2] sm:$0xff]  ;;  %v4033_v39 = vpack.i.bf16 %v5028_v9, %v5016_v4 }
 0x170   : > { %3999 = vrot.lane.b32.xlu0 %v3998_v36, %s4588_s18  ;;  %790 = vst.msk [vmem:[#allocation2 + $0xe1] sm:$0xff] %vm726_vm0, %v711_v13  ;;  %v710_v45 = vsel %vm646_vm5, %v552_v33, %v678_v29  ;;  %v562_v46 = vadd.f32 %v4941_v35, %v561_v43  ;;  %v5075_v47 = vld [vmem:[#allocation2 + $0xaa] sm:$0xff]  ;;  %v5137_v29 = vld [vmem:[#allocation2 + $0x81] sm:$0xff]  ;;  %v5145_v13 = vld [vmem:[#allocation2 + $0x79] sm:$0xff]  ;;  %vm1894_vm5 = vcmask 523264  }
 0x171   : > { %789 = vst.msk [vmem:[#allocation2 + $0xd9] sm:$0xff] %vm726_vm0, %v710_v45  ;;  %vm649_vm6 = vcmp.gt.f32.partialorder %v567_v42, 0.0  ;;  %v681_v51 = vmul.f32 0.01, %v567_v42  ;;  %3683 = vmatprep.mubr.msk.f32.mxu0 %vm726_vm0, %v5075_v47 }
 0x172   : > { %3989 = vrot.lane.b32.xlu1 %v3988_v44, %s4588_s18  ;;  %vm648_vm7 = vcmp.gt.f32.partialorder %v562_v46, 0.0  ;;  %v680_v55 = vmul.f32 0.01, %v562_v46  ;;  %3684 = vmatmul.mubr.msk.f32.gmra.mrb[42].mxu0 %vm726_vm0, %v5084_v17  ;;  %v3644_v54 = vpop.f32.mrb[20].mxu0 }
 0x173   : > { %v713_v56 = vsel %vm649_vm6, %v567_v42, %v681_v51  ;;  %v577_v57 = vadd.f32 %v3644_v54, %v4941_v35  ;;  %v571_v58 = vpop.f32.mrb[21].mxu0  ;;  %v5103_v7 = vld [vmem:[#allocation2 + $0xca] sm:$0xff]  ;;  %v4053_v54 = vpack.i.bf16 %v1002_v25, %v5145_v13  ;;  %vm1927_vm6 = vcmask 785408  }
 0x174   : > { %4004 = vrot.lane.b32.xlu0 %v4003_v48, %s4586_s20  ;;  %792 = vst.msk [vmem:[#allocation2 + $0xf9] sm:$0xff] %vm726_vm0, %v713_v56  ;;  %v712_v61 = vsel %vm648_vm7, %v562_v46, %v680_v55  ;;  %v572_v63 = vadd.f32 %v4941_v35, %v571_v58  ;;  %v5097_v0 = vld [vmem:[#allocation2 + $0xc2] sm:$0xff]  ;;  %v4038_v46 = vpack.i.bf16 %v5106_v10, %v5137_v29 }
 0x175   : > { %791 = vst.msk [vmem:[#allocation2 + $0xf1] sm:$0xff] %vm726_vm0, %v712_v61  ;;  %vm651_vm8 = vcmp.gt.f32.partialorder %v577_v57, 0.0  ;;  %v683_v5 = vmul.f32 0.01, %v577_v57  ;;  %3686 = vmatprep.mubr.msk.f32.mxu0 %vm726_vm0, %v5097_v0  ;;  %v1005_v58 = vld [vmem:[#allocation2 + $0x80] sm:$0xff]  ;;  %v4043_v10 = vpack.i.bf16 %v5079_v49, %v5045_v23 }
 0x176   : > { %4009 = vrot.lane.b32.xlu1 %v4008_v60, %s4587_s21  ;;  %vm650_vm9 = vcmp.gt.f32.partialorder %v572_v63, 0.0  ;;  %v682_v11 = vmul.f32 0.01, %v572_v63  ;;  %3687 = vmatmul.mubr.msk.f32.gmra.mrb[44].mxu0 %vm726_vm0, %v5103_v7  ;;  %v3647_v12 = vpop.f32.mrb[22].mxu0 }
 0x177   : > { %v715_v14 = vsel %vm651_vm8, %v577_v57, %v683_v5  ;;  %v587_v15 = vadd.f32 %v3647_v12, %v4941_v35  ;;  %v581_v16 = vpop.f32.mrb[23].mxu0  ;;  %v5123_v27 = vld [vmem:[#allocation2 + $0xe2] sm:$0xff] }
 0x178   : > { %4024 = vrot.lane.b32.xlu0 %v4023_v3, %s4587_s21  ;;  %794 = vst.msk [vmem:[#allocation2 + $0x111] sm:$0xff] %vm726_vm0, %v715_v14  ;;  %v714_v19 = vsel %vm650_vm9, %v572_v63, %v682_v11  ;;  %v582_v21 = vadd.f32 %v4941_v35, %v581_v16  ;;  %v5116_v22 = vld [vmem:[#allocation2 + $0xda] sm:$0xff] }
 0x179   : > { %793 = vst.msk [vmem:[#allocation2 + $0x109] sm:$0xff] %vm726_vm0, %v714_v19  ;;  %vm653_vm10 = vcmp.gt.f32.partialorder %v587_v15, 0.0  ;;  %v685_v26 = vmul.f32 0.01, %v587_v15  ;;  %3689 = vmatprep.mubr.msk.f32.mxu0 %vm726_vm0, %v5116_v22  ;;  %v1004_v16 = vld [vmem:[#allocation2 + $0x78] sm:$0xff] }
 0x17a   : > { %4014 = vrot.lane.b32.xlu1 %v4013_v18, %s4586_s20  ;;  %vm652_vm11 = vcmp.gt.f32.partialorder %v582_v21, 0.0  ;;  %v684_v6 = vmul.f32 0.01, %v582_v21  ;;  %3690 = vmatmul.mubr.msk.f32.gmra.mrb[46].mxu0 %vm726_vm0, %v5123_v27  ;;  %v3650_v1 = vpop.f32.mrb[24].mxu0 }
 0x17b   : > { %v717_v37 = vsel %vm653_vm10, %v587_v15, %v685_v26  ;;  %v597_v28 = vadd.f32 %v3650_v1, %v4941_v35  ;;  %v591_v30 = vpop.f32.mrb[25].mxu0  ;;  %v5142_v32 = vld [vmem:[#allocation2 + $0xfa] sm:$0xff]  ;;  %v4058_v15 = vpack.i.bf16 %v5002_v53, %v1005_v58  ;;  %v4048_v26 = vpack.i.bf16 %v4996_v50, %v1004_v16  ;;  %v1038_v50 = vld [vmem:[#allocation2 + $0x91] sm:$0xff] }
 0x17c   : > { %4029 = vrot.lane.b32.xlu0 %v4028_v24, %s4588_s18  ;;  %796 = vst.msk [vmem:[#allocation2 + $0x129] sm:$0xff] %vm726_vm0, %v717_v37  ;;  %v716_v33 = vsel %vm652_vm11, %v582_v21, %v684_v6  ;;  %v592_v36 = vadd.f32 %v4941_v35, %v591_v30  ;;  %v5133_v38 = vld [vmem:[#allocation2 + $0xf2] sm:$0xff] }
 0x17d   : > { %795 = vst.msk [vmem:[#allocation2 + $0x121] sm:$0xff] %vm726_vm0, %v716_v33  ;;  %vm655_vm12 = vcmp.gt.f32.partialorder %v597_v28, 0.0  ;;  %v687_v41 = vmul.f32 0.01, %v597_v28  ;;  %3692 = vmatprep.mubr.msk.f32.mxu0 %vm726_vm0, %v5133_v38  ;;  %v1039_v30 = vld [vmem:[#allocation2 + $0x99] sm:$0xff] }
 0x17e   : > { %4019 = vrot.lane.b32.xlu1 %v4018_v31, %s4588_s18  ;;  %vm654_vm13 = vcmp.gt.f32.partialorder %v592_v36, 0.0  ;;  %v686_v42 = vmul.f32 0.01, %v592_v36  ;;  %3693 = vmatmul.mubr.msk.f32.gmra.mrb[48].mxu0 %vm726_vm0, %v5142_v32  ;;  %v3653_v9 = vpop.f32.mrb[26].mxu0 }
 0x17f   : > { %v719_v43 = vsel %vm655_vm12, %v597_v28, %v687_v41  ;;  %v607_v44 = vadd.f32 %v3653_v9, %v4941_v35  ;;  %v601_v45 = vpop.f32.mrb[27].mxu0  ;;  %v5161_v57 = vld [vmem:[#allocation2 + $0x112] sm:$0xff]  ;;  %v4063_v28 = vpack.i.bf16 %v5087_v52, %v5038_v20  ;;  %v4083_v41 = vpack.i.bf16 %v1004_v16, %v1038_v50  ;;  %v1045_v16 = vld [vmem:[#allocation2 + $0xe1] sm:$0xff] }
 0x180   : > { %4034 = vrot.lane.b32.xlu0 %v4033_v39, %s4586_s20  ;;  %798 = vst.msk [vmem:[#allocation2 + $0x141] sm:$0xff] %vm726_vm0, %v719_v43  ;;  %v718_v48 = vsel %vm654_vm13, %v592_v36, %v686_v42  ;;  %v602_v51 = vadd.f32 %v4941_v35, %v601_v45  ;;  %v5155_v55 = vld [vmem:[#allocation2 + $0x10a] sm:$0xff]  ;;  %v4068_v36 = vpack.i.bf16 %v1005_v58, %v1039_v30  ;;  %v1007_v42 = vld [vmem:[#allocation2 + $0x98] sm:$0xff] }
 0x181   : > { %797 = vst.msk [vmem:[#allocation2 + $0x139] sm:$0xff] %vm726_vm0, %v718_v48  ;;  %vm657_vm14 = vcmp.gt.f32.partialorder %v607_v44, 0.0  ;;  %v689_v56 = vmul.f32 0.01, %v607_v44  ;;  %3695 = vmatprep.mubr.msk.f32.mxu0 %vm726_vm0, %v5155_v55  ;;  %v4073_v9 = vpack.i.bf16 %v5137_v29, %v5065_v40  ;;  %v4088_v43 = vpack.i.bf16 %v5025_v8, %v1007_v42  ;;  %v1041_v48 = vld [vmem:[#allocation2 + $0xb1] sm:$0xff]  ;;  %v1008_v58 = vld [vmem:[#allocation2 + $0xa8] sm:$0xff] }
 0x182   : > { %4039 = vrot.lane.b32.xlu1 %v4038_v46, %s4587_s21  ;;  %vm656_vm15 = vcmp.gt.f32.partialorder %v602_v51, 0.0  ;;  %v688_v60 = vmul.f32 0.01, %v602_v51  ;;  %3696 = vmatmul.mubr.msk.f32.gmra.mrb[50].mxu0 %vm726_vm0, %v5161_v57  ;;  %v3656_v61 = vpop.f32.mrb[28].mxu0  ;;  %v4093_v46 = vpack.i.bf16 %v5145_v13, %v5058_v34  ;;  %v1009_v8 = vld [vmem:[#allocation2 + $0xb0] sm:$0xff]  ;;  %v4108_v13 = vpack.i.bf16 %v5038_v20, %v1008_v58  ;;  %v1010_v20 = vld [vmem:[#allocation2 + $0xc0] sm:$0xff] }
 0x183   : > { %v721_v63 = vsel %vm657_vm14, %v607_v44, %v689_v56  ;;  %v617_v3 = vadd.f32 %v3656_v61, %v4941_v35  ;;  %v611_v5 = vpop.f32.mrb[29].mxu0  ;;  %v5178_v19 = vld [vmem:[#allocation2 + $0x12a] sm:$0xff]  ;;  %v4103_v56 = vpack.i.bf16 %v1039_v30, %v5084_v17 }
 0x184   : > { %4054 = vrot.lane.b32.xlu0 %v4053_v54, %s4587_s21  ;;  %800 = vst.msk [vmem:[#allocation2 + $0x159] sm:$0xff] %vm726_vm0, %v721_v63  ;;  %v720_v11 = vsel %vm656_vm15, %v602_v51, %v688_v60  ;;  %v612_v12 = vadd.f32 %v4941_v35, %v611_v5  ;;  %v5172_v14 = vld [vmem:[#allocation2 + $0x122] sm:$0xff]  ;;  %v1006_v44 = vld [vmem:[#allocation2 + $0x90] sm:$0xff]  ;;  %v4098_v54 = vpack.i.bf16 %v1007_v42, %v1041_v48 }
 0x185   : > { %799 = vst.msk [vmem:[#allocation2 + $0x151] sm:$0xff] %vm726_vm0, %v720_v11  ;;  %vm659_vm1 = vcmp.gt.f32.partialorder %v617_v3, 0.0  ;;  %v691_v18 = vmul.f32 0.01, %v617_v3  ;;  %3698 = vmatprep.mubr.msk.f32.mxu0 %vm726_vm0, %v5172_v14  ;;  %v4078_v45 = vpack.i.bf16 %v5016_v4, %v1006_v44  ;;  %v1040_v51 = vld [vmem:[#allocation2 + $0xa9] sm:$0xff]  ;;  %v4118_v4 = vpack.i.bf16 %v5045_v23, %v1009_v8  ;;  %v1042_v63 = vld [vmem:[#allocation2 + $0xc1] sm:$0xff] }
 0x186   : > { %4044 = vrot.lane.b32.xlu1 %v4043_v10, %s4586_s20  ;;  %vm658_vm2 = vcmp.gt.f32.partialorder %v612_v12, 0.0  ;;  %v690_v49 = vmul.f32 0.01, %v612_v12  ;;  %3699 = vmatmul.mubr.msk.f32.gmra.mrb[52].mxu0 %vm726_vm0, %v5178_v19  ;;  %v3659_v21 = vpop.f32.mrb[30].mxu0  ;;  %v4113_v29 = vpack.i.bf16 %v1006_v44, %v1040_v51  ;;  %v4123_v60 = vpack.i.bf16 %v1038_v50, %v5075_v47  ;;  %v1043_v61 = vld [vmem:[#allocation2 + $0xc9] sm:$0xff] }
 0x187   : > { %v723_v53 = vsel %vm659_vm1, %v617_v3, %v691_v18  ;;  %v627_v24 = vadd.f32 %v3659_v21, %v4941_v35  ;;  %v621_v25 = vpop.f32.mrb[31].mxu0  ;;  %v5195_v33 = vld [vmem:[#allocation2 + $0x142] sm:$0xff]  ;;  %v4128_v3 = vpack.i.bf16 %v1009_v8, %v1043_v61  ;;  %v4143_v5 = vpack.i.bf16 %v1008_v58, %v1042_v63  ;;  %v1044_v18 = vld [vmem:[#allocation2 + $0xd9] sm:$0xff] }
 0x188   : > { %4059 = vrot.lane.b32.xlu0 %v4058_v15, %s4588_s18  ;;  %802 = vst.msk [vmem:[#allocation2 + $0x171] sm:$0xff] %vm726_vm0, %v723_v53  ;;  %v722_v6 = vsel %vm658_vm2, %v612_v12, %v690_v49  ;;  %v622_v1 = vadd.f32 %v4941_v35, %v621_v25  ;;  %v5188_v37 = vld [vmem:[#allocation2 + $0x13a] sm:$0xff]  ;;  %v1011_v23 = vld [vmem:[#allocation2 + $0xc8] sm:$0xff]  ;;  %v4133_v10 = vpack.i.bf16 %v1041_v48, %v5103_v7 }
 0x189   : > { %801 = vst.msk [vmem:[#allocation2 + $0x169] sm:$0xff] %vm726_vm0, %v722_v6  ;;  %vm661_vm3 = vcmp.gt.f32.partialorder %v627_v24, 0.0  ;;  %v693_v31 = vmul.f32 0.01, %v627_v24  ;;  %3701 = vmatprep.mubr.msk.f32.mxu0 %vm726_vm0, %v5188_v37  ;;  %v4148_v11 = vpack.i.bf16 %v5065_v40, %v1011_v23  ;;  %v4138_v12 = vpack.i.bf16 %v5058_v34, %v1010_v20  ;;  %v1013_v40 = vld [vmem:[#allocation2 + $0xe0] sm:$0xff]  ;;  %v1012_v34 = vld [vmem:[#allocation2 + $0xd8] sm:$0xff] }
 0x18a   : > { %4049 = vrot.lane.b32.xlu1 %v4048_v26, %s4588_s18  ;;  %vm660_vm4 = vcmp.gt.f32.partialorder %v622_v1, 0.0  ;;  %v692_v35 = vmul.f32 0.01, %v622_v1  ;;  %3702 = vmatmul.mubr.msk.f32.gmra.mrb[54].mxu0 %vm726_vm0, %v5195_v33  ;;  %v4153_v15 = vpack.i.bf16 %v1040_v51, %v5097_v0  ;;  %v4158_v49 = vpack.i.bf16 %v1011_v23, %v1045_v16  ;;  %v1047_v6 = vld [vmem:[#allocation2 + $0xf9] sm:$0xff]  ;;  %v5271_v8 = vld [vmem:[#allocation2 + $0x121] sm:$0xff] }
 0x18b   : > { %v725_v52 = vsel %vm661_vm3, %v627_v24, %v693_v31  ;;  %v4173_v21 = vpack.i.bf16 %v1010_v20, %v1044_v18  ;;  %v4163_v53 = vpack.i.bf16 %v1043_v61, %v5123_v27  ;;  %v4178_v24 = vpack.i.bf16 %v5084_v17, %v1013_v40  ;;  %v1015_v17 = vld [vmem:[#allocation2 + $0xf8] sm:$0xff]  ;;  %v1019_v61 = vld [vmem:[#allocation2 + $0x128] sm:$0xff]  ;;  %v805_v23 = vld [vmem:[#allocation2] sm:$0xff] }
 0x18c   : > { %4064 = vrot.lane.b32.xlu0 %v4063_v28, %s4586_s20  ;;  %804 = vst.msk [vmem:[#allocation2 + $0x189] sm:$0xff] %vm726_vm0, %v725_v52  ;;  %v724_v39 = vsel %vm660_vm4, %v622_v1, %v692_v35  ;;  %v4168_v25 = vpack.i.bf16 %v5075_v47, %v1012_v34  ;;  %v4183_v26 = vpack.i.bf16 %v1042_v63, %v5116_v22  ;;  %v1046_v1 = vld [vmem:[#allocation2 + $0xf1] sm:$0xff] }
 0x18d   : > { %803 = vst.msk [vmem:[#allocation2 + $0x181] sm:$0xff] %vm726_vm0, %v724_v39  ;;  %v4188_v28 = vpack.i.bf16 %v1013_v40, %v1047_v6  ;;  %v4203_v30 = vpack.i.bf16 %v1012_v34, %v1046_v1  ;;  %v4193_v31 = vpack.i.bf16 %v1045_v16, %v5142_v32  ;;  %v4208_v50 = vpack.i.bf16 %v5103_v7, %v1015_v17  ;;  %v1014_v47 = vld [vmem:[#allocation2 + $0xf0] sm:$0xff]  ;;  %v1018_v34 = vld [vmem:[#allocation2 + $0x120] sm:$0xff] }
 0x18e   : > { %4069 = vrot.lane.b32.xlu1 %v4068_v36, %s4587_s21  ;;  %v4198_v35 = vpack.i.bf16 %v5097_v0, %v1014_v47  ;;  %v4213_v52 = vpack.i.bf16 %v1044_v18, %v5133_v38  ;;  %v1049_v36 = vld [vmem:[#allocation2 + $0x111] sm:$0xff]  ;;  %v5254_v39 = vld [vmem:[#allocation2 + $0x109] sm:$0xff]  ;;  %v4223_v0 = vpack.i.bf16 %v1047_v6, %v5161_v57 }
 0x18f   : > { %v4233_v42 = vpack.i.bf16 %v1014_v47, %v5254_v39  ;;  %v1017_v7 = vld [vmem:[#allocation2 + $0x110] sm:$0xff] }
 0x190   : > { %4084 = vrot.lane.b32.xlu0 %v4083_v41, %s4587_s21  ;;  %v4218_v41 = vpack.i.bf16 %v1015_v17, %v1049_v36  ;;  %v4238_v44 = vpack.i.bf16 %v5123_v27, %v1017_v7  ;;  %v4258_v17 = vpack.i.bf16 %v5133_v38, %v1018_v34 }
 0x192   : > { %4074 = vrot.lane.b32.xlu1 %v4073_v9, %s4586_s20 }
 0x194   : > { %4089 = vrot.lane.b32.xlu0 %v4088_v43, %s4588_s18 }
 0x196   : > { %4079 = vrot.lane.b32.xlu1 %v4078_v45, %s4588_s18  ;;  %v1016_v45 = vld [vmem:[#allocation2 + $0x108] sm:$0xff] }
 0x197   : > { %v4228_v48 = vpack.i.bf16 %v5116_v22, %v1016_v45  ;;  %v4263_v22 = vpack.i.bf16 %v1016_v45, %v5271_v8  ;;  %v1021_v45 = vld [vmem:[#allocation2 + $0x140] sm:$0xff] }
 0x198   : > { %4094 = vrot.lane.b32.xlu0 %v4093_v46, %s4586_s20 }
 0x19a   : > { %4099 = vrot.lane.b32.xlu1 %v4098_v54, %s4587_s21  ;;  %v4243_v54 = vpack.i.bf16 %v1046_v1, %v5155_v55 }
 0x19c   : > { %4114 = vrot.lane.b32.xlu0 %v4113_v29, %s4587_s21  ;;  %v5268_v29 = vld [vmem:[#allocation2 + $0x129] sm:$0xff] }
 0x19d   : > { %v4248_v58 = vpack.i.bf16 %v1017_v7, %v5268_v29 }
 0x19e   : > { %4104 = vrot.lane.b32.xlu1 %v4103_v56, %s4586_s20 }
 0x1a0   : > { %4119 = vrot.lane.b32.xlu0 %v4118_v4, %s4588_s18 }
 0x1a2   : > { %4109 = vrot.lane.b32.xlu1 %v4108_v13, %s4588_s18 }
 0x1a4   : > { %4124 = vrot.lane.b32.xlu0 %v4123_v60, %s4586_s20 }
 0x1a6   : > { %4129 = vrot.lane.b32.xlu1 %v4128_v3, %s4587_s21 }
 0x1a8   : > { %4144 = vrot.lane.b32.xlu0 %v4143_v5, %s4587_s21 }
 0x1aa   : > { %4134 = vrot.lane.b32.xlu1 %v4133_v10, %s4586_s20  ;;  %v4253_v10 = vpack.i.bf16 %v1049_v36, %v5178_v19  ;;  %v5304_v36 = vld [vmem:[#allocation2 + $0x141] sm:$0xff] }
 0x1ac   : > { %4149 = vrot.lane.b32.xlu0 %v4148_v11, %s4588_s18  ;;  %v934_v11 = vld [vmem:[#allocation2 + $0x21] sm:$0xff] }
 0x1ae   : > { %4139 = vrot.lane.b32.xlu1 %v4138_v12, %s4588_s18 }
 0x1b0   : > { %4154 = vrot.lane.b32.xlu0 %v4153_v15, %s4586_s20  ;;  %v4268_v15 = vpack.i.bf16 %v5142_v32, %v1019_v61 }
 0x1b2   : > { %4159 = vrot.lane.b32.xlu1 %v4158_v49, %s4587_s21 }
 0x1b4   : > { %4174 = vrot.lane.b32.xlu0 %v4173_v21, %s4587_s21 }
 0x1b6   : > { %4164 = vrot.lane.b32.xlu1 %v4163_v53, %s4586_s20 }
 0x1b8   : > { %4179 = vrot.lane.b32.xlu0 %v4178_v24, %s4588_s18 }
 0x1ba   : > { %4169 = vrot.lane.b32.xlu1 %v4168_v25, %s4588_s18  ;;  %v806_v25 = vld [vmem:[#allocation2 + $0x8] sm:$0xff] }
 0x1bc   : > { %4184 = vrot.lane.b32.xlu0 %v4183_v26, %s4586_s20 }
 0x1be   : > { %4189 = vrot.lane.b32.xlu1 %v4188_v28, %s4587_s21 }
 0x1c0   : > { %4204 = vrot.lane.b32.xlu0 %v4203_v30, %s4587_s21 }
 0x1c2   : > { %4194 = vrot.lane.b32.xlu1 %v4193_v31, %s4586_s20 }
 0x1c4   : > { %4209 = vrot.lane.b32.xlu0 %v4208_v50, %s4588_s18 }
 0x1c6   : > { %4199 = vrot.lane.b32.xlu1 %v4198_v35, %s4588_s18  ;;  %v4273_v35 = vpack.i.bf16 %v5254_v39, %v5172_v14  ;;  %v4278_v39 = vpack.i.bf16 %v1019_v61, %v5304_v36 }
 0x1c8   : > { %4214 = vrot.lane.b32.xlu0 %v4213_v52, %s4586_s20 }
 0x1ca   : > { %4219 = vrot.lane.b32.xlu1 %v4218_v41, %s4587_s21 }
 0x1cc   : > { %4234 = vrot.lane.b32.xlu0 %v4233_v42, %s4587_s21  ;;  %v3940_v9 = vpop.permute.xlu1 %3939  ;;  %v5308_v42 = vld [vmem:[#allocation2 + $0x139] sm:$0xff] }
 0x1cd   : > { %v3945_v43 = vpop.permute.xlu0 %3944  ;;  %v3941_v27 = vunpack.i.l.bf16 %v3940_v9  ;;  %v3942_v20 = vunpack.i.h.bf16 %v3940_v9 }
 0x1ce   : > { %4224 = vrot.lane.b32.xlu1 %v4223_v0, %s4586_s20  ;;  %v3946_v56 = vunpack.i.l.bf16 %v3945_v43  ;;  %v3947_v13 = vunpack.i.h.bf16 %v3945_v43 }
 0x1cf   : > { %v1961_v18 = vsel %vm726_vm0, %v934_v11, %v3941_v27  ;;  %v1863_v31 = vsel %vm726_vm0, %v806_v25, %v3942_v20  ;;  %v4298_v27 = vpack.i.bf16 %v5161_v57, %v1021_v45 }
 0x1d0   : > { %4239 = vrot.lane.b32.xlu0 %v4238_v44, %s4588_s18  ;;  %v5264_v46 = vpop.permute.xlu1 %3949  ;;  %v1960_v16 = vsel %vm726_vm0, %v5013_v2, %v3946_v56  ;;  %v1862_v24 = vsel %vm726_vm0, %v805_v23, %v3947_v13  ;;  %v4293_v44 = vpack.i.bf16 %v1018_v34, %v5308_v42  ;;  %v935_v56 = vld [vmem:[#allocation2 + $0x31] sm:$0xff] }
 0x1d1   : > { %v3951_v6 = vunpack.i.l.bf16 %v5264_v46  ;;  %v3952_v41 = vunpack.i.h.bf16 %v5264_v46 }
 0x1d2   : > { %v3960_v51 = vpop.permute.xlu0 %3959  ;;  %4229 = vrot.lane.b32.xlu1 %v4228_v48, %s4588_s18 }
 0x1d3   : > { %v3962_v63 = vunpack.i.h.bf16 %v3960_v51  ;;  %v3961_v3 = vunpack.i.l.bf16 %v3960_v51 }
 0x1d4   : > { %4244 = vrot.lane.b32.xlu0 %v4243_v54, %s4586_s20  ;;  %v5274_v4 = vpop.permute.xlu1 %3954  ;;  %v4283_v54 = vpack.i.bf16 %v5268_v29, %v5195_v33 }
 0x1d5   : > { %v1992_v26 = vsel %vm1894_vm5, %v1960_v16, %v3961_v3  ;;  %v1895_v32 = vsel %vm1894_vm5, %v1862_v24, %v3962_v63  ;;  %v3956_v9 = vunpack.i.l.bf16 %v5274_v4  ;;  %v3957_v48 = vunpack.i.h.bf16 %v5274_v4  ;;  %v1020_v63 = vld [vmem:[#allocation2 + $0x138] sm:$0xff] }
 0x1d6   : > { %v3970_v60 = vpop.permute.xlu0 %3969  ;;  %4249 = vrot.lane.b32.xlu1 %v4248_v58, %s4587_s21  ;;  %v936_v58 = vld [vmem:[#allocation2 + $0x39] sm:$0xff]  ;;  %v4288_v16 = vpack.i.bf16 %v5155_v55, %v1020_v63  ;;  %v5352_v55 = vld [vmem:[#allocation2 + $0x151] sm:$0xff] }
 0x1d7   : > { %v3971_v5 = vunpack.i.l.bf16 %v3970_v60  ;;  %v3972_v49 = vunpack.i.h.bf16 %v3970_v60  ;;  %v807_v3 = vld [vmem:[#allocation2 + $0x18] sm:$0xff] }
 0x1d8   : > { %4264 = vrot.lane.b32.xlu0 %v4263_v22, %s4587_s21  ;;  %v3965_v12 = vpop.permute.xlu1 %3964 }
 0x1d9   : > { %v3967_v21 = vunpack.i.h.bf16 %v3965_v12  ;;  %v3966_v40 = vunpack.i.l.bf16 %v3965_v12  ;;  %v1993_v2 = vsel %vm1894_vm5, %v1961_v18, %v3971_v5  ;;  %v1896_v52 = vsel %vm1894_vm5, %v1863_v31, %v3972_v49  ;;  %v808_v49 = vld [vmem:[#allocation2 + $0x20] sm:$0xff] }
 0x1da   : > { %v5285_v53 = vpop.permute.xlu0 %3974  ;;  %4254 = vrot.lane.b32.xlu1 %v4253_v10, %s4586_s20  ;;  %v2025_v47 = vsel %vm1927_vm6, %v1993_v2, %v3951_v6  ;;  %v1929_v7 = vsel %vm1927_vm6, %v1896_v52, %v3952_v41  ;;  %v1865_v24 = vsel %vm726_vm0, %v808_v49, %v3957_v48  ;;  %v5363_v31 = vld [vmem:[#allocation2 + $0x15a] sm:$0xff] }
 0x1db   : > { %v2024_v1 = vsel %vm1927_vm6, %v1992_v26, %v3966_v40  ;;  %v1928_v28 = vsel %vm1927_vm6, %v1895_v32, %v3967_v21  ;;  %v3976_v0 = vunpack.i.l.bf16 %v5285_v53  ;;  %v3977_v46 = vunpack.i.h.bf16 %v5285_v53  ;;  %v5346_v53 = vld [vmem:[#allocation2 + $0x159] sm:$0xff] }
 0x1dc   : > { %4269 = vrot.lane.b32.xlu0 %v4268_v15, %s4588_s18  ;;  %v5296_v30 = vpop.permute.xlu1 %3979  ;;  %2259 = vmatprep.mubr.f32.mxu1 %v2024_v1  ;;  %v4303_v40 = vpack.i.bf16 %v5271_v8, %v5188_v37  ;;  %v4308_v8 = vpack.i.bf16 %v1021_v45, %v5346_v53  ;;  %v4313_v41 = vpack.i.bf16 %v5304_v36, %v5363_v31 }
 0x1dd   : > { %2260 = vmatmul.mubr.f32.vlgmr.msra.gmra.mrb[0].mxu1 %v1928_v28  ;;  %v1962_v61 = vsel %vm726_vm0, %v935_v56, %v3976_v0  ;;  %v1864_v29 = vsel %vm726_vm0, %v807_v3, %v3977_v46  ;;  %v3981_v20 = vunpack.i.l.bf16 %v5296_v30  ;;  %v3982_v26 = vunpack.i.h.bf16 %v5296_v30  ;;  %v1022_v46 = vld [vmem:[#allocation2 + $0x150] sm:$0xff]  ;;  %v810_v3 = vld [vmem:[#allocation2 + $0x38] sm:$0xff] }
 0x1de   : > { %v3995_v50 = vpop.permute.xlu0 %3994  ;;  %2264 = vmatprep.mubr.f32.mxu1 %v2025_v47  ;;  %4259 = vrot.lane.b32.xlu1 %v4258_v17, %s4588_s18  ;;  %v4323_v17 = vpack.i.bf16 %v1020_v63, %v5352_v55 }
 0x1df   : > { %3870 = vmatpush3.bf16.msra.mxu1 %v4918_v59  ;;  %v3997_v5 = vunpack.i.h.bf16 %v3995_v50  ;;  %v3996_v4 = vunpack.i.l.bf16 %v3995_v50  ;;  %v1023_v50 = vld [vmem:[#allocation2 + $0x158] sm:$0xff] }
 0x1e0   : > { %4274 = vrot.lane.b32.xlu0 %v4273_v35, %s4586_s20  ;;  %v5312_v38 = vpop.permute.xlu1 %3984  ;;  %3869 = vmatprep.subr.bf16.mxu1 %v4922_v62 }
 0x1e1   : > { %2265 = vmatmul.mubr.f32.gmra.mrb[2].mxu1 %v1929_v7  ;;  %v3986_v2 = vunpack.i.l.bf16 %v5312_v38  ;;  %v3987_v35 = vunpack.i.h.bf16 %v5312_v38  ;;  %v4328_v7 = vpack.i.bf16 %v5178_v19, %v1023_v50  ;;  %v5378_v19 = vld [vmem:[#allocation2 + $0x152] sm:$0xff] }
 0x1e2   : > { %v4000_v43 = vpop.permute.xlu0 %3999  ;;  %4279 = vrot.lane.b32.xlu1 %v4278_v39, %s4587_s21  ;;  %v937_v39 = vld [vmem:[#allocation2 + $0x49] sm:$0xff] }
 0x1e3   : > { %v4001_v59 = vunpack.i.l.bf16 %v4000_v43  ;;  %3871 = vmatpush3.bf16.msra.mxu1 %v4922_v62  ;;  %v1963_v62 = vsel %vm726_vm0, %v936_v58, %v3956_v9  ;;  %v4002_v23 = vunpack.i.h.bf16 %v4000_v43  ;;  %v938_v9 = vld [vmem:[#allocation2 + $0x51] sm:$0xff] }
 0x1e4   : > { %4294 = vrot.lane.b32.xlu0 %v4293_v44, %s4587_s21  ;;  %v3990_v51 = vpop.permute.xlu1 %3989  ;;  %v1965_v48 = vsel %vm726_vm0, %v938_v9, %v3986_v2  ;;  %v939_v2 = vld [vmem:[#allocation2 + $0x61] sm:$0xff] }
 0x1e5   : > { %v3992_v13 = vunpack.i.h.bf16 %v3990_v51  ;;  %v3991_v60 = vunpack.i.l.bf16 %v3990_v51  ;;  %v1995_v11 = vsel %vm1894_vm5, %v1963_v62, %v4001_v59  ;;  %v1898_v25 = vsel %vm1894_vm5, %v1865_v24, %v4002_v23  ;;  %v809_v59 = vld [vmem:[#allocation2 + $0x30] sm:$0xff] }
 0x1e6   : > { %v5328_v22 = vpop.permute.xlu0 %4004  ;;  %4284 = vrot.lane.b32.xlu1 %v4283_v54, %s4586_s20  ;;  %v2027_v34 = vsel %vm1927_vm6, %v1995_v11, %v3981_v20  ;;  %v1931_v28 = vsel %vm1927_vm6, %v1898_v25, %v3982_v26  ;;  %v1867_v23 = vsel %vm726_vm0, %v810_v3, %v3987_v35 }
 0x1e7   : > { %v1994_v57 = vsel %vm1894_vm5, %v1962_v61, %v3991_v60  ;;  %v1897_v10 = vsel %vm1894_vm5, %v1864_v29, %v3992_v13  ;;  %v4006_v6 = vunpack.i.l.bf16 %v5328_v22  ;;  %v4007_v30 = vunpack.i.h.bf16 %v5328_v22 }
 0x1e8   : > { %4299 = vrot.lane.b32.xlu0 %v4298_v27, %s4588_s18  ;;  %v5339_v12 = vpop.permute.xlu1 %4009  ;;  %v2026_v15 = vsel %vm1927_vm6, %v1994_v57, %v3996_v4  ;;  %v1930_v18 = vsel %vm1927_vm6, %v1897_v10, %v3997_v5  ;;  %v4318_v61 = vpack.i.bf16 %v5172_v14, %v1022_v46  ;;  %v4333_v5 = vpack.i.bf16 %v5308_v42, %v5378_v19  ;;  %v5392_v4 = vld [vmem:[#allocation2 + $0x171] sm:$0xff]  ;;  %v5398_v14 = vld [vmem:[#allocation2 + $0x169] sm:$0xff] }
 0x1e9   : > { %2269 = vmatprep.mubr.f32.mxu1 %v2026_v15  ;;  %v1964_v45 = vsel %vm726_vm0, %v937_v39, %v4006_v6  ;;  %v1866_v36 = vsel %vm726_vm0, %v809_v59, %v4007_v30  ;;  %v4011_v13 = vunpack.i.l.bf16 %v5339_v12  ;;  %v4012_v10 = vunpack.i.h.bf16 %v5339_v12  ;;  %v940_v6 = vld [vmem:[#allocation2 + $0x69] sm:$0xff]  ;;  %v5421_v30 = vld [vmem:[#allocation2 + $0x172] sm:$0xff] }
 0x1ea   : > { %v4025_v21 = vpop.permute.xlu0 %4024  ;;  %4289 = vrot.lane.b32.xlu1 %v4288_v16, %s4588_s18  ;;  %2270 = vmatmul.mubr.f32.gmra.mrb[4].mxu1 %v1930_v18  ;;  %v4338_v42 = vpack.i.bf16 %v1023_v50, %v5392_v4  ;;  %v4353_v49 = vpack.i.bf16 %v1022_v46, %v5398_v14  ;;  %v812_v59 = vld [vmem:[#allocation2 + $0x50] sm:$0xff] }
 0x1eb   : > { %2274 = vmatprep.mubr.f32.mxu1 %v2027_v34  ;;  %v4027_v51 = vunpack.i.h.bf16 %v4025_v21  ;;  %v4026_v38 = vunpack.i.l.bf16 %v4025_v21  ;;  %v1024_v21 = vld [vmem:[#allocation2 + $0x168] sm:$0xff] }
 0x1ec   : > { %4304 = vrot.lane.b32.xlu0 %v4303_v40, %s4586_s20  ;;  %v5356_v32 = vpop.permute.xlu1 %4014  ;;  %v5409_v40 = vld [vmem:[#allocation2 + $0x170] sm:$0xff]  ;;  %v4343_v26 = vpack.i.bf16 %v5188_v37, %v1024_v21 }
 0x1ed   : > { %v4016_v20 = vunpack.i.l.bf16 %v5356_v32  ;;  %v4017_v34 = vunpack.i.h.bf16 %v5356_v32 }
 0x1ee   : > { %v4030_v1 = vpop.permute.xlu0 %4029  ;;  %4309 = vrot.lane.b32.xlu1 %v4308_v8, %s4587_s21  ;;  %2275 = vmatmul.mubr.f32.gmra.mrb[6].mxu1 %v1931_v28  ;;  %v4358_v8 = vpack.i.bf16 %v5195_v33, %v5409_v40  ;;  %v5426_v33 = vld [vmem:[#allocation2 + $0x16a] sm:$0xff] }
 0x1ef   : > { %v4031_v47 = vunpack.i.l.bf16 %v4030_v1  ;;  %v4032_v54 = vunpack.i.h.bf16 %v4030_v1  ;;  %v1967_v35 = vsel %vm726_vm0, %v940_v6, %v4016_v20  ;;  %v942_v20 = vld [vmem:[#allocation2 + $0x81] sm:$0xff] }
 0x1f0   : > { %4324 = vrot.lane.b32.xlu0 %v4323_v17, %s4587_s21  ;;  %v4020_v52 = vpop.permute.xlu1 %4019 }
 0x1f1   : > { %v4022_v0 = vunpack.i.h.bf16 %v4020_v52  ;;  %v4021_v43 = vunpack.i.l.bf16 %v4020_v52  ;;  %v1997_v58 = vsel %vm1894_vm5, %v1965_v48, %v4031_v47  ;;  %v1900_v57 = vsel %vm1894_vm5, %v1867_v23, %v4032_v54  ;;  %v811_v47 = vld [vmem:[#allocation2 + $0x48] sm:$0xff] }
 0x1f2   : > { %v5372_v44 = vpop.permute.xlu0 %4034  ;;  %4314 = vrot.lane.b32.xlu1 %v4313_v41, %s4586_s20  ;;  %v2029_v29 = vsel %vm1927_vm6, %v1997_v58, %v4011_v13  ;;  %v1933_v18 = vsel %vm1927_vm6, %v1900_v57, %v4012_v10  ;;  %v1869_v54 = vsel %vm726_vm0, %v812_v59, %v4017_v34 }
 0x1f3   : > { %v1996_v27 = vsel %vm1894_vm5, %v1964_v45, %v4021_v43  ;;  %v1899_v56 = vsel %vm1894_vm5, %v1866_v36, %v4022_v0  ;;  %v4036_v15 = vunpack.i.l.bf16 %v5372_v44  ;;  %v4037_v12 = vunpack.i.h.bf16 %v5372_v44 }
 0x1f4   : > { %4329 = vrot.lane.b32.xlu0 %v4328_v7, %s4588_s18  ;;  %v5385_v60 = vpop.permute.xlu1 %4039  ;;  %v2028_v22 = vsel %vm1927_vm6, %v1996_v27, %v4026_v38  ;;  %v1932_v63 = vsel %vm1927_vm6, %v1899_v56, %v4027_v51  ;;  %v4348_v45 = vpack.i.bf16 %v5346_v53, %v5421_v30  ;;  %v4363_v51 = vpack.i.bf16 %v5352_v55, %v5426_v33  ;;  %v5441_v38 = vld [vmem:[#allocation2 + $0x180] sm:$0xff] }
 0x1f5   : > { %2279 = vmatprep.mubr.f32.mxu1 %v2028_v22  ;;  %v1966_v50 = vsel %vm726_vm0, %v939_v2, %v4036_v15  ;;  %v1868_v37 = vsel %vm726_vm0, %v811_v47, %v4037_v12  ;;  %v4041_v0 = vunpack.i.l.bf16 %v5385_v60  ;;  %v5447_v53 = vld [vmem:[#allocation2 + $0x181] sm:$0xff]  ;;  %v4042_v56 = vunpack.i.h.bf16 %v5385_v60 }
 0x1f6   : > { %v4055_v62 = vpop.permute.xlu0 %4054  ;;  %4319 = vrot.lane.b32.xlu1 %v4318_v61, %s4588_s18  ;;  %2280 = vmatmul.mubr.f32.gmra.mrb[8].mxu1 %v1932_v63  ;;  %v4368_v55 = vpack.i.bf16 %v5378_v19, %v5441_v38  ;;  %v4388_v3 = vpack.i.bf16 %v1024_v21, %v5447_v53  ;;  %v5461_v60 = vld [vmem:[#allocation2 + $0x188] sm:$0xff]  ;;  %v1028_v21 = vld [vmem:[#allocation2 + $0x198] sm:$0xff]  ;;  %v813_v12 = vld [vmem:[#allocation2 + $0x60] sm:$0xff] }
 0x1f7   : > { %2284 = vmatprep.mubr.f32.mxu1 %v2029_v29  ;;  %v4057_v32 = vunpack.i.h.bf16 %v4055_v62  ;;  %v4056_v52 = vunpack.i.l.bf16 %v4055_v62  ;;  %v5459_v62 = vld [vmem:[#allocation2 + $0x189] sm:$0xff]  ;;  %v4393_v10 = vpack.i.bf16 %v5363_v31, %v5461_v60 }
 0x1f8   : > { %4334 = vrot.lane.b32.xlu0 %v4333_v5, %s4586_s20  ;;  %v5402_v11 = vpop.permute.xlu1 %4044  ;;  %v4373_v57 = vpack.i.bf16 %v5409_v40, %v5459_v62  ;;  %v5477_v31 = vld [vmem:[#allocation2 + $0x182] sm:$0xff] }
 0x1f9   : > { %v4046_v13 = vunpack.i.l.bf16 %v5402_v11  ;;  %v4047_v19 = vunpack.i.h.bf16 %v5402_v11  ;;  %v814_v47 = vld [vmem:[#allocation2 + $0x68] sm:$0xff] }
 0x1fa   : > { %v4060_v16 = vpop.permute.xlu0 %4059  ;;  %4339 = vrot.lane.b32.xlu1 %v4338_v42, %s4587_s21  ;;  %2285 = vmatmul.mubr.f32.gmra.mrb[10].mxu1 %v1933_v18  ;;  %v941_v42 = vld [vmem:[#allocation2 + $0x79] sm:$0xff] }
 0x1fb   : > { %v4061_v24 = vunpack.i.l.bf16 %v4060_v16  ;;  %v4062_v41 = vunpack.i.h.bf16 %v4060_v16 }
 0x1fc   : > { %4354 = vrot.lane.b32.xlu0 %v4353_v49, %s4587_s21  ;;  %v4050_v25 = vpop.permute.xlu1 %4049 }
 0x1fd   : > { %v4052_v1 = vunpack.i.h.bf16 %v4050_v25  ;;  %v4051_v28 = vunpack.i.l.bf16 %v4050_v25  ;;  %v1999_v9 = vsel %vm1894_vm5, %v1967_v35, %v4061_v24  ;;  %v1902_v27 = vsel %vm1894_vm5, %v1869_v54, %v4062_v41  ;;  %v1029_v54 = vld [vmem:[#allocation2 + $0x1a0] sm:$0xff] }
 0x1fe   : > { %v5418_v17 = vpop.permute.xlu0 %4064  ;;  %4344 = vrot.lane.b32.xlu1 %v4343_v26, %s4588_s18  ;;  %v2031_v36 = vsel %vm1927_vm6, %v1999_v9, %v4041_v0  ;;  %v1935_v63 = vsel %vm1927_vm6, %v1902_v27, %v4042_v56  ;;  %v1969_v24 = vsel %vm726_vm0, %v942_v20, %v4046_v13  ;;  %v1871_v41 = vsel %vm726_vm0, %v814_v47, %v4047_v19  ;;  %v943_v13 = vld [vmem:[#allocation2 + $0x91] sm:$0xff] }
 0x1ff   : > { %v1998_v7 = vsel %vm1894_vm5, %v1966_v50, %v4051_v28  ;;  %v1901_v39 = vsel %vm1894_vm5, %v1868_v37, %v4052_v1  ;;  %v4066_v22 = vunpack.i.l.bf16 %v5418_v17  ;;  %v4067_v5 = vunpack.i.h.bf16 %v5418_v17  ;;  %v946_v47 = vld [vmem:[#allocation2 + $0xb1] sm:$0xff] }
 0x200   : > { %4359 = vrot.lane.b32.xlu0 %v4358_v8, %s4588_s18  ;;  %v5433_v43 = vpop.permute.xlu1 %4069  ;;  %v2030_v44 = vsel %vm1927_vm6, %v1998_v7, %v4056_v52  ;;  %v1934_v46 = vsel %vm1927_vm6, %v1901_v39, %v4057_v32  ;;  %v4378_v17 = vpack.i.bf16 %v5426_v33, %v1028_v21  ;;  %v4398_v32 = vpack.i.bf16 %v5398_v14, %v5477_v31  ;;  %v5491_v52 = vld [vmem:[#allocation2 + $0x18a] sm:$0xff]  ;;  %v1060_v33 = vld [vmem:[#allocation2 + $0x199] sm:$0xff] }
 0x201   : > { %2289 = vmatprep.mubr.f32.mxu1 %v2030_v44  ;;  %v1968_v49 = vsel %vm726_vm0, %v941_v42, %v4066_v22  ;;  %v1870_v40 = vsel %vm726_vm0, %v813_v12, %v4067_v5  ;;  %v4071_v6 = vunpack.i.l.bf16 %v5433_v43  ;;  %v4072_v39 = vunpack.i.h.bf16 %v5433_v43  ;;  %v944_v22 = vld [vmem:[#allocation2 + $0x99] sm:$0xff] }
 0x202   : > { %v4085_v48 = vpop.permute.xlu0 %4084  ;;  %4349 = vrot.lane.b32.xlu1 %v4348_v45, %s4586_s20  ;;  %2290 = vmatmul.mubr.f32.gmra.mrb[12].mxu1 %v1934_v46  ;;  %v4383_v0 = vpack.i.bf16 %v5392_v4, %v5491_v52  ;;  %v815_v5 = vld [vmem:[#allocation2 + $0x78] sm:$0xff] }
 0x203   : > { %2294 = vmatprep.mubr.f32.mxu1 %v2031_v36  ;;  %v4087_v11 = vunpack.i.h.bf16 %v4085_v48  ;;  %v4086_v34 = vunpack.i.l.bf16 %v4085_v48  ;;  %v4403_v48 = vpack.i.bf16 %v5441_v38, %v1060_v33 }
 0x204   : > { %4364 = vrot.lane.b32.xlu0 %v4363_v51, %s4586_s20  ;;  %v5451_v58 = vpop.permute.xlu1 %4074  ;;  %v1061_v51 = vld [vmem:[#allocation2 + $0x1a1] sm:$0xff] }
 0x205   : > { %v4076_v44 = vunpack.i.l.bf16 %v5451_v58  ;;  %v4077_v4 = vunpack.i.h.bf16 %v5451_v58  ;;  %v4413_v56 = vpack.i.bf16 %v5461_v60, %v1061_v51 }
 0x206   : > { %v4090_v61 = vpop.permute.xlu0 %4089  ;;  %4369 = vrot.lane.b32.xlu1 %v4368_v55, %s4588_s18  ;;  %2295 = vmatmul.mubr.f32.gmra.mrb[14].mxu1 %v1935_v63  ;;  %v4408_v55 = vpack.i.bf16 %v5421_v30, %v1029_v54 }
 0x207   : > { %v4091_v23 = vunpack.i.l.bf16 %v4090_v61  ;;  %v4092_v25 = vunpack.i.h.bf16 %v4090_v61 }
 0x208   : > { %4389 = vrot.lane.b32.xlu0 %v4388_v3, %s4587_s21  ;;  %v4080_v29 = vpop.permute.xlu1 %4079 }
 0x209   : > { %v4082_v15 = vunpack.i.h.bf16 %v4080_v29  ;;  %v4081_v16 = vunpack.i.l.bf16 %v4080_v29  ;;  %v2001_v2 = vsel %vm1894_vm5, %v1969_v24, %v4091_v23  ;;  %v1904_v7 = vsel %vm1894_vm5, %v1871_v41, %v4092_v25 }
 0x20a   : > { %v5471_v18 = vpop.permute.xlu0 %4094  ;;  %4374 = vrot.lane.b32.xlu1 %v4373_v57, %s4587_s21  ;;  %v2033_v37 = vsel %vm1927_vm6, %v2001_v2, %v4071_v6  ;;  %v1937_v59 = vsel %vm1927_vm6, %v1904_v7, %v4072_v39  ;;  %v1971_v23 = vsel %vm726_vm0, %v944_v22, %v4076_v44 }
 0x20b   : > { %v2000_v26 = vsel %vm1894_vm5, %v1968_v49, %v4081_v16  ;;  %v1903_v8 = vsel %vm1894_vm5, %v1870_v40, %v4082_v15  ;;  %v4096_v45 = vunpack.i.l.bf16 %v5471_v18  ;;  %v4097_v43 = vunpack.i.h.bf16 %v5471_v18  ;;  %v816_v18 = vld [vmem:[#allocation2 + $0x80] sm:$0xff] }
 0x20c   : > { %4394 = vrot.lane.b32.xlu0 %v4393_v10, %s4588_s18  ;;  %v5484_v1 = vpop.permute.xlu1 %4099  ;;  %v2032_v28 = vsel %vm1927_vm6, %v2000_v26, %v4086_v34  ;;  %v1936_v50 = vsel %vm1927_vm6, %v1903_v8, %v4087_v11  ;;  %v1873_v21 = vsel %vm726_vm0, %v816_v18, %v4077_v4 }
 0x20d   : > { %2299 = vmatprep.mubr.f32.mxu1 %v2032_v28  ;;  %v1970_v3 = vsel %vm726_vm0, %v943_v13, %v4096_v45  ;;  %v1872_v58 = vsel %vm726_vm0, %v815_v5, %v4097_v43  ;;  %v4101_v42 = vunpack.i.l.bf16 %v5484_v1  ;;  %v4102_v11 = vunpack.i.h.bf16 %v5484_v1  ;;  %v818_v43 = vld [vmem:[#allocation2 + $0x98] sm:$0xff] }
 0x20e   : > { %v4115_v35 = vpop.permute.xlu0 %4114  ;;  %4379 = vrot.lane.b32.xlu1 %v4378_v17, %s4588_s18  ;;  %2300 = vmatmul.mubr.f32.gmra.mrb[16].mxu1 %v1936_v50  ;;  %v945_v50 = vld [vmem:[#allocation2 + $0xa9] sm:$0xff] }
 0x20f   : > { %2304 = vmatprep.mubr.f32.mxu1 %v2033_v37  ;;  %v4117_v19 = vunpack.i.h.bf16 %v4115_v35  ;;  %v4116_v29 = vunpack.i.l.bf16 %v4115_v35  ;;  %v817_v37 = vld [vmem:[#allocation2 + $0x90] sm:$0xff] }
 0x210   : > { %4399 = vrot.lane.b32.xlu0 %v4398_v32, %s4586_s20  ;;  %v5499_v9 = vpop.permute.xlu1 %4104 }
 0x211   : > { %v4106_v25 = vunpack.i.l.bf16 %v5499_v9  ;;  %v4107_v28 = vunpack.i.h.bf16 %v5499_v9 }
 0x212   : > { %v4120_v46 = vpop.permute.xlu0 %4119  ;;  %4384 = vrot.lane.b32.xlu1 %v4383_v0, %s4586_s20  ;;  %2305 = vmatmul.mubr.f32.gmra.mrb[18].mxu1 %v1937_v59  ;;  %s4589_s20 = smov [#allocation8]  }
 0x213   : > { %v4121_v36 = vunpack.i.l.bf16 %v4120_v46  ;;  %v4122_v57 = vunpack.i.h.bf16 %v4120_v46  ;;  %v1973_v7 = vsel %vm726_vm0, %v946_v47, %v4106_v25  ;;  %v1875_v4 = vsel %vm726_vm0, %v818_v43, %v4107_v28 }
 0x214   : > { %4404 = vrot.lane.b32.xlu0 %v4403_v48, %s4587_s21  ;;  %v4110_v27 = vpop.permute.xlu1 %4109 }
 0x215   : > { %v4112_v38 = vunpack.i.h.bf16 %v4110_v27  ;;  %v4111_v61 = vunpack.i.l.bf16 %v4110_v27  ;;  %v2003_v10 = vsel %vm1894_vm5, %v1971_v23, %v4121_v36  ;;  %v1906_v24 = vsel %vm1894_vm5, %v1873_v21, %v4122_v57  ;;  %v948_v57 = vld [vmem:[#allocation2 + $0xc9] sm:$0xff] }
 0x216   : > { %v4125_v63 = vpop.permute.xlu0 %4124  ;;  %4414 = vrot.lane.b32.xlu1 %v4413_v56, %s4587_s21  ;;  %v2035_v12 = vsel %vm1927_vm6, %v2003_v10, %v4101_v42  ;;  %v1939_v8 = vsel %vm1927_vm6, %v1906_v24, %v4102_v11  ;;  %v819_v42 = vld [vmem:[#allocation2 + $0xa8] sm:$0xff]  ;;  %s4512_s21 = sshll.u32 %s4589_s20, 4  ;;  %s4513_s21 = int_to_ptr.vmem [resolvable:$false] %s4512_s21 }
 0x217   : > { %v2002_v30 = vsel %vm1894_vm5, %v1970_v3, %v4111_v61  ;;  %v1905_v60 = vsel %vm1894_vm5, %v1872_v58, %v4112_v38  ;;  %v4126_v40 = vunpack.i.l.bf16 %v4125_v63  ;;  %v4127_v2 = vunpack.i.h.bf16 %v4125_v63  ;;  %p4515_p10 = scmp.lt.s32.totalorder %s5966_s11, %s4513_s21 }
 0x218   : > { %4409 = vrot.lane.b32.xlu0 %v4408_v55, %s4588_s18  ;;  %v4130_v20 = vpop.permute.xlu1 %4129  ;;  %v2034_v15 = vsel %vm1927_vm6, %v2002_v30, %v4116_v29  ;;  %v1938_v16 = vsel %vm1927_vm6, %v1905_v60, %v4117_v19  ;;  %v947_v29 = vld [vmem:[#allocation2 + $0xc1] sm:$0xff]  ;;  %s4514_s18 = scalar_lea.vmem %s4513_s21, 8192 }
 0x219   : > { %2309 = vmatprep.mubr.f32.mxu1 %v2034_v15  ;;  %v1972_v41 = vsel %vm726_vm0, %v945_v50, %v4126_v40  ;;  %v1874_v44 = vsel %vm726_vm0, %v817_v37, %v4127_v2  ;;  %v4131_v59 = vunpack.i.l.bf16 %v4130_v20  ;;  %v4132_v55 = vunpack.i.h.bf16 %v4130_v20  ;;  %p4516_p13 = scmp.lt.s32.totalorder %s4514_s18, %s4508_s13 }
 0x21a   : > { %v4145_v49 = vpop.permute.xlu0 %4144  ;;  %2310 = vmatmul.mubr.f32.gmra.mrb[20].mxu1 %v1938_v16 }
 0x21b   : > { %2314 = vmatprep.mubr.f32.mxu1 %v2035_v12  ;;  %v4147_v33 = vunpack.i.h.bf16 %v4145_v49  ;;  %v4146_v39 = vunpack.i.l.bf16 %v4145_v49  ;;  %p4517_p3 = por %p4516_p13, %p4515_p10 }
 0x21c   : > { %v5528_v34 = vpop.permute.xlu1 %4134 }
 0x21d   : > { %v4136_v22 = vunpack.i.l.bf16 %v5528_v34  ;;  %v4137_v23 = vunpack.i.h.bf16 %v5528_v34  ;;  %p4518_p7 = pnand %p4517_p3, %p4511_p8 }
 0x21e   : > { %v4150_v26 = vpop.permute.xlu0 %4149  ;;  %2315 = vmatmul.mubr.f32.gmra.mrb[22].mxu1 %v1939_v8 }
 0x21f   : > { %v4151_v6 = vunpack.i.l.bf16 %v4150_v26  ;;  %v4152_v0 = vunpack.i.h.bf16 %v4150_v26  ;;  %v1975_v20 = vsel %vm726_vm0, %v948_v57, %v4136_v22  ;;  %v820_v26 = vld [vmem:[#allocation2 + $0xb0] sm:$0xff] }
 0x220   : > { %v4140_v17 = vpop.permute.xlu1 %4139 }
 0x221   : > { %v4142_v35 = vunpack.i.h.bf16 %v4140_v17  ;;  %v4141_v32 = vunpack.i.l.bf16 %v4140_v17  ;;  %v2005_v46 = vsel %vm1894_vm5, %v1973_v7, %v4151_v6  ;;  %v1908_v56 = vsel %vm1894_vm5, %v1875_v4, %v4152_v0  ;;  %v2741_v0 = vld [vmem:[%s6023_s5] sm:$0xff] }
 0x222   : > { %v4155_v1 = vpop.permute.xlu0 %4154  ;;  %v2037_v27 = vsel %vm1927_vm6, %v2005_v46, %v4131_v59  ;;  %v1941_v63 = vsel %vm1927_vm6, %v1908_v56, %v4132_v55  ;;  %v1877_v6 = vsel %vm726_vm0, %v820_v26, %v4137_v23 }
 0x223   : > { %v2004_v45 = vsel %vm1894_vm5, %v1972_v41, %v4141_v32  ;;  %v1907_v9 = vsel %vm1894_vm5, %v1874_v44, %v4142_v35  ;;  %v4156_v38 = vunpack.i.l.bf16 %v4155_v1  ;;  %v4157_v3 = vunpack.i.h.bf16 %v4155_v1  ;;  %v2742_v44 = vld [vmem:[%s6023_s5 + $0x8] sm:$0xff] }
 0x224   : > { %v4160_v48 = vpop.permute.xlu1 %4159  ;;  %v2036_v51 = vsel %vm1927_vm6, %v2004_v45, %v4146_v39  ;;  %v1940_v54 = vsel %vm1927_vm6, %v1907_v9, %v4147_v33  ;;  %v3860_v9 = vpack.c.bf16 %v2742_v44, %v2741_v0  ;;  %v823_v44 = vld [vmem:[#allocation2 + $0xd8] sm:$0xff] }
 0x225   : > { %2319 = vmatprep.mubr.f32.mxu1 %v2036_v51  ;;  %v1974_v10 = vsel %vm726_vm0, %v947_v29, %v4156_v38  ;;  %v1876_v49 = vsel %vm726_vm0, %v819_v42, %v4157_v3  ;;  %v4161_v11 = vunpack.i.l.bf16 %v4160_v48  ;;  %v4162_v47 = vunpack.i.h.bf16 %v4160_v48  ;;  %v949_v48 = vld [vmem:[#allocation2 + $0xd9] sm:$0xff]  ;;  %v950_v51 = vld [vmem:[#allocation2 + $0xe1] sm:$0xff]  ;;  %v2743_v3 = vld [vmem:[%s6023_s5 + $0x10] sm:$0xff] }
 0x226   : > { %v4175_v36 = vpop.permute.xlu0 %4174  ;;  %2320 = vmatmul.mubr.f32.gmra.mrb[24].mxu1 %v1940_v54  ;;  %3861 = vmatprep.subr.bf16.mxu0 %v3860_v9  ;;  %v822_v42 = vld [vmem:[#allocation2 + $0xc8] sm:$0xff] }
 0x227   : > { %2324 = vmatprep.mubr.f32.mxu1 %v2037_v27  ;;  %v4177_v15 = vunpack.i.h.bf16 %v4175_v36  ;;  %v4176_v16 = vunpack.i.l.bf16 %v4175_v36  ;;  %v821_v27 = vld [vmem:[#allocation2 + $0xc0] sm:$0xff]  ;;  %3863 = vmatpush3.bf16.msra.mxu0 %v3860_v9 }
 0x228   : > { %v5544_v13 = vpop.permute.xlu1 %4164 }
 0x229   : > { %v4166_v32 = vunpack.i.l.bf16 %v5544_v13  ;;  %v4167_v46 = vunpack.i.h.bf16 %v5544_v13 }
 0x22a   : > { %v4180_v61 = vpop.permute.xlu0 %4179  ;;  %2325 = vmatmul.mubr.f32.gmra.mrb[26].mxu1 %v1941_v63 }
 0x22b   : > { %v4181_v5 = vunpack.i.l.bf16 %v4180_v61  ;;  %v4182_v18 = vunpack.i.h.bf16 %v4180_v61  ;;  %v1977_v56 = vsel %vm726_vm0, %v950_v51, %v4166_v32 }
 0x22c   : > { %v4170_v19 = vpop.permute.xlu1 %4169 }
 0x22d   : > { %v4172_v58 = vunpack.i.h.bf16 %v4170_v19  ;;  %v4171_v30 = vunpack.i.l.bf16 %v4170_v19  ;;  %v2007_v24 = vsel %vm1894_vm5, %v1975_v20, %v4181_v5  ;;  %v1910_v50 = vsel %vm1894_vm5, %v1877_v6, %v4182_v18  ;;  %v2744_v5 = vld [vmem:[%s6023_s5 + $0x18] sm:$0xff] }
 0x22e   : > { %v4185_v60 = vpop.permute.xlu0 %4184  ;;  %v2039_v17 = vsel %vm1927_vm6, %v2007_v24, %v4161_v11  ;;  %v1943_v37 = vsel %vm1927_vm6, %v1910_v50, %v4162_v47  ;;  %v3864_v57 = vpack.c.bf16 %v2744_v5, %v2743_v3 }
 0x22f   : > { %v2006_v21 = vsel %vm1894_vm5, %v1974_v10, %v4171_v30  ;;  %v1909_v12 = vsel %vm1894_vm5, %v1876_v49, %v4172_v58  ;;  %v4186_v1 = vunpack.i.l.bf16 %v4185_v60  ;;  %v4187_v33 = vunpack.i.h.bf16 %v4185_v60 }
 0x230   : > { %v5555_v34 = vpop.permute.xlu1 %4189  ;;  %v2038_v25 = vsel %vm1927_vm6, %v2006_v21, %v4176_v16  ;;  %v1942_v40 = vsel %vm1927_vm6, %v1909_v12, %v4177_v15  ;;  %v1879_v15 = vsel %vm726_vm0, %v822_v42, %v4167_v46  ;;  %3865 = vmatprep.subr.bf16.mxu0 %v3864_v57 }
 0x231   : > { %v5559_v8 = vpop.f32.mrb[32].mxu0  ;;  %2329 = vmatprep.mubr.f32.mxu1 %v2038_v25  ;;  %v1976_v4 = vsel %vm726_vm0, %v949_v48, %v4186_v1  ;;  %v1878_v63 = vsel %vm726_vm0, %v821_v27, %v4187_v33  ;;  %v4191_v58 = vunpack.i.l.bf16 %v5555_v34  ;;  %3867 = vmatpush3.bf16.msra.mxu0 %v3864_v57  ;;  %v4192_v12 = vunpack.i.h.bf16 %v5555_v34  ;;  %v951_v34 = vld [vmem:[#allocation2 + $0xf1] sm:$0xff]  ;;  %v952_v1 = vld [vmem:[#allocation2 + $0xf9] sm:$0xff] }
 0x232   : > { %v4205_v2 = vpop.permute.xlu0 %4204  ;;  %2330 = vmatmul.mubr.f32.gmra.mrb[28].mxu1 %v1942_v40  ;;  %v5562_v28 = vpop.f32.mrb[33].mxu0 }
 0x233   : > { %2334 = vmatprep.mubr.f32.mxu1 %v2039_v17  ;;  %v4207_v22 = vunpack.i.h.bf16 %v4205_v2  ;;  %v4206_v38 = vunpack.i.l.bf16 %v4205_v2 }
 0x234   : > { %v5566_v35 = vpop.permute.xlu1 %4194 }
 0x235   : > { %v5570_v7 = vpop.f32.mrb[34].mxu0  ;;  %v4196_v11 = vunpack.i.l.bf16 %v5566_v35  ;;  %v4197_v47 = vunpack.i.h.bf16 %v5566_v35 }
 0x236   : > { %v4210_v41 = vpop.permute.xlu0 %4209  ;;  %2335 = vmatmul.mubr.f32.gmra.mrb[30].mxu1 %v1943_v37  ;;  %v5572_v39 = vpop.f32.mrb[35].mxu0 }
 0x237   : > { %v4211_v45 = vunpack.i.l.bf16 %v4210_v41  ;;  %v4212_v61 = vunpack.i.h.bf16 %v4210_v41 }
 0x238   : > { %v4200_v59 = vpop.permute.xlu1 %4199 }
 0x239   : > { %v4202_v54 = vunpack.i.h.bf16 %v4200_v59  ;;  %v4201_v43 = vunpack.i.l.bf16 %v4200_v59  ;;  %v5583_v55 = vpop.f32.mrb[36].mxu0  ;;  %v2009_v29 = vsel %vm1894_vm5, %v1977_v56, %v4211_v45  ;;  %v1912_v49 = vsel %vm1894_vm5, %v1879_v15, %v4212_v61 }
 0x23a   : > { %v4215_v36 = vpop.permute.xlu0 %4214  ;;  %v5586_v13 = vpop.f32.mrb[37].mxu0  ;;  %v2041_v18 = vsel %vm1927_vm6, %v2009_v29, %v4191_v58  ;;  %v1945_v26 = vsel %vm1927_vm6, %v1912_v49, %v4192_v12  ;;  %v1979_v45 = vsel %vm726_vm0, %v952_v1, %v4196_v11 }
 0x23b   : > { %v2008_v23 = vsel %vm1894_vm5, %v1976_v4, %v4201_v43  ;;  %v1911_v19 = vsel %vm1894_vm5, %v1878_v63, %v4202_v54  ;;  %v4216_v25 = vunpack.i.l.bf16 %v4215_v36  ;;  %v4217_v6 = vunpack.i.h.bf16 %v4215_v36 }
 0x23c   : > { %v5598_v30 = vpop.permute.xlu1 %4219  ;;  %v2040_v60 = vsel %vm1927_vm6, %v2008_v23, %v4206_v38  ;;  %v1944_v10 = vsel %vm1927_vm6, %v1911_v19, %v4207_v22  ;;  %v824_v38 = vld [vmem:[#allocation2 + $0xe0] sm:$0xff] }
 0x23d   : > { %2339 = vmatprep.mubr.f32.mxu1 %v2040_v60  ;;  %v5603_v16 = vpop.f32.mrb[38].mxu0  ;;  %v1978_v0 = vsel %vm726_vm0, %v951_v34, %v4216_v25  ;;  %v1880_v51 = vsel %vm726_vm0, %v823_v44, %v4217_v6  ;;  %v4221_v4 = vunpack.i.l.bf16 %v5598_v30  ;;  %v1881_v63 = vsel %vm726_vm0, %v824_v38, %v4197_v47  ;;  %v954_v25 = vld [vmem:[#allocation2 + $0x111] sm:$0xff] }
 0x23e   : > { %v4235_v20 = vpop.permute.xlu0 %4234  ;;  %2340 = vmatmul.mubr.f32.gmra.mrb[32].mxu1 %v1944_v10  ;;  %v5607_v21 = vpop.f32.mrb[39].mxu0  ;;  %v4222_v29 = vunpack.i.h.bf16 %v5598_v30  ;;  %v953_v30 = vld [vmem:[#allocation2 + $0x109] sm:$0xff] }
 0x23f   : > { %2344 = vmatprep.mubr.f32.mxu1 %v2041_v18  ;;  %v4237_v46 = vunpack.i.h.bf16 %v4235_v20  ;;  %v4236_v59 = vunpack.i.l.bf16 %v4235_v20  ;;  %v825_v47 = vld [vmem:[#allocation2 + $0xf0] sm:$0xff] }
 0x240   : > { %v5610_v24 = vpop.permute.xlu1 %4224 }
 0x241   : > { %v5614_v2 = vpop.f32.mrb[40].mxu0  ;;  %v4226_v58 = vunpack.i.l.bf16 %v5610_v24  ;;  %v4227_v12 = vunpack.i.h.bf16 %v5610_v24 }
 0x242   : > { %v4240_v40 = vpop.permute.xlu0 %4239  ;;  %2345 = vmatmul.mubr.f32.gmra.mrb[34].mxu1 %v1945_v26  ;;  %v5616_v17 = vpop.f32.mrb[41].mxu0 }
 0x243   : > { %v4241_v50 = vunpack.i.l.bf16 %v4240_v40  ;;  %v4242_v48 = vunpack.i.h.bf16 %v4240_v40 }
 0x244   : > { %v4230_v32 = vpop.permute.xlu1 %4229 }
 0x245   : > { %v4232_v41 = vunpack.i.h.bf16 %v4230_v32  ;;  %v4231_v37 = vunpack.i.l.bf16 %v4230_v32  ;;  %v5621_v9 = vpop.f32.mrb[42].mxu0  ;;  %v2011_v36 = vsel %vm1894_vm5, %v1979_v45, %v4241_v50  ;;  %v1914_v23 = vsel %vm1894_vm5, %v1881_v63, %v4242_v48 }
 0x246   : > { %v4245_v33 = vpop.permute.xlu0 %4244  ;;  %v5624_v54 = vpop.f32.mrb[43].mxu0  ;;  %v2043_v5 = vsel %vm1927_vm6, %v2011_v36, %v4221_v4  ;;  %v1947_v42 = vsel %vm1927_vm6, %v1914_v23, %v4222_v29  ;;  %v1981_v32 = vsel %vm726_vm0, %v954_v25, %v4226_v58 }
 0x247   : > { %v2010_v35 = vsel %vm1894_vm5, %v1978_v0, %v4231_v37  ;;  %v1913_v43 = vsel %vm1894_vm5, %v1880_v51, %v4232_v41  ;;  %v4246_v60 = vunpack.i.l.bf16 %v4245_v33  ;;  %v4247_v15 = vunpack.i.h.bf16 %v4245_v33 }
 0x248   : > { %v5630_v27 = vpop.permute.xlu1 %4249  ;;  %v2042_v56 = vsel %vm1927_vm6, %v2010_v35, %v4236_v59  ;;  %v1946_v22 = vsel %vm1927_vm6, %v1913_v43, %v4237_v46  ;;  %v826_v35 = vld [vmem:[#allocation2 + $0xf8] sm:$0xff] }
 0x249   : > { %2349 = vmatprep.mubr.f32.mxu1 %v2042_v56  ;;  %v5635_v3 = vpop.f32.mrb[44].mxu0  ;;  %v1980_v50 = vsel %vm726_vm0, %v953_v30, %v4246_v60  ;;  %v1882_v33 = vsel %vm726_vm0, %v825_v47, %v4247_v15  ;;  %v4251_v46 = vunpack.i.l.bf16 %v5630_v27  ;;  %v1883_v36 = vsel %vm726_vm0, %v826_v35, %v4227_v12  ;;  %v828_v35 = vld [vmem:[#allocation2 + $0x110] sm:$0xff] }
 0x24a   : > { %v4265_v61 = vpop.permute.xlu0 %4264  ;;  %2350 = vmatmul.mubr.f32.gmra.mrb[36].mxu1 %v1946_v22  ;;  %v5639_v19 = vpop.f32.mrb[45].mxu0 }
 0x24b   : > { %2354 = vmatprep.mubr.f32.mxu1 %v2043_v5  ;;  %v4267_v1 = vunpack.i.h.bf16 %v4265_v61  ;;  %v4266_v41 = vunpack.i.l.bf16 %v4265_v61  ;;  %v4252_v61 = vunpack.i.h.bf16 %v5630_v27  ;;  %v955_v27 = vld [vmem:[#allocation2 + $0x121] sm:$0xff] }
 0x24c   : > { %v5642_v57 = vpop.permute.xlu1 %4254 }
 0x24d   : > { %v5646_v20 = vpop.f32.mrb[46].mxu0  ;;  %v4256_v5 = vunpack.i.l.bf16 %v5642_v57 }
 0x24e   : > { %v4270_v10 = vpop.permute.xlu0 %4269  ;;  %2355 = vmatmul.mubr.f32.gmra.mrb[38].mxu1 %v1947_v42  ;;  %v5648_v18 = vpop.f32.mrb[47].mxu0 }
 0x24f   : > { %v4271_v49 = vunpack.i.l.bf16 %v4270_v10  ;;  %v4272_v37 = vunpack.i.h.bf16 %v4270_v10 }
 0x250   : > { %v4260_v11 = vpop.permute.xlu1 %4259 }
 0x251   : > { %v4262_v40 = vunpack.i.h.bf16 %v4260_v11  ;;  %v4261_v26 = vunpack.i.l.bf16 %v4260_v11  ;;  %v5653_v34 = vpop.f32.mrb[48].mxu0  ;;  %v2013_v45 = vsel %vm1894_vm5, %v1981_v32, %v4271_v49  ;;  %v1916_v22 = vsel %vm1894_vm5, %v1883_v36, %v4272_v37  ;;  %v956_v11 = vld [vmem:[#allocation2 + $0x129] sm:$0xff] }
 0x252   : > { %v4275_v6 = vpop.permute.xlu0 %4274  ;;  %v5656_v0 = vpop.f32.mrb[49].mxu0  ;;  %v2045_v56 = vsel %vm1927_vm6, %v2013_v45, %v4251_v46  ;;  %v1949_v58 = vsel %vm1927_vm6, %v1916_v22, %v4252_v61  ;;  %v4257_v49 = vunpack.i.h.bf16 %v5642_v57  ;;  %v1983_v47 = vsel %vm726_vm0, %v956_v11, %v4256_v5  ;;  %v958_v11 = vld [vmem:[#allocation2 + $0x141] sm:$0xff] }
 0x253   : > { %v2012_v24 = vsel %vm1894_vm5, %v1980_v50, %v4261_v26  ;;  %v1915_v44 = vsel %vm1894_vm5, %v1882_v33, %v4262_v40  ;;  %v4276_v23 = vunpack.i.l.bf16 %v4275_v6  ;;  %v4277_v10 = vunpack.i.h.bf16 %v4275_v6  ;;  %v827_v50 = vld [vmem:[#allocation2 + $0x108] sm:$0xff] }
 0x254   : > { %v4280_v59 = vpop.permute.xlu1 %4279  ;;  %v2044_v48 = vsel %vm1927_vm6, %v2012_v24, %v4266_v41  ;;  %v1948_v51 = vsel %vm1927_vm6, %v1915_v44, %v4267_v1 }
 0x255   : > { %2359 = vmatprep.mubr.f32.mxu1 %v2044_v48  ;;  %v5665_v4 = vpop.f32.mrb[50].mxu0  ;;  %v1982_v26 = vsel %vm726_vm0, %v955_v27, %v4276_v23  ;;  %v1884_v37 = vsel %vm726_vm0, %v827_v50, %v4277_v10  ;;  %v4281_v45 = vunpack.i.l.bf16 %v4280_v59  ;;  %v4282_v61 = vunpack.i.h.bf16 %v4280_v59  ;;  %v957_v50 = vld [vmem:[#allocation2 + $0x139] sm:$0xff] }
 0x256   : > { %v4295_v43 = vpop.permute.xlu0 %4294  ;;  %2360 = vmatmul.mubr.f32.gmra.mrb[40].mxu1 %v1948_v51  ;;  %v5669_v38 = vpop.f32.mrb[51].mxu0 }
 0x257   : > { %2364 = vmatprep.mubr.f32.mxu1 %v2045_v56  ;;  %v4297_v6 = vunpack.i.h.bf16 %v4295_v43  ;;  %v4296_v1 = vunpack.i.l.bf16 %v4295_v43  ;;  %v1885_v43 = vsel %vm726_vm0, %v828_v35, %v4257_v49 }
 0x258   : > { %v5672_v63 = vpop.permute.xlu1 %4284 }
 0x259   : > { %v5676_v60 = vpop.f32.mrb[52].mxu0  ;;  %v4286_v23 = vunpack.i.l.bf16 %v5672_v63  ;;  %v4287_v49 = vunpack.i.h.bf16 %v5672_v63 }
 0x25a   : > { %v4300_v29 = vpop.permute.xlu0 %4299  ;;  %2365 = vmatmul.mubr.f32.gmra.mrb[42].mxu1 %v1949_v58  ;;  %v5678_v42 = vpop.f32.mrb[53].mxu0 }
 0x25b   : > { %v4301_v15 = vunpack.i.l.bf16 %v4300_v29  ;;  %v4302_v41 = vunpack.i.h.bf16 %v4300_v29 }
 0x25c   : > { %v4290_v12 = vpop.permute.xlu1 %4289 }
 0x25d   : > { %v4292_v30 = vunpack.i.h.bf16 %v4290_v12  ;;  %v4291_v25 = vunpack.i.l.bf16 %v4290_v12  ;;  %v5683_v32 = vpop.f32.mrb[54].mxu0  ;;  %v2015_v44 = vsel %vm1894_vm5, %v1983_v47, %v4301_v15  ;;  %v1918_v22 = vsel %vm1894_vm5, %v1885_v43, %v4302_v41  ;;  %v829_v47 = vld [vmem:[#allocation2 + $0x120] sm:$0xff] }
 0x25e   : > { %v4305_v40 = vpop.permute.xlu0 %4304  ;;  %v5686_v33 = vpop.f32.mrb[55].mxu0  ;;  %v2047_v56 = vsel %vm1927_vm6, %v2015_v44, %v4281_v45  ;;  %v1951_v58 = vsel %vm1927_vm6, %v1918_v22, %v4282_v61  ;;  %v830_v44 = vld [vmem:[#allocation2 + $0x128] sm:$0xff] }
 0x25f   : > { %v2014_v57 = vsel %vm1894_vm5, %v1982_v26, %v4291_v25  ;;  %v1917_v24 = vsel %vm1894_vm5, %v1884_v37, %v4292_v30  ;;  %v4307_v10 = vunpack.i.h.bf16 %v4305_v40  ;;  %v4306_v15 = vunpack.i.l.bf16 %v4305_v40 }
 0x260   : > { %v4310_v46 = vpop.permute.xlu1 %4309  ;;  %v2046_v48 = vsel %vm1927_vm6, %v2014_v57, %v4296_v1  ;;  %v1950_v51 = vsel %vm1927_vm6, %v1917_v24, %v4297_v6  ;;  %v1985_v6 = vsel %vm726_vm0, %v958_v11, %v4286_v23  ;;  %v1887_v43 = vsel %vm726_vm0, %v830_v44, %v4287_v49  ;;  %v831_v49 = vld [vmem:[#allocation2 + $0x138] sm:$0xff] }
 0x261   : > { %2369 = vmatprep.mubr.f32.mxu1 %v2046_v48  ;;  %v1984_v37 = vsel %vm726_vm0, %v957_v50, %v4306_v15  ;;  %v1886_v40 = vsel %vm726_vm0, %v829_v47, %v4307_v10  ;;  %v4311_v45 = vunpack.i.l.bf16 %v4310_v46  ;;  %v4312_v23 = vunpack.i.h.bf16 %v4310_v46 }
 0x262   : > { %v4325_v36 = vpop.permute.xlu0 %4324  ;;  %2370 = vmatmul.mubr.f32.gmra.mrb[44].mxu1 %v1950_v51 }
 0x263   : > { %2374 = vmatprep.mubr.f32.mxu1 %v2047_v56  ;;  %v4327_v1 = vunpack.i.h.bf16 %v4325_v36  ;;  %v4326_v41 = vunpack.i.l.bf16 %v4325_v36 }
 0x264   : > { %v5696_v5 = vpop.permute.xlu1 %4314 }
 0x265   : > { %v4317_v10 = vunpack.i.h.bf16 %v5696_v5 }
 0x266   : > { %v4330_v29 = vpop.permute.xlu0 %4329  ;;  %2375 = vmatmul.mubr.f32.gmra.mrb[46].mxu1 %v1951_v58  ;;  %v4316_v58 = vunpack.i.l.bf16 %v5696_v5 }
 0x267   : > { %v4331_v12 = vunpack.i.l.bf16 %v4330_v29  ;;  %v4332_v30 = vunpack.i.h.bf16 %v4330_v29 }
 0x268   : > { %v4320_v27 = vpop.permute.xlu1 %4319 }
 0x269   : > { %v4322_v25 = vunpack.i.h.bf16 %v4320_v27  ;;  %v4321_v26 = vunpack.i.l.bf16 %v4320_v27  ;;  %v2017_v24 = vsel %vm1894_vm5, %v1985_v6, %v4331_v12  ;;  %v1920_v61 = vsel %vm1894_vm5, %v1887_v43, %v4332_v30  ;;  %v959_v27 = vld [vmem:[#allocation2 + $0x151] sm:$0xff] }
 0x26a   : > { %v4335_v59 = vpop.permute.xlu0 %4334  ;;  %v2049_v29 = vsel %vm1927_vm6, %v2017_v24, %v4311_v45  ;;  %v1953_v12 = vsel %vm1927_vm6, %v1920_v61, %v4312_v23  ;;  %v832_v45 = vld [vmem:[#allocation2 + $0x140] sm:$0xff] }
 0x26b   : > { %v2016_v57 = vsel %vm1894_vm5, %v1984_v37, %v4321_v26  ;;  %v1919_v63 = vsel %vm1894_vm5, %v1886_v40, %v4322_v25  ;;  %v4337_v36 = vunpack.i.h.bf16 %v4335_v59  ;;  %v4336_v56 = vunpack.i.l.bf16 %v4335_v59 }
 0x26c   : > { %v4340_v48 = vpop.permute.xlu1 %4339  ;;  %v2048_v51 = vsel %vm1927_vm6, %v2016_v57, %v4326_v41  ;;  %v1952_v35 = vsel %vm1927_vm6, %v1919_v63, %v4327_v1  ;;  %v960_v1 = vld [vmem:[#allocation2 + $0x159] sm:$0xff]  ;;  %v1889_v43 = vsel %vm726_vm0, %v832_v45, %v4317_v10 }
 0x26d   : > { %2379 = vmatprep.mubr.f32.mxu1 %v2048_v51  ;;  %v1986_v59 = vsel %vm726_vm0, %v959_v27, %v4336_v56  ;;  %v1888_v46 = vsel %vm726_vm0, %v831_v49, %v4337_v36  ;;  %v4341_v41 = vunpack.i.l.bf16 %v4340_v48  ;;  %v1987_v40 = vsel %vm726_vm0, %v960_v1, %v4316_v58  ;;  %v833_v27 = vld [vmem:[#allocation2 + $0x150] sm:$0xff] }
 0x26e   : > { %v4355_v22 = vpop.permute.xlu0 %4354  ;;  %2380 = vmatmul.mubr.f32.gmra.mrb[48].mxu1 %v1952_v35  ;;  %v4342_v61 = vunpack.i.h.bf16 %v4340_v48 }
 0x26f   : > { %2384 = vmatprep.mubr.f32.mxu1 %v2049_v29  ;;  %v4357_v30 = vunpack.i.h.bf16 %v4355_v22  ;;  %v4356_v50 = vunpack.i.l.bf16 %v4355_v22 }
 0x270   : > { %v4345_v15 = vpop.permute.xlu1 %4344 }
 0x271   : > { %v4347_v11 = vunpack.i.h.bf16 %v4345_v15  ;;  %v4346_v25 = vunpack.i.l.bf16 %v4345_v15 }
 0x272   : > { %v4360_v26 = vpop.permute.xlu0 %4359  ;;  %2385 = vmatmul.mubr.f32.gmra.mrb[50].mxu1 %v1953_v12 }
 0x273   : > { %v4362_v47 = vunpack.i.h.bf16 %v4360_v26  ;;  %v4361_v6 = vunpack.i.l.bf16 %v4360_v26  ;;  %v2018_v5 = vsel %vm1894_vm5, %v1986_v59, %v4346_v25  ;;  %v1921_v37 = vsel %vm1894_vm5, %v1888_v46, %v4347_v11 }
 0x274   : > { %v4350_v57 = vpop.permute.xlu1 %4349  ;;  %v2050_v63 = vsel %vm1927_vm6, %v2018_v5, %v4356_v50  ;;  %v1954_v24 = vsel %vm1927_vm6, %v1921_v37, %v4357_v30  ;;  %v962_v5 = vld [vmem:[#allocation2 + $0x171] sm:$0xff] }
 0x275   : > { %v2019_v44 = vsel %vm1894_vm5, %v1987_v40, %v4361_v6  ;;  %2389 = vmatprep.mubr.f32.mxu1 %v2050_v63  ;;  %v1922_v22 = vsel %vm1894_vm5, %v1889_v43, %v4362_v47  ;;  %v4352_v26 = vunpack.i.h.bf16 %v4350_v57  ;;  %v4351_v59 = vunpack.i.l.bf16 %v4350_v57 }
 0x276   : > { %v4365_v51 = vpop.permute.xlu0 %4364  ;;  %v2051_v35 = vsel %vm1927_vm6, %v2019_v44, %v4341_v41  ;;  %2390 = vmatmul.mubr.f32.gmra.mrb[52].mxu1 %v1954_v24  ;;  %v1955_v12 = vsel %vm1927_vm6, %v1922_v22, %v4342_v61  ;;  %v835_v22 = vld [vmem:[#allocation2 + $0x168] sm:$0xff] }
 0x277   : > { %v4367_v36 = vunpack.i.h.bf16 %v4365_v51  ;;  %v4366_v56 = vunpack.i.l.bf16 %v4365_v51  ;;  %2394 = vmatprep.mubr.f32.mxu1 %v2051_v35  ;;  %v1989_v57 = vsel %vm726_vm0, %v962_v5, %v4351_v59 }
 0x278   : > { %v4370_v23 = vpop.permute.xlu1 %4369 }
 0x279   : > { %v4372_v29 = vunpack.i.h.bf16 %v4370_v23  ;;  %v4371_v58 = vunpack.i.l.bf16 %v4370_v23  ;;  %v1988_v10 = vsel %vm726_vm0, %v5398_v14, %v4366_v56  ;;  %v1890_v25 = vsel %vm726_vm0, %v833_v27, %v4367_v36  ;;  %v834_v14 = vld [vmem:[#allocation2 + $0x158] sm:$0xff] }
 0x27a   : > { %v4390_v15 = vpop.permute.xlu0 %4389  ;;  %2395 = vmatmul.mubr.f32.gmra.mrb[54].mxu1 %v1955_v12  ;;  %v1891_v63 = vsel %vm726_vm0, %v834_v14, %v4352_v26 }
 0x27b   : > { %v4392_v49 = vunpack.i.h.bf16 %v4390_v15  ;;  %v4391_v11 = vunpack.i.l.bf16 %v4390_v15  ;;  %v2020_v48 = vsel %vm1894_vm5, %v1988_v10, %v4371_v58  ;;  %v1923_v46 = vsel %vm1894_vm5, %v1890_v25, %v4372_v29 }
 0x27c   : > { %v4375_v30 = vpop.permute.xlu1 %4374 }
 0x27d   : > { %v2052_v50 = vsel %vm1927_vm6, %v2020_v48, %v4391_v11  ;;  %v1956_v47 = vsel %vm1927_vm6, %v1923_v46, %v4392_v49  ;;  %v4377_v37 = vunpack.i.h.bf16 %v4375_v30  ;;  %v4376_v40 = vunpack.i.l.bf16 %v4375_v30 }
 0x27e   : > { %v4395_v6 = vpop.permute.xlu0 %4394  ;;  %2399 = vmatprep.mubr.f32.mxu1 %v2052_v50 }
 0x27f   : > { %v4397_v1 = vunpack.i.h.bf16 %v4395_v6  ;;  %v4396_v41 = vunpack.i.l.bf16 %v4395_v6  ;;  %2400 = vmatmul.mubr.f32.gmra.mrb[56].mxu1 %v1956_v47  ;;  %v836_v47 = vld [vmem:[#allocation2 + $0x170] sm:$0xff] }
 0x280   : > { %v4380_v24 = vpop.permute.xlu1 %4379 }
 0x281   : > { %v2021_v44 = vsel %vm1894_vm5, %v1989_v57, %v4396_v41  ;;  %v1924_v45 = vsel %vm1894_vm5, %v1891_v63, %v4397_v1  ;;  %v4382_v58 = vunpack.i.h.bf16 %v4380_v24  ;;  %v4381_v15 = vunpack.i.l.bf16 %v4380_v24  ;;  %v1086_v63 = vld [vmem:[#allocation2 + $0x152] sm:$0xff]  ;;  %v1087_v24 = vld [vmem:[#allocation2 + $0x15a] sm:$0xff] }
 0x282   : > { %v4400_v51 = vpop.permute.xlu0 %4399  ;;  %v2053_v35 = vsel %vm1927_vm6, %v2021_v44, %v4376_v40  ;;  %v1957_v43 = vsel %vm1927_vm6, %v1924_v45, %v4377_v37  ;;  %v1088_v44 = vld [vmem:[#allocation2 + $0x16a] sm:$0xff]  ;;  %v1092_v45 = vld [vmem:[#allocation2 + $0x19a] sm:$0xff] }
 0x283   : > { %v4402_v36 = vunpack.i.h.bf16 %v4400_v51  ;;  %v4401_v56 = vunpack.i.l.bf16 %v4400_v51  ;;  %2404 = vmatprep.mubr.f32.mxu1 %v2053_v35  ;;  %v1093_v51 = vld [vmem:[#allocation2 + $0x1a2] sm:$0xff]  ;;  %v5767_v35 = vld [vmem:[%s6022_s4] ss:$0 sm:$0xff] }
 0x284   : > { %2405 = vmatmul.mubr.f32.gmra.mrb[58].mxu1 %v1957_v43  ;;  %v4385_v61 = vpop.permute.xlu1 %4384 }
 0x285   : > { %v1990_v23 = vsel %vm726_vm0, %v5447_v53, %v4401_v56  ;;  %v1892_v29 = vsel %vm726_vm0, %v835_v22, %v4402_v36  ;;  %v4387_v11 = vunpack.i.h.bf16 %v4385_v61  ;;  %v4386_v10 = vunpack.i.l.bf16 %v4385_v61 }
 0x286   : > { %v4405_v12 = vpop.permute.xlu0 %4404  ;;  %v2022_v25 = vsel %vm1894_vm5, %v1990_v23, %v4381_v15  ;;  %v1925_v26 = vsel %vm1894_vm5, %v1892_v29, %v4382_v58 }
 0x287   : > { %v4407_v27 = vunpack.i.h.bf16 %v4405_v12  ;;  %v4406_v49 = vunpack.i.l.bf16 %v4405_v12  ;;  %v1991_v41 = vsel %vm726_vm0, %v5459_v62, %v4386_v10  ;;  %v1893_v5 = vsel %vm726_vm0, %v836_v47, %v4387_v11  ;;  %v1089_v62 = vld [vmem:[#allocation2 + $0x172] sm:$0xff] }
 0x288   : > { %v4415_v59 = vpop.permute.xlu1 %4414 }
 0x289   : > { %v2054_v48 = vsel %vm1927_vm6, %v2022_v25, %v4406_v49  ;;  %v1958_v46 = vsel %vm1927_vm6, %v1925_v26, %v4407_v27  ;;  %v4417_v6 = vunpack.i.h.bf16 %v4415_v59  ;;  %v4416_v1 = vunpack.i.l.bf16 %v4415_v59 }
 0x28a   : > { %v4410_v30 = vpop.permute.xlu0 %4409  ;;  %2409 = vmatprep.mubr.f32.mxu1 %v2054_v48 }
 0x28b   : > { %v4412_v53 = vunpack.i.h.bf16 %v4410_v30  ;;  %v4411_v50 = vunpack.i.l.bf16 %v4410_v30  ;;  %2410 = vmatmul.mubr.f32.gmra.mrb[60].mxu1 %v1958_v46 }
 0x28d   : > { %v2023_v14 = vsel %vm1894_vm5, %v1991_v41, %v4411_v50  ;;  %v1926_v37 = vsel %vm1894_vm5, %v1893_v5, %v4412_v53 }
 0x28e   : > { %v2055_v40 = vsel %vm1927_vm6, %v2023_v14, %v4416_v1  ;;  %v1959_v57 = vsel %vm1927_vm6, %v1926_v37, %v4417_v6 }
 0x28f   : > { %2414 = vmatprep.mubr.f32.mxu1 %v2055_v40 }
 0x290   : > { %2415 = vmatmul.mubr.f32.gmra.mrb[62].mxu1 %v1959_v57 }
 0x291   : > { %3704 = vmatprep.mubr.msk.f32.mxu1 %vm726_vm0, %v1086_v63 }
 0x294   : > { %3705 = vmatmul.mubr.msk.f32.vlgmr.msra.gmra.mrb[64].mxu1 %vm726_vm0, %v1087_v24 }
 0x295   : > { %3707 = vmatprep.mubr.msk.f32.mxu1 %vm726_vm0, %v1088_v44 }
 0x298   : > { %3708 = vmatmul.mubr.msk.f32.gmra.mrb[66].mxu1 %vm726_vm0, %v1089_v62 }
 0x299   : > { %3710 = vmatprep.mubr.msk.f32.mxu1 %vm726_vm0, %v5477_v31 }
 0x29c   : > { %3711 = vmatmul.mubr.msk.f32.gmra.mrb[68].mxu1 %vm726_vm0, %v5491_v52 }
 0x29d   : > { %3713 = vmatprep.mubr.msk.f32.mxu1 %vm726_vm0, %v1092_v45 }
 0x2a0   : > { %3714 = vmatmul.mubr.msk.f32.gmra.mrb[70].mxu1 %vm726_vm0, %v1093_v51 }
 0x2b0   : > { %v2261_v43 = vpop.f32.mrb[0].mxu1 }
 0x2b1   : > { %v2262_v36 = vadd.f32 %v5767_v35, %v2261_v43  ;;  %v2263_v56 = vpop.f32.mrb[1].mxu1 }
 0x2b3   : > { %v2487_v31 = vadd.f32 %v5562_v28, %v2262_v36 }
 0x2b4   : > { %v2266_v22 = vpop.f32.mrb[2].mxu1 }
 0x2b5   : > { %v2677_v61 = vmul.f32 0.01, %v2487_v31  ;;  %v2267_v52 = vadd.f32 %v5767_v35, %v2266_v22  ;;  %v2268_v23 = vpop.f32.mrb[3].mxu1  ;;  %vm2645_vm7 = vcmp.gt.f32.partialorder %v2487_v31, 0.0 }
 0x2b7   : > { %v2492_v29 = vadd.f32 %v5559_v8, %v2267_v52  ;;  %v2709_v58 = vsel %vm2645_vm7, %v2487_v31, %v2677_v61 }
 0x2b8   : > { %3724 = vmatprep.mubr.msk.f32.mxu0 %vm726_vm0, %v2709_v58 }
 0x2b9   : > { %vm2646_vm8 = vcmp.gt.f32.partialorder %v2492_v29, 0.0  ;;  %v2678_v15 = vmul.f32 0.01, %v2492_v29 }
 0x2bb   : > { %v2710_v12 = vsel %vm2646_vm8, %v2492_v29, %v2678_v15 }
 0x2bc   : > { %3725 = vmatmul.mubr.msk.f32.vlgmr.msra.gmra.mrb[56].mxu0 %vm726_vm0, %v2710_v12 }
 0x2bd   : > { %v2271_v27 = vpop.f32.mrb[4].mxu1 }
 0x2be   : > { %v2272_v49 = vadd.f32 %v5767_v35, %v2271_v27  ;;  %v2273_v28 = vpop.f32.mrb[5].mxu1 }
 0x2c0   : > { %v2497_v11 = vadd.f32 %v5572_v39, %v2272_v49 }
 0x2c1   : > { %v2276_v10 = vpop.f32.mrb[6].mxu1 }
 0x2c2   : > { %v2679_v25 = vmul.f32 0.01, %v2497_v11  ;;  %v2277_v26 = vadd.f32 %v5767_v35, %v2276_v10  ;;  %v2278_v59 = vpop.f32.mrb[7].mxu1  ;;  %vm2647_vm9 = vcmp.gt.f32.partialorder %v2497_v11, 0.0 }
 0x2c4   : > { %v2502_v8 = vadd.f32 %v5570_v7, %v2277_v26  ;;  %v2711_v48 = vsel %vm2647_vm9, %v2497_v11, %v2679_v25 }
 0x2c5   : > { %3727 = vmatprep.mubr.msk.f32.mxu0 %vm726_vm0, %v2711_v48 }
 0x2c6   : > { %v2680_v46 = vmul.f32 0.01, %v2502_v8  ;;  %vm2648_vm10 = vcmp.gt.f32.partialorder %v2502_v8, 0.0 }
 0x2c8   : > { %v2712_v30 = vsel %vm2648_vm10, %v2502_v8, %v2680_v46 }
 0x2c9   : > { %v2281_v53 = vpop.f32.mrb[8].mxu1  ;;  %3728 = vmatmul.mubr.msk.f32.gmra.mrb[58].mxu0 %vm726_vm0, %v2712_v30 }
 0x2ca   : > { %v2282_v50 = vadd.f32 %v5767_v35, %v2281_v53  ;;  %v2283_v39 = vpop.f32.mrb[9].mxu1 }
 0x2cc   : > { %v2507_v47 = vadd.f32 %v5586_v13, %v2282_v50 }
 0x2cd   : > { %v2286_v6 = vpop.f32.mrb[10].mxu1 }
 0x2ce   : > { %v2681_v1 = vmul.f32 0.01, %v2507_v47  ;;  %v2287_v41 = vadd.f32 %v5767_v35, %v2286_v6  ;;  %v2288_v5 = vpop.f32.mrb[11].mxu1  ;;  %vm2649_vm11 = vcmp.gt.f32.partialorder %v2507_v47, 0.0 }
 0x2d0   : > { %v2512_v7 = vadd.f32 %v5583_v55, %v2287_v41  ;;  %v2713_v14 = vsel %vm2649_vm11, %v2507_v47, %v2681_v1 }
 0x2d1   : > { %3730 = vmatprep.mubr.msk.f32.mxu0 %vm726_vm0, %v2713_v14 }
 0x2d2   : > { %v2682_v37 = vmul.f32 0.01, %v2512_v7  ;;  %vm2650_vm12 = vcmp.gt.f32.partialorder %v2512_v7, 0.0 }
 0x2d4   : > { %v2714_v40 = vsel %vm2650_vm12, %v2512_v7, %v2682_v37 }
 0x2d5   : > { %v2291_v57 = vpop.f32.mrb[12].mxu1  ;;  %3731 = vmatmul.mubr.msk.f32.gmra.mrb[60].mxu0 %vm726_vm0, %v2714_v40 }
 0x2d6   : > { %v2292_v63 = vadd.f32 %v5767_v35, %v2291_v57  ;;  %v2293_v13 = vpop.f32.mrb[13].mxu1 }
 0x2d8   : > { %v2517_v24 = vadd.f32 %v5607_v21, %v2292_v63 }
 0x2d9   : > { %v2296_v44 = vpop.f32.mrb[14].mxu1 }
 0x2da   : > { %v2683_v62 = vmul.f32 0.01, %v2517_v24  ;;  %v2297_v45 = vadd.f32 %v5767_v35, %v2296_v44  ;;  %v2298_v51 = vpop.f32.mrb[15].mxu1  ;;  %vm2651_vm13 = vcmp.gt.f32.partialorder %v2517_v24, 0.0 }
 0x2dc   : > { %v2522_v55 = vadd.f32 %v5603_v16, %v2297_v45  ;;  %v2715_v43 = vsel %vm2651_vm13, %v2517_v24, %v2683_v62 }
 0x2dd   : > { %3733 = vmatprep.mubr.msk.f32.mxu0 %vm726_vm0, %v2715_v43 }
 0x2de   : > { %v2684_v36 = vmul.f32 0.01, %v2522_v55  ;;  %vm2652_vm14 = vcmp.gt.f32.partialorder %v2522_v55, 0.0 }
 0x2e0   : > { %v2716_v56 = vsel %vm2652_vm14, %v2522_v55, %v2684_v36 }
 0x2e1   : > { %v2301_v31 = vpop.f32.mrb[16].mxu1  ;;  %3734 = vmatmul.mubr.msk.f32.gmra.mrb[62].mxu0 %vm726_vm0, %v2716_v56 }
 0x2e2   : > { %v2302_v22 = vadd.f32 %v5767_v35, %v2301_v31  ;;  %v2303_v21 = vpop.f32.mrb[17].mxu1 }
 0x2e4   : > { %v2527_v61 = vadd.f32 %v5616_v17, %v2302_v22 }
 0x2e5   : > { %v2306_v52 = vpop.f32.mrb[18].mxu1 }
 0x2e6   : > { %v2685_v23 = vmul.f32 0.01, %v2527_v61  ;;  %v2307_v29 = vadd.f32 %v5767_v35, %v2306_v52  ;;  %v2308_v58 = vpop.f32.mrb[19].mxu1  ;;  %vm2653_vm15 = vcmp.gt.f32.partialorder %v2527_v61, 0.0 }
 0x2e8   : > { %v2532_v16 = vadd.f32 %v5614_v2, %v2307_v29  ;;  %v2717_v15 = vsel %vm2653_vm15, %v2527_v61, %v2685_v23 }
 0x2e9   : > { %3736 = vmatprep.mubr.msk.f32.mxu0 %vm726_vm0, %v2717_v15 }
 0x2ea   : > { %v2686_v12 = vmul.f32 0.01, %v2532_v16  ;;  %vm2654_vm1 = vcmp.gt.f32.partialorder %v2532_v16, 0.0 }
 0x2ec   : > { %v2718_v27 = vsel %vm2654_vm1, %v2532_v16, %v2686_v12 }
 0x2ed   : > { %v2311_v49 = vpop.f32.mrb[20].mxu1  ;;  %3737 = vmatmul.mubr.msk.f32.gmra.mrb[64].mxu0 %vm726_vm0, %v2718_v27 }
 0x2ee   : > { %v2312_v28 = vadd.f32 %v5767_v35, %v2311_v49  ;;  %v2313_v17 = vpop.f32.mrb[21].mxu1 }
 0x2f0   : > { %v2537_v11 = vadd.f32 %v5624_v54, %v2312_v28 }
 0x2f1   : > { %v2316_v10 = vpop.f32.mrb[22].mxu1 }
 0x2f2   : > { %v2687_v25 = vmul.f32 0.01, %v2537_v11  ;;  %v2317_v26 = vadd.f32 %v5767_v35, %v2316_v10  ;;  %v2318_v59 = vpop.f32.mrb[23].mxu1  ;;  %vm2655_vm2 = vcmp.gt.f32.partialorder %v2537_v11, 0.0 }
 0x2f4   : > { %v2542_v2 = vadd.f32 %v5621_v9, %v2317_v26  ;;  %v2719_v8 = vsel %vm2655_vm2, %v2537_v11, %v2687_v25 }
 0x2f5   : > { %3739 = vmatprep.mubr.msk.f32.mxu0 %vm726_vm0, %v2719_v8 }
 0x2f6   : > { %v2688_v48 = vmul.f32 0.01, %v2542_v2  ;;  %vm2656_vm3 = vcmp.gt.f32.partialorder %v2542_v2, 0.0 }
 0x2f8   : > { %v2720_v46 = vsel %vm2656_vm3, %v2542_v2, %v2688_v48 }
 0x2f9   : > { %v2321_v30 = vpop.f32.mrb[24].mxu1  ;;  %3740 = vmatmul.mubr.msk.f32.gmra.mrb[66].mxu0 %vm726_vm0, %v2720_v46 }
 0x2fa   : > { %v2322_v53 = vadd.f32 %v5767_v35, %v2321_v30  ;;  %v2323_v54 = vpop.f32.mrb[25].mxu1 }
 0x2fc   : > { %v2547_v50 = vadd.f32 %v5639_v19, %v2322_v53 }
 0x2fd   : > { %v2326_v39 = vpop.f32.mrb[26].mxu1 }
 0x2fe   : > { %v2689_v47 = vmul.f32 0.01, %v2547_v50  ;;  %v2327_v6 = vadd.f32 %v5767_v35, %v2326_v39  ;;  %v2328_v1 = vpop.f32.mrb[27].mxu1  ;;  %vm2657_vm4 = vcmp.gt.f32.partialorder %v2547_v50, 0.0 }
 0x300   : > { %v2552_v9 = vadd.f32 %v5635_v3, %v2327_v6  ;;  %v2721_v41 = vsel %vm2657_vm4, %v2547_v50, %v2689_v47 }
 0x301   : > { %3742 = vmatprep.mubr.msk.f32.mxu0 %vm726_vm0, %v2721_v41 }
 0x302   : > { %v2690_v5 = vmul.f32 0.01, %v2552_v9  ;;  %vm2658_vm5 = vcmp.gt.f32.partialorder %v2552_v9, 0.0 }
 0x304   : > { %v2722_v7 = vsel %vm2658_vm5, %v2552_v9, %v2690_v5 }
 0x305   : > { %v2331_v14 = vpop.f32.mrb[28].mxu1  ;;  %3743 = vmatmul.mubr.msk.f32.gmra.mrb[68].mxu0 %vm726_vm0, %v2722_v7 }
 0x306   : > { %v2332_v37 = vadd.f32 %v5767_v35, %v2331_v14  ;;  %v2333_v19 = vpop.f32.mrb[29].mxu1 }
 0x308   : > { %v2557_v40 = vadd.f32 %v5648_v18, %v2332_v37 }
 0x309   : > { %v2336_v57 = vpop.f32.mrb[30].mxu1 }
 0x30a   : > { %v2691_v63 = vmul.f32 0.01, %v2557_v40  ;;  %v2337_v13 = vadd.f32 %v5767_v35, %v2336_v57  ;;  %v2338_v24 = vpop.f32.mrb[31].mxu1  ;;  %vm2659_vm6 = vcmp.gt.f32.partialorder %v2557_v40, 0.0 }
 0x30c   : > { %v2562_v3 = vadd.f32 %v5646_v20, %v2337_v13  ;;  %v2723_v44 = vsel %vm2659_vm6, %v2557_v40, %v2691_v63 }
 0x30d   : > { %3745 = vmatprep.mubr.msk.f32.mxu0 %vm726_vm0, %v2723_v44 }
 0x30e   : > { %v2692_v62 = vmul.f32 0.01, %v2562_v3  ;;  %vm2660_vm7 = vcmp.gt.f32.partialorder %v2562_v3, 0.0 }
 0x310   : > { %v2724_v45 = vsel %vm2660_vm7, %v2562_v3, %v2692_v62 }
 0x311   : > { %v2341_v51 = vpop.f32.mrb[32].mxu1  ;;  %3746 = vmatmul.mubr.msk.f32.gmra.mrb[70].mxu0 %vm726_vm0, %v2724_v45 }
 0x312   : > { %v2342_v55 = vadd.f32 %v5767_v35, %v2341_v51  ;;  %v2343_v18 = vpop.f32.mrb[33].mxu1 }
 0x314   : > { %v2567_v43 = vadd.f32 %v5656_v0, %v2342_v55 }
 0x315   : > { %v2346_v36 = vpop.f32.mrb[34].mxu1 }
 0x316   : > { %v2693_v56 = vmul.f32 0.01, %v2567_v43  ;;  %v2347_v31 = vadd.f32 %v5767_v35, %v2346_v36  ;;  %v2348_v22 = vpop.f32.mrb[35].mxu1  ;;  %vm2661_vm8 = vcmp.gt.f32.partialorder %v2567_v43, 0.0 }
 0x318   : > { %v2572_v20 = vadd.f32 %v5653_v34, %v2347_v31  ;;  %v2725_v21 = vsel %vm2661_vm8, %v2567_v43, %v2693_v56 }
 0x319   : > { %3748 = vmatprep.mubr.msk.f32.mxu0 %vm726_vm0, %v2725_v21 }
 0x31a   : > { %v2694_v61 = vmul.f32 0.01, %v2572_v20  ;;  %vm2662_vm9 = vcmp.gt.f32.partialorder %v2572_v20, 0.0 }
 0x31c   : > { %v2726_v52 = vsel %vm2662_vm9, %v2572_v20, %v2694_v61 }
 0x31d   : > { %v2351_v23 = vpop.f32.mrb[36].mxu1  ;;  %3749 = vmatmul.mubr.msk.f32.gmra.mrb[72].mxu0 %vm726_vm0, %v2726_v52 }
 0x31e   : > { %v2352_v29 = vadd.f32 %v5767_v35, %v2351_v23  ;;  %v2353_v0 = vpop.f32.mrb[37].mxu1 }
 0x320   : > { %v2577_v58 = vadd.f32 %v5669_v38, %v2352_v29 }
 0x321   : > { %v2356_v16 = vpop.f32.mrb[38].mxu1 }
 0x322   : > { %v2695_v15 = vmul.f32 0.01, %v2577_v58  ;;  %v2357_v12 = vadd.f32 %v5767_v35, %v2356_v16  ;;  %v2358_v27 = vpop.f32.mrb[39].mxu1  ;;  %vm2663_vm10 = vcmp.gt.f32.partialorder %v2577_v58, 0.0 }
 0x324   : > { %v2582_v34 = vadd.f32 %v5665_v4, %v2357_v12  ;;  %v2727_v49 = vsel %vm2663_vm10, %v2577_v58, %v2695_v15 }
 0x325   : > { %3751 = vmatprep.mubr.msk.f32.mxu0 %vm726_vm0, %v2727_v49 }
 0x326   : > { %v2696_v28 = vmul.f32 0.01, %v2582_v34  ;;  %vm2664_vm11 = vcmp.gt.f32.partialorder %v2582_v34, 0.0 }
 0x328   : > { %v2728_v17 = vsel %vm2664_vm11, %v2582_v34, %v2696_v28 }
 0x329   : > { %v2361_v11 = vpop.f32.mrb[40].mxu1  ;;  %3752 = vmatmul.mubr.msk.f32.gmra.mrb[74].mxu0 %vm726_vm0, %v2728_v17 }
 0x32a   : > { %v2362_v10 = vadd.f32 %v5767_v35, %v2361_v11  ;;  %v2363_v38 = vpop.f32.mrb[41].mxu1 }
 0x32c   : > { %v2587_v25 = vadd.f32 %v5678_v42, %v2362_v10 }
 0x32d   : > { %v2366_v26 = vpop.f32.mrb[42].mxu1 }
 0x32e   : > { %v2697_v59 = vmul.f32 0.01, %v2587_v25  ;;  %v2367_v2 = vadd.f32 %v5767_v35, %v2366_v26  ;;  %v2368_v8 = vpop.f32.mrb[43].mxu1  ;;  %vm2665_vm12 = vcmp.gt.f32.partialorder %v2587_v25, 0.0 }
 0x330   : > { %v2592_v4 = vadd.f32 %v5676_v60, %v2367_v2  ;;  %v2729_v48 = vsel %vm2665_vm12, %v2587_v25, %v2697_v59 }
 0x331   : > { %3754 = vmatprep.mubr.msk.f32.mxu0 %vm726_vm0, %v2729_v48 }
 0x332   : > { %v2698_v46 = vmul.f32 0.01, %v2592_v4  ;;  %vm2666_vm13 = vcmp.gt.f32.partialorder %v2592_v4, 0.0 }
 0x334   : > { %v2730_v30 = vsel %vm2666_vm13, %v2592_v4, %v2698_v46 }
 0x335   : > { %v2371_v53 = vpop.f32.mrb[44].mxu1  ;;  %3755 = vmatmul.mubr.msk.f32.gmra.mrb[76].mxu0 %vm726_vm0, %v2730_v30 }
 0x336   : > { %v2372_v54 = vadd.f32 %v5767_v35, %v2371_v53  ;;  %v2373_v42 = vpop.f32.mrb[45].mxu1 }
 0x338   : > { %v2597_v50 = vadd.f32 %v5686_v33, %v2372_v54 }
 0x339   : > { %v2376_v39 = vpop.f32.mrb[46].mxu1 }
 0x33a   : > { %v2699_v47 = vmul.f32 0.01, %v2597_v50  ;;  %v2377_v6 = vadd.f32 %v5767_v35, %v2376_v39  ;;  %v2378_v1 = vpop.f32.mrb[47].mxu1  ;;  %vm2667_vm14 = vcmp.gt.f32.partialorder %v2597_v50, 0.0  ;;  %v5860_v39 = vld [vmem:[%s6024_s6] ss:$0 sm:$0xff] }
 0x33c   : > { %v2602_v60 = vadd.f32 %v5683_v32, %v2377_v6  ;;  %v2731_v9 = vsel %vm2667_vm14, %v2597_v50, %v2699_v47 }
 0x33d   : > { %3757 = vmatprep.mubr.msk.f32.mxu0 %vm726_vm0, %v2731_v9  ;;  %v4418_v9 = vld [vmem:[%s4788_s19 + $0x8] sm:$0xff] }
 0x33e   : > { %v2700_v41 = vmul.f32 0.01, %v2602_v60  ;;  %vm2668_vm15 = vcmp.gt.f32.partialorder %v2602_v60, 0.0 }
 0x340   : > { %v2732_v5 = vsel %vm2668_vm15, %v2602_v60, %v2700_v41 }
 0x341   : > { %v2381_v7 = vpop.f32.mrb[48].mxu1  ;;  %3758 = vmatmul.mubr.msk.f32.gmra.mrb[78].mxu0 %vm726_vm0, %v2732_v5  ;;  %v4419_v5 = vld [vmem:[%s4788_s19] sm:$0xff] }
 0x342   : > { %v2383_v14 = vpop.f32.mrb[49].mxu1  ;;  %v2382_v18 = vadd.f32 %v5767_v35, %v2381_v7 }
 0x345   : > { %v2386_v37 = vpop.f32.mrb[50].mxu1 }
 0x346   : > { %v2388_v33 = vpop.f32.mrb[51].mxu1  ;;  %v2387_v55 = vadd.f32 %v5767_v35, %v2386_v37 }
 0x349   : > { %v2391_v19 = vpop.f32.mrb[52].mxu1 }
 0x34a   : > { %v2393_v40 = vpop.f32.mrb[53].mxu1  ;;  %v2392_v21 = vadd.f32 %v5767_v35, %v2391_v19 }
 0x34d   : > { %v2396_v57 = vpop.f32.mrb[54].mxu1 }
 0x34e   : > { %v2398_v63 = vpop.f32.mrb[55].mxu1  ;;  %v2397_v22 = vadd.f32 %v5767_v35, %v2396_v57 }
 0x352   : > { %v2401_v13 = vpop.f32.mrb[56].mxu1 }
 0x353   : > { %v2403_v24 = vpop.f32.mrb[57].mxu1  ;;  %v2402_v27 = vadd.f32 %v5767_v35, %v2401_v13 }
 0x354   : > { %v4420_v24 = vld [vmem:[%s4788_s19 + $0x18] sm:$0xff] }
 0x357   : > { %v2406_v3 = vpop.f32.mrb[58].mxu1 }
 0x358   : > { %v2408_v32 = vpop.f32.mrb[59].mxu1  ;;  %v2407_v16 = vadd.f32 %v5767_v35, %v2406_v3 }
 0x359   : > { %v4421_v32 = vld [vmem:[%s4788_s19 + $0x10] sm:$0xff] }
 0x35e   : > { %v2411_v44 = vpop.f32.mrb[60].mxu1 }
 0x35f   : > { %v2413_v62 = vpop.f32.mrb[61].mxu1  ;;  %v2412_v59 = vadd.f32 %v5767_v35, %v2411_v44 }
 0x363   : > { %v2416_v45 = vpop.f32.mrb[62].mxu1 }
 0x364   : > { %v2418_v51 = vpop.f32.mrb[63].mxu1  ;;  %v2417_v38 = vadd.f32 %v5767_v35, %v2416_v45 }
 0x367   : > { %v3706_v43 = vpop.f32.mrb[64].mxu1 }
 0x368   : > { %v2612_v36 = vadd.f32 %v3706_v43, %v2387_v55  ;;  %v2606_v56 = vpop.f32.mrb[65].mxu1 }
 0x369   : > { %v2607_v31 = vadd.f32 %v2606_v56, %v2382_v18 }
 0x36a   : > { %v2702_v20 = vmul.f32 0.01, %v2612_v36  ;;  %vm2670_vm1 = vcmp.gt.f32.partialorder %v2612_v36, 0.0 }
 0x36b   : > { %vm2669_vm2 = vcmp.gt.f32.partialorder %v2607_v31, 0.0  ;;  %v2701_v61 = vmul.f32 0.01, %v2607_v31  ;;  %v3709_v52 = vpop.f32.mrb[66].mxu1 }
 0x36c   : > { %v2622_v23 = vadd.f32 %v3709_v52, %v2397_v22  ;;  %v2616_v29 = vpop.f32.mrb[67].mxu1  ;;  %v2734_v12 = vsel %vm2670_vm1, %v2612_v36, %v2702_v20  ;;  %v4422_v20 = vld [vmem:[%s4788_s19 + $0x28] sm:$0xff] }
 0x36d   : > { %v2617_v0 = vadd.f32 %v2616_v29, %v2392_v21  ;;  %v2733_v58 = vsel %vm2669_vm2, %v2607_v31, %v2701_v61  ;;  %v4423_v61 = vld [vmem:[%s4788_s19 + $0x20] sm:$0xff] }
 0x36e   : > { %v2704_v15 = vmul.f32 0.01, %v2622_v23  ;;  %3760 = vmatprep.mubr.msk.f32.mxu0 %vm726_vm0, %v2733_v58  ;;  %vm2672_vm3 = vcmp.gt.f32.partialorder %v2622_v23, 0.0 }
 0x36f   : > { %vm2671_vm4 = vcmp.gt.f32.partialorder %v2617_v0, 0.0  ;;  %v2703_v34 = vmul.f32 0.01, %v2617_v0  ;;  %v3712_v49 = vpop.f32.mrb[68].mxu1  ;;  %3761 = vmatmul.mubr.msk.f32.gmra.mrb[80].mxu0 %vm726_vm0, %v2734_v12 }
 0x370   : > { %v2632_v28 = vadd.f32 %v3712_v49, %v2407_v16  ;;  %v2626_v17 = vpop.f32.mrb[69].mxu1  ;;  %v2736_v26 = vsel %vm2672_vm3, %v2622_v23, %v2704_v15 }
 0x371   : > { %v2627_v11 = vadd.f32 %v2626_v17, %v2402_v27  ;;  %v2735_v10 = vsel %vm2671_vm4, %v2617_v0, %v2703_v34 }
 0x372   : > { %v2706_v25 = vmul.f32 0.01, %v2632_v28  ;;  %3763 = vmatprep.mubr.msk.f32.mxu0 %vm726_vm0, %v2735_v10  ;;  %vm2674_vm5 = vcmp.gt.f32.partialorder %v2632_v28, 0.0 }
 0x373   : > { %vm2673_vm6 = vcmp.gt.f32.partialorder %v2627_v11, 0.0  ;;  %v2705_v2 = vmul.f32 0.01, %v2627_v11  ;;  %v3715_v8 = vpop.f32.mrb[70].mxu1  ;;  %3764 = vmatmul.mubr.msk.f32.gmra.mrb[82].mxu0 %vm726_vm0, %v2736_v26 }
 0x374   : > { %v2642_v4 = vadd.f32 %v3715_v8, %v2417_v38  ;;  %v2636_v48 = vpop.f32.mrb[71].mxu1  ;;  %v2738_v54 = vsel %vm2674_vm5, %v2632_v28, %v2706_v25  ;;  %v4424_v28 = vld [vmem:[%s4788_s19 + $0x38] sm:$0xff] }
 0x375   : > { %v2637_v46 = vadd.f32 %v2636_v48, %v2412_v59  ;;  %v2737_v30 = vsel %vm2673_vm6, %v2627_v11, %v2705_v2  ;;  %v4425_v11 = vld [vmem:[%s4788_s19 + $0x30] sm:$0xff] }
 0x376   : > { %v2708_v53 = vmul.f32 0.01, %v2642_v4  ;;  %3766 = vmatprep.mubr.msk.f32.mxu0 %vm726_vm0, %v2737_v30  ;;  %vm2676_vm7 = vcmp.gt.f32.partialorder %v2642_v4, 0.0 }
 0x377   : > { %vm2675_vm8 = vcmp.gt.f32.partialorder %v2637_v46, 0.0  ;;  %v2707_v35 = vmul.f32 0.01, %v2637_v46  ;;  %3767 = vmatmul.mubr.msk.f32.gmra.mrb[84].mxu0 %vm726_vm0, %v2738_v54 }
 0x378   : > { %v2740_v50 = vsel %vm2676_vm7, %v2642_v4, %v2708_v53  ;;  %v4426_v53 = vld [vmem:[%s4788_s19 + $0x48] sm:$0xff] }
 0x379   : > { %v2739_v42 = vsel %vm2675_vm8, %v2637_v46, %v2707_v35  ;;  %v4427_v35 = vld [vmem:[%s4788_s19 + $0x40] sm:$0xff] }
 0x37a   : > { %3769 = vmatprep.mubr.msk.f32.mxu0 %vm726_vm0, %v2739_v42 }
 0x37b   : > { %3770 = vmatmul.mubr.msk.f32.gmra.mrb[86].mxu0 %vm726_vm0, %v2740_v50 }
 0x38f   : > { %v3726_v47 = vpop.f32.mrb[56].mxu0 }
 0x390   : > { %v2920_v6 = vadd.f32 %v3726_v47, %v5860_v39  ;;  %v2914_v1 = vpop.f32.mrb[57].mxu0 }
 0x391   : > { %v2915_v60 = vadd.f32 %v5860_v39, %v2914_v1 }
 0x392   : > { %v3074_v41 = vadd.f32 %v4418_v9, %v2920_v6 }
 0x393   : > { %v3073_v7 = vadd.f32 %v4419_v5, %v2915_v60 }
 0x394   : > { %3106 = vst [vmem:[%s5868_s17 + $0x8] sm:$0xff] %v3074_v41  ;;  %v3175_v14 = vmul.f32 %v3074_v41, %v3074_v41 }
 0x395   : > { %3105 = vst [vmem:[%s5868_s17] sm:$0xff] %v3073_v7  ;;  %v3137_v37 = vadd.f32 %v3074_v41, %v3073_v7  ;;  %v3174_v33 = vmul.f32 %v3073_v7, %v3073_v7 }
 0x397   : > { %v3206_v19 = vadd.f32 %v3175_v14, %v3174_v33 }
 0x39c   : > { %v3729_v40 = vpop.f32.mrb[58].mxu0 }
 0x39d   : > { %v2930_v57 = vadd.f32 %v3729_v40, %v5860_v39  ;;  %v2924_v63 = vpop.f32.mrb[59].mxu0 }
 0x39e   : > { %v2925_v13 = vadd.f32 %v5860_v39, %v2924_v63 }
 0x39f   : > { %v3076_v3 = vadd.f32 %v4420_v24, %v2930_v57 }
 0x3a0   : > { %v3075_v44 = vadd.f32 %v4421_v32, %v2925_v13 }
 0x3a1   : > { %3108 = vst [vmem:[%s5868_s17 + $0x18] sm:$0xff] %v3076_v3  ;;  %v3177_v51 = vmul.f32 %v3076_v3, %v3076_v3 }
 0x3a2   : > { %3107 = vst [vmem:[%s5868_s17 + $0x10] sm:$0xff] %v3075_v44  ;;  %v3138_v62 = vadd.f32 %v3137_v37, %v3075_v44  ;;  %v3176_v45 = vmul.f32 %v3075_v44, %v3075_v44  ;;  %v4428_v37 = vld [vmem:[%s4788_s19 + $0x58] sm:$0xff] }
 0x3a4   : > { %v3207_v55 = vadd.f32 %v3206_v19, %v3176_v45  ;;  %v3139_v18 = vadd.f32 %v3138_v62, %v3076_v3  ;;  %v4429_v19 = vld [vmem:[%s4788_s19 + $0x50] sm:$0xff] }
 0x3a6   : > { %v3208_v43 = vadd.f32 %v3207_v55, %v3177_v51  ;;  %v4430_v55 = vld [vmem:[%s4788_s19 + $0x68] sm:$0xff] }
 0x3a8   : > { %v3732_v36 = vpop.f32.mrb[60].mxu0 }
 0x3a9   : > { %v2940_v56 = vadd.f32 %v3732_v36, %v5860_v39  ;;  %v2934_v31 = vpop.f32.mrb[61].mxu0 }
 0x3aa   : > { %v2935_v22 = vadd.f32 %v5860_v39, %v2934_v31 }
 0x3ab   : > { %v3078_v21 = vadd.f32 %v4422_v20, %v2940_v56 }
 0x3ac   : > { %v3077_v52 = vadd.f32 %v4423_v61, %v2935_v22 }
 0x3ad   : > { %3110 = vst [vmem:[%s5868_s17 + $0x28] sm:$0xff] %v3078_v21  ;;  %v3179_v0 = vmul.f32 %v3078_v21, %v3078_v21 }
 0x3ae   : > { %3109 = vst [vmem:[%s5868_s17 + $0x20] sm:$0xff] %v3077_v52  ;;  %v3140_v23 = vadd.f32 %v3139_v18, %v3077_v52  ;;  %v3178_v29 = vmul.f32 %v3077_v52, %v3077_v52 }
 0x3b0   : > { %v3209_v58 = vadd.f32 %v3208_v43, %v3178_v29  ;;  %v3141_v16 = vadd.f32 %v3140_v23, %v3078_v21  ;;  %v4431_v43 = vld [vmem:[%s4788_s19 + $0x60] sm:$0xff] }
 0x3b2   : > { %v3210_v15 = vadd.f32 %v3209_v58, %v3179_v0  ;;  %v4432_v58 = vld [vmem:[%s4788_s19 + $0x78] sm:$0xff] }
 0x3b4   : > { %v3735_v12 = vpop.f32.mrb[62].mxu0 }
 0x3b5   : > { %v2950_v27 = vadd.f32 %v3735_v12, %v5860_v39  ;;  %v2944_v34 = vpop.f32.mrb[63].mxu0 }
 0x3b6   : > { %v2945_v49 = vadd.f32 %v5860_v39, %v2944_v34 }
 0x3b7   : > { %v3080_v17 = vadd.f32 %v4424_v28, %v2950_v27 }
 0x3b8   : > { %v3079_v10 = vadd.f32 %v4425_v11, %v2945_v49 }
 0x3b9   : > { %3112 = vst [vmem:[%s5868_s17 + $0x38] sm:$0xff] %v3080_v17  ;;  %v3181_v26 = vmul.f32 %v3080_v17, %v3080_v17 }
 0x3ba   : > { %3111 = vst [vmem:[%s5868_s17 + $0x30] sm:$0xff] %v3079_v10  ;;  %v3142_v38 = vadd.f32 %v3141_v16, %v3079_v10  ;;  %v3180_v25 = vmul.f32 %v3079_v10, %v3079_v10 }
 0x3bc   : > { %v3211_v59 = vadd.f32 %v3210_v15, %v3180_v25  ;;  %v3143_v2 = vadd.f32 %v3142_v38, %v3080_v17  ;;  %v4433_v15 = vld [vmem:[%s4788_s19 + $0x70] sm:$0xff] }
 0x3be   : > { %v3212_v8 = vadd.f32 %v3211_v59, %v3181_v26  ;;  %v4434_v59 = vld [vmem:[%s4788_s19 + $0x88] sm:$0xff] }
 0x3c0   : > { %v3738_v4 = vpop.f32.mrb[64].mxu0 }
 0x3c1   : > { %v2960_v48 = vadd.f32 %v3738_v4, %v5860_v39  ;;  %v2954_v46 = vpop.f32.mrb[65].mxu0 }
 0x3c2   : > { %v2955_v30 = vadd.f32 %v5860_v39, %v2954_v46 }
 0x3c3   : > { %v3082_v54 = vadd.f32 %v4426_v53, %v2960_v48 }
 0x3c4   : > { %v3081_v42 = vadd.f32 %v4427_v35, %v2955_v30 }
 0x3c5   : > { %3114 = vst [vmem:[%s5868_s17 + $0x48] sm:$0xff] %v3082_v54  ;;  %v3183_v6 = vmul.f32 %v3082_v54, %v3082_v54 }
 0x3c6   : > { %3113 = vst [vmem:[%s5868_s17 + $0x40] sm:$0xff] %v3081_v42  ;;  %v3144_v50 = vadd.f32 %v3143_v2, %v3081_v42  ;;  %v3182_v47 = vmul.f32 %v3081_v42, %v3081_v42 }
 0x3c8   : > { %v3213_v1 = vadd.f32 %v3212_v8, %v3182_v47  ;;  %v3145_v60 = vadd.f32 %v3144_v50, %v3082_v54  ;;  %v4435_v8 = vld [vmem:[%s4788_s19 + $0x80] sm:$0xff] }
 0x3ca   : > { %v3214_v9 = vadd.f32 %v3213_v1, %v3183_v6  ;;  %v4436_v1 = vld [vmem:[%s4788_s19 + $0x98] sm:$0xff] }
 0x3cc   : > { %v3741_v41 = vpop.f32.mrb[66].mxu0 }
 0x3cd   : > { %v2970_v5 = vadd.f32 %v3741_v41, %v5860_v39  ;;  %v2964_v7 = vpop.f32.mrb[67].mxu0 }
 0x3ce   : > { %v2965_v14 = vadd.f32 %v5860_v39, %v2964_v7 }
 0x3cf   : > { %v3084_v33 = vadd.f32 %v4428_v37, %v2970_v5 }
 0x3d0   : > { %v3083_v40 = vadd.f32 %v4429_v19, %v2965_v14 }
 0x3d1   : > { %3116 = vst [vmem:[%s5868_s17 + $0x58] sm:$0xff] %v3084_v33  ;;  %v3185_v13 = vmul.f32 %v3084_v33, %v3084_v33 }
 0x3d2   : > { %3115 = vst [vmem:[%s5868_s17 + $0x50] sm:$0xff] %v3083_v40  ;;  %v3146_v57 = vadd.f32 %v3145_v60, %v3083_v40  ;;  %v3184_v63 = vmul.f32 %v3083_v40, %v3083_v40 }
 0x3d4   : > { %v3215_v24 = vadd.f32 %v3214_v9, %v3184_v63  ;;  %v3147_v3 = vadd.f32 %v3146_v57, %v3084_v33  ;;  %v4437_v9 = vld [vmem:[%s4788_s19 + $0x90] sm:$0xff] }
 0x3d6   : > { %v3216_v32 = vadd.f32 %v3215_v24, %v3185_v13  ;;  %v4438_v24 = vld [vmem:[%s4788_s19 + $0xa8] sm:$0xff] }
 0x3d8   : > { %v3744_v44 = vpop.f32.mrb[68].mxu0 }
 0x3d9   : > { %v2980_v62 = vadd.f32 %v3744_v44, %v5860_v39  ;;  %v2974_v45 = vpop.f32.mrb[69].mxu0 }
 0x3da   : > { %v2975_v51 = vadd.f32 %v5860_v39, %v2974_v45 }
 0x3db   : > { %v3086_v18 = vadd.f32 %v4430_v55, %v2980_v62 }
 0x3dc   : > { %v3085_v36 = vadd.f32 %v4431_v43, %v2975_v51 }
 0x3dd   : > { %3118 = vst [vmem:[%s5868_s17 + $0x68] sm:$0xff] %v3086_v18  ;;  %v3187_v22 = vmul.f32 %v3086_v18, %v3086_v18 }
 0x3de   : > { %3117 = vst [vmem:[%s5868_s17 + $0x60] sm:$0xff] %v3085_v36  ;;  %v3148_v56 = vadd.f32 %v3147_v3, %v3085_v36  ;;  %v3186_v31 = vmul.f32 %v3085_v36, %v3085_v36 }
 0x3e0   : > { %v3217_v20 = vadd.f32 %v3216_v32, %v3186_v31  ;;  %v3149_v21 = vadd.f32 %v3148_v56, %v3086_v18  ;;  %v4439_v32 = vld [vmem:[%s4788_s19 + $0xa0] sm:$0xff] }
 0x3e2   : > { %v3218_v61 = vadd.f32 %v3217_v20, %v3187_v22  ;;  %v4440_v20 = vld [vmem:[%s4788_s19 + $0xb8] sm:$0xff] }
 0x3e4   : > { %v3747_v52 = vpop.f32.mrb[70].mxu0 }
 0x3e5   : > { %v2990_v23 = vadd.f32 %v3747_v52, %v5860_v39  ;;  %v2984_v29 = vpop.f32.mrb[71].mxu0 }
 0x3e6   : > { %v2985_v0 = vadd.f32 %v5860_v39, %v2984_v29 }
 0x3e7   : > { %v3088_v16 = vadd.f32 %v4432_v58, %v2990_v23 }
 0x3e8   : > { %v3087_v12 = vadd.f32 %v4433_v15, %v2985_v0 }
 0x3e9   : > { %3120 = vst [vmem:[%s5868_s17 + $0x78] sm:$0xff] %v3088_v16  ;;  %v3189_v49 = vmul.f32 %v3088_v16, %v3088_v16 }
 0x3ea   : > { %3119 = vst [vmem:[%s5868_s17 + $0x70] sm:$0xff] %v3087_v12  ;;  %v3150_v27 = vadd.f32 %v3149_v21, %v3087_v12  ;;  %v3188_v34 = vmul.f32 %v3087_v12, %v3087_v12 }
 0x3ec   : > { %v3219_v28 = vadd.f32 %v3218_v61, %v3188_v34  ;;  %v3151_v17 = vadd.f32 %v3150_v27, %v3088_v16  ;;  %v4441_v61 = vld [vmem:[%s4788_s19 + $0xb0] sm:$0xff] }
 0x3ee   : > { %v3220_v11 = vadd.f32 %v3219_v28, %v3189_v49  ;;  %v4442_v28 = vld [vmem:[%s4788_s19 + $0xc8] sm:$0xff] }
 0x3f0   : > { %v3750_v10 = vpop.f32.mrb[72].mxu0 }
 0x3f1   : > { %v3000_v38 = vadd.f32 %v3750_v10, %v5860_v39  ;;  %v2994_v25 = vpop.f32.mrb[73].mxu0 }
 0x3f2   : > { %v2995_v26 = vadd.f32 %v5860_v39, %v2994_v25 }
 0x3f3   : > { %v3090_v2 = vadd.f32 %v4434_v59, %v3000_v38 }
 0x3f4   : > { %v3089_v4 = vadd.f32 %v4435_v8, %v2995_v26 }
 0x3f5   : > { %3122 = vst [vmem:[%s5868_s17 + $0x88] sm:$0xff] %v3090_v2  ;;  %v3191_v30 = vmul.f32 %v3090_v2, %v3090_v2 }
 0x3f6   : > { %3121 = vst [vmem:[%s5868_s17 + $0x80] sm:$0xff] %v3089_v4  ;;  %v3152_v48 = vadd.f32 %v3151_v17, %v3089_v4  ;;  %v3190_v46 = vmul.f32 %v3089_v4, %v3089_v4  ;;  %v4444_v4 = vld [vmem:[%s4788_s19 + $0xd8] sm:$0xff] }
 0x3f8   : > { %v3221_v53 = vadd.f32 %v3220_v11, %v3190_v46  ;;  %v3153_v54 = vadd.f32 %v3152_v48, %v3090_v2  ;;  %v4443_v11 = vld [vmem:[%s4788_s19 + $0xc0] sm:$0xff] }
 0x3fa   : > { %v3222_v35 = vadd.f32 %v3221_v53, %v3191_v30  ;;  %v4445_v53 = vld [vmem:[%s4788_s19 + $0xd0] sm:$0xff] }
 0x3fc   : > { %v3753_v42 = vpop.f32.mrb[74].mxu0 }
 0x3fd   : > { %v3010_v50 = vadd.f32 %v3753_v42, %v5860_v39  ;;  %v3004_v47 = vpop.f32.mrb[75].mxu0 }
 0x3fe   : > { %v3005_v6 = vadd.f32 %v5860_v39, %v3004_v47 }
 0x3ff   : > { %v3092_v60 = vadd.f32 %v4436_v1, %v3010_v50 }
 0x400   : > { %v3091_v41 = vadd.f32 %v4437_v9, %v3005_v6 }
 0x401   : > { %3124 = vst [vmem:[%s5868_s17 + $0x98] sm:$0xff] %v3092_v60  ;;  %v3193_v14 = vmul.f32 %v3092_v60, %v3092_v60 }
 0x402   : > { %3123 = vst [vmem:[%s5868_s17 + $0x90] sm:$0xff] %v3091_v41  ;;  %v3154_v5 = vadd.f32 %v3153_v54, %v3091_v41  ;;  %v3192_v7 = vmul.f32 %v3091_v41, %v3091_v41  ;;  %v4446_v41 = vld [vmem:[%s4788_s19 + $0xe8] sm:$0xff] }
 0x404   : > { %v3223_v37 = vadd.f32 %v3222_v35, %v3192_v7  ;;  %v3155_v33 = vadd.f32 %v3154_v5, %v3092_v60 }
 0x406   : > { %v3224_v19 = vadd.f32 %v3223_v37, %v3193_v14  ;;  %v4447_v37 = vld [vmem:[%s4788_s19 + $0xe0] sm:$0xff] }
 0x408   : > { %v3756_v40 = vpop.f32.mrb[76].mxu0 }
 0x409   : > { %v3020_v57 = vadd.f32 %v3756_v40, %v5860_v39  ;;  %v3014_v63 = vpop.f32.mrb[77].mxu0 }
 0x40a   : > { %v3015_v13 = vadd.f32 %v5860_v39, %v3014_v63 }
 0x40b   : > { %v3094_v3 = vadd.f32 %v4438_v24, %v3020_v57 }
 0x40c   : > { %v3093_v44 = vadd.f32 %v4439_v32, %v3015_v13 }
 0x40d   : > { %3126 = vst [vmem:[%s5868_s17 + $0xa8] sm:$0xff] %v3094_v3  ;;  %v3195_v51 = vmul.f32 %v3094_v3, %v3094_v3 }
 0x40e   : > { %3125 = vst [vmem:[%s5868_s17 + $0xa0] sm:$0xff] %v3093_v44  ;;  %v3156_v62 = vadd.f32 %v3155_v33, %v3093_v44  ;;  %v3194_v45 = vmul.f32 %v3093_v44, %v3093_v44  ;;  %v4448_v44 = vld [vmem:[%s4788_s19 + $0xf8] sm:$0xff] }
 0x410   : > { %v3225_v55 = vadd.f32 %v3224_v19, %v3194_v45  ;;  %v3157_v18 = vadd.f32 %v3156_v62, %v3094_v3 }
 0x412   : > { %v3226_v43 = vadd.f32 %v3225_v55, %v3195_v51  ;;  %v4449_v55 = vld [vmem:[%s4788_s19 + $0xf0] sm:$0xff] }
 0x414   : > { %v3759_v36 = vpop.f32.mrb[78].mxu0 }
 0x415   : > { %v3030_v56 = vadd.f32 %v3759_v36, %v5860_v39  ;;  %v3024_v31 = vpop.f32.mrb[79].mxu0 }
 0x416   : > { %v3025_v22 = vadd.f32 %v5860_v39, %v3024_v31 }
 0x417   : > { %v3096_v21 = vadd.f32 %v4440_v20, %v3030_v56 }
 0x418   : > { %v3095_v52 = vadd.f32 %v4441_v61, %v3025_v22 }
 0x419   : > { %3128 = vst [vmem:[%s5868_s17 + $0xb8] sm:$0xff] %v3096_v21  ;;  %v3197_v0 = vmul.f32 %v3096_v21, %v3096_v21 }
 0x41a   : > { %3127 = vst [vmem:[%s5868_s17 + $0xb0] sm:$0xff] %v3095_v52  ;;  %v3158_v23 = vadd.f32 %v3157_v18, %v3095_v52  ;;  %v3196_v29 = vmul.f32 %v3095_v52, %v3095_v52 }
 0x41c   : > { %v3227_v58 = vadd.f32 %v3226_v43, %v3196_v29  ;;  %v3159_v16 = vadd.f32 %v3158_v23, %v3096_v21 }
 0x41e   : > { %v3228_v15 = vadd.f32 %v3227_v58, %v3197_v0 }
 0x442   : > { %v3762_v12 = vpop.f32.mrb[80].mxu0 }
 0x443   : > { %v3040_v27 = vadd.f32 %v3762_v12, %v5860_v39  ;;  %v3034_v34 = vpop.f32.mrb[81].mxu0 }
 0x444   : > { %v3035_v49 = vadd.f32 %v5860_v39, %v3034_v34 }
 0x445   : > { %v3098_v17 = vadd.f32 %v4442_v28, %v3040_v27 }
 0x446   : > { %v3097_v10 = vadd.f32 %v4443_v11, %v3035_v49  ;;  %v3765_v38 = vpop.f32.mrb[82].mxu0 }
 0x447   : > { %3130 = vst [vmem:[%s5868_s17 + $0xc8] sm:$0xff] %v3098_v17  ;;  %v3050_v25 = vadd.f32 %v3765_v38, %v5860_v39  ;;  %v3044_v26 = vpop.f32.mrb[83].mxu0  ;;  %v3199_v46 = vmul.f32 %v3098_v17, %v3098_v17 }
 0x448   : > { %3129 = vst [vmem:[%s5868_s17 + $0xc0] sm:$0xff] %v3097_v10  ;;  %v3160_v59 = vadd.f32 %v3159_v16, %v3097_v10  ;;  %v3198_v2 = vmul.f32 %v3097_v10, %v3097_v10  ;;  %v3045_v8 = vadd.f32 %v5860_v39, %v3044_v26 }
 0x449   : > { %v3100_v48 = vadd.f32 %v4444_v4, %v3050_v25 }
 0x44a   : > { %v3229_v30 = vadd.f32 %v3228_v15, %v3198_v2  ;;  %v3099_v54 = vadd.f32 %v4445_v53, %v3045_v8  ;;  %v3161_v35 = vadd.f32 %v3160_v59, %v3098_v17  ;;  %v3768_v42 = vpop.f32.mrb[84].mxu0 }
 0x44b   : > { %3132 = vst [vmem:[%s5868_s17 + $0xd8] sm:$0xff] %v3100_v48  ;;  %v3060_v50 = vadd.f32 %v3768_v42, %v5860_v39  ;;  %v3054_v47 = vpop.f32.mrb[85].mxu0  ;;  %v3201_v7 = vmul.f32 %v3100_v48, %v3100_v48 }
 0x44c   : > { %3131 = vst [vmem:[%s5868_s17 + $0xd0] sm:$0xff] %v3099_v54  ;;  %v3162_v6 = vadd.f32 %v3161_v35, %v3099_v54  ;;  %v3200_v1 = vmul.f32 %v3099_v54, %v3099_v54  ;;  %v3230_v60 = vadd.f32 %v3229_v30, %v3199_v46  ;;  %v3055_v9 = vadd.f32 %v5860_v39, %v3054_v47 }
 0x44d   : > { %v3102_v5 = vadd.f32 %v4446_v41, %v3060_v50 }
 0x44e   : > { %v3231_v14 = vadd.f32 %v3230_v60, %v3200_v1  ;;  %v3101_v33 = vadd.f32 %v4447_v37, %v3055_v9  ;;  %v3163_v19 = vadd.f32 %v3162_v6, %v3100_v48  ;;  %v3771_v40 = vpop.f32.mrb[86].mxu0 }
 0x44f   : > { %3134 = vst [vmem:[%s5868_s17 + $0xe8] sm:$0xff] %v3102_v5  ;;  %v3070_v57 = vadd.f32 %v3771_v40, %v5860_v39  ;;  %v3064_v63 = vpop.f32.mrb[87].mxu0  ;;  %v3203_v45 = vmul.f32 %v3102_v5, %v3102_v5 }
 0x450   : > { %3133 = vst [vmem:[%s5868_s17 + $0xe0] sm:$0xff] %v3101_v33  ;;  %v3164_v13 = vadd.f32 %v3163_v19, %v3101_v33  ;;  %v3202_v24 = vmul.f32 %v3101_v33, %v3101_v33  ;;  %v3232_v3 = vadd.f32 %v3231_v14, %v3201_v7  ;;  %v3065_v32 = vadd.f32 %v5860_v39, %v3064_v63 }
 0x451   : > { %v3104_v62 = vadd.f32 %v4448_v44, %v3070_v57 }
 0x452   : > { %v3233_v51 = vadd.f32 %v3232_v3, %v3202_v24  ;;  %v3103_v18 = vadd.f32 %v4449_v55, %v3065_v32  ;;  %v3165_v43 = vadd.f32 %v3164_v13, %v3102_v5 }
 0x453   : > { %3136 = vst [vmem:[%s5868_s17 + $0xf8] sm:$0xff] %v3104_v62 }
 0x454   : > { %3135 = vst [vmem:[%s5868_s17 + $0xf0] sm:$0xff] %v3103_v18  ;;  %v3166_v39 = vadd.f32 %v3165_v43, %v3103_v18  ;;  %v3204_v36 = vmul.f32 %v3103_v18, %v3103_v18  ;;  %v3234_v56 = vadd.f32 %v3233_v51, %v3203_v45 }
 0x455   : > { %4521 = shalt.err (!%p4518_p7)
}
 0x456   : > { %s4522_s19 = scalar_lea.hbm %s5964_s14, 4096  ;;  %s4526_s15 = scalar_lea.hbm %s6025_s7, 8192 }
 0x457   : > { %p4523_p9 = scmp.ne.s32.totalorder %s5964_s14, %s4522_s19  ;;  %p4527_p5 = scmp.lt.u32.totalorder %s5964_s14, %s6025_s7 }
 0x458   : > { %p4528_p11 = scmp.lt.u32.totalorder %s4526_s15, %s4522_s19  ;;  %p4530_p4 = scmp.lt.u32.totalorder %s4522_s19, %s5964_s14 }
 0x459   : > { %p4524_p1 = pnand %p4523_p9, %p4731_p12 }
 0x45a   : > { %p4529_p2 = por %p4528_p11, %p4527_p5 }
 0x45b   : > { %p4525_p0 = pneg %p4524_p1 }
 0x45c   : > { %p4531_p6 = por %p4530_p4, %p4529_p2 }
 0x45e   : > { %p4532_p8 = pnand %p4531_p6, %p4525_p0 }
 0x460   : > { %4535 = shalt.err (!%p4532_p8)
}
 0x461   : > { %s4590_s13 = smov 128   ;;  %s4591_s20 = smov 8   ;;  %v3205_v31 = vmul.f32 %v3104_v62, %v3104_v62  ;;  %v3167_v22 = vadd.f32 %v3166_v39, %v3104_v62  ;;  %v3235_v20 = vadd.f32 %v3234_v56, %v3204_v36  ;;  %vm3243_vm0 = vcmask 1040384  }
 0x462   : > { %3878 = dma.vmem_to_hbm [thread:$0]  (%p4731_p12), %s5966_s11, 4096, %s5964_s14, %s3247_s16, %s4590_s13, %s4590_s13, %s4591_s20  }
 0x463   : > { %v3168_v21 = vrot.slane %v3167_v22, 4  ;;  %v3236_v61 = vadd.f32 %v3235_v20, %v3205_v31  ;;  %p346_p10 = scmp.lt.s32.totalorder %s4658_s9, 1 }
 0x465   : > { %v3169_v52 = vadd.f32 %v3168_v21, %v3167_v22  ;;  %v3237_v23 = vrot.slane %v3236_v61, 4  ;;  %s6053_s9 = smov (!%p346_p10, %s4658_s9), 1 }
 0x466   : > { %s3385_s21 = sshll.u32 %s6053_s9, 1 }
 0x467   : > { %v3170_v29 = vrot.slane %v3169_v52, 2  ;;  %v3238_v0 = vadd.f32 %v3237_v23, %v3236_v61  ;;  %s349_s11 = scalar_lea.vmem %s6026_s8, %s3385_s21 }
 0x469   : > { %v3171_v58 = vadd.f32 %v3170_v29, %v3169_v52  ;;  %v3239_v16 = vrot.slane %v3238_v0, 2 }
 0x46b   : > { %v3172_v15 = vrot.slane %v3171_v58, 1  ;;  %v3240_v12 = vadd.f32 %v3239_v16, %v3238_v0 }
 0x46d   : > { %v3241_v27 = vrot.slane %v3240_v12, 1  ;;  %v3173_v34 = vadd.f32 %v3172_v15, %v3171_v58 }
 0x46f   : > { %v3242_v49 = vadd.f32 %v3241_v27, %v3240_v12 }
 0x471   : > { %v3244_v28 = vsel %vm3243_vm0, %v3173_v34, %v3242_v49 }
 0x472   : > { %3245 = vst [vmem:[%s349_s11] sm:$0x3] %v3244_v28 }
 0x473 PF: > { %s3282_s14 = sand.u32 1, %s4566_s27   ;;  %p6046_p12 = scmp.ne.s32.totalorder %s6034_s12, 0 }
 0x474   : > { %p6047_p13 = scmp.ge.s32.totalorder %s4578_s30, 2  ;;  %s3283_s16 = scalar_lea.sflag [#allocation5], %s3282_s14 }
 0x476   : > { %p3889_p3 = pnand %p6047_p13, %p6046_p12 }
 0x478   : > { %4561 = dma.done.wait (!%p3889_p3), %s3283_s16, 4096  }
 0x479   : > { %4563 = vsyncadd (!%p3889_p3), %s3283_s16, 4294963200  ;;  %s6048_s30 = sld [smem:[#allocation12_spill]]  ;;  %s6049_s27 = smov %s4570_s28 }
 0x47a   : > { %s6050_s28 = smov %s4574_s29  ;;  %s6051_s29 = smov %s4727_s23 }
 0x47f   : > { %p23_p7 = scmp.ge.s32.totalorder %s6048_s30, 4  }
 0x481   :  { %25 = sbr.rel (!%p23_p7) target bundleno = 6 (0x6), region = 112 }
 0x488   :  { %3295 = vsyncpa [#allocation4], 1 }
 0x489   :  { %3297 = vsyncpa [#allocation4 + $0x1], 1 }
 0x48a   :  { %3298 = vsyncpa [#allocation7], 1 }
 0x48b   :  { %3299 = vsyncpa [#allocation5], 1 }
 0x48c   :  { %3301 = vsyncpa [#allocation5 + $0x1], 1 }

</bundles_post_ra>
